<compile_context>
chip_gen: v6e
topology: v6e:2x2x1
jax: 0.10.0
libtpu: 0.0.40
codegen_flags: <defaults>
</compile_context>

<pallas_src>
import functools

import jax
import jax.numpy as jnp
from jax.experimental import pallas as pl
from jax.experimental.pallas import tpu as pltpu

_LANE = 128
_EPS = 1e-5
_TM_MAX = 512                       # M-tile upper bound (multiple of 8)
_VMEM_LIMIT = 32 * 1024 * 1024      # explicit scoped-VMEM ceiling (safe on v5e/v6e/v7x)
_VMEM_BUDGET = 24 * 1024 * 1024     # planning budget (headroom below the limit)


def _round_up(x, m):
    return (x + m - 1) // m * m


# ----------------------------------------------------------------------------
# Pallas kernel 1: fused complex conv (packed block matmul) + bias (+ CReLU)
#                  + optional in-kernel BatchNorm partial statistics
# ----------------------------------------------------------------------------
def _packed_conv_kernel(p_ref, w_ref, b_ref, o_ref, *stat_refs,
                        fuse_relu, emit_stats, m_total, tm):
    """p: (TM, 2K) bf16 packed [patch_r | patch_i];
    w: (2K, 2Cpad) bf16 block matrix [[wr, wi], [-wi, wr]];
    b: (1, 2Cpad) f32 packed bias;  o: (TM, 2Cpad) f32 packed [yr | yi];
    optional stats outputs: per-tile sum / sum-of-squares, (1, 1, 2Cpad) f32.

    A single MXU matmul computes both real and imaginary output columns
    lane-packed; bias, optional CReLU and optional BN partial statistics run
    on the packed f32 accumulator while it is still resident in VMEM.
    """
    y = jnp.dot(p_ref[...], w_ref[...], preferred_element_type=jnp.float32)
    y = y + b_ref[...]
    if fuse_relu:
        y = jnp.maximum(y, 0.0)
    o_ref[...] = y.astype(o_ref.dtype)

    if emit_stats:
        sum_ref, ssq_ref = stat_refs
        if m_total % tm != 0:
            # Mask padded rows of the final tile out of the batch statistics.
            rows = (jax.lax.broadcasted_iota(jnp.int32, y.shape, 0)
                    + pl.program_id(0) * tm)
            y = jnp.where(rows < m_total, y, 0.0)
        sum_ref[...] = jnp.sum(y, axis=0, keepdims=True).reshape(1, 1, -1)
        ssq_ref[...] = jnp.sum(y * y, axis=0, keepdims=True).reshape(1, 1, -1)


# ----------------------------------------------------------------------------
# Pallas kernel 2: per-channel affine (BN normalize) + optional CReLU
# ----------------------------------------------------------------------------
def _affine_act_kernel(y_ref, scale_ref, shift_ref, o_ref, *, fuse_relu):
    y = y_ref[...] * scale_ref[...] + shift_ref[...]
    if fuse_relu:
        y = jnp.maximum(y, 0.0)
    o_ref[...] = y


# ----------------------------------------------------------------------------
# Glue: im2col + pallas_call wrapper for one conv block
# ----------------------------------------------------------------------------
def _im2col(x, kh, kw, pad):
    """x: (N, H, W, C) float32, stride-1 'same' conv -> (N*H*W, kh*kw*C)."""
    # TODO(synk): patches are still materialized in HBM (cast to bf16 right
    # after to halve the kh*kw-expanded traffic); building patches in-kernel
    # from an NHWC VMEM tile would remove the expansion entirely.
    n, h, w, c = x.shape
    xp = jnp.pad(x, ((0, 0), (pad, pad), (pad, pad), (0, 0)))
    cols = []
    for i in range(kh):
        for j in range(kw):
            cols.append(xp[:, i:i + h, j:j + w, :])
    patches = jnp.concatenate(cols, axis=-1)            # (N, H, W, kh*kw*C)
    return patches.reshape(n * h * w, kh * kw * c)


def _pick_tm(m, k2, n2):
    """Largest M-tile (<= _TM_MAX, multiple of 8) fitting the VMEM budget."""
    if m <= _TM_MAX:
        return m  # full-extent block; always legal

    def vmem_bytes(t):
        return (2 * t * k2 * 2       # bf16 patch tile, double-buffered
                + 2 * k2 * n2 * 2    # bf16 pinned weights (double-buffered)
                + 2 * 1 * n2 * 4     # bias
                + 2 * t * n2 * 4     # f32 packed output, double-buffered
                + 4 * 1 * n2 * 4)    # stats partials

    tm = _TM_MAX
    while tm > 8 and vmem_bytes(tm) > _VMEM_BUDGET:
        tm //= 2
    return max(tm, 8)


def complex_conv_block(xr, xi, layer):
    """One conv block. xr/xi: (N, H, W, Cin) float32. Returns NHWC real/imag."""
    kh, kw = layer["kh"], layer["kw"]
    cout, cpad = layer["cout"], layer["cpad"]
    pad = layer["padding"]
    n, h, w, cin = xr.shape
    assert cin == layer["cin"]
    m = n * h * w
    k = kh * kw * cin
    k2, n2 = 2 * k, 2 * cpad

    # Packed im2col patches [real | imag] along K, emitted directly in bf16.
    pr = _im2col(xr, kh, kw, pad)
    pi = _im2col(xi, kh, kw, pad)
    p = jnp.concatenate([pr, pi], axis=1).astype(jnp.bfloat16)   # (M, 2K)

    tm = _pick_tm(m, k2, n2)
    nblk = (m + tm - 1) // tm
    grid = (nblk,)
    emit_stats = layer["bn"]
    fuse_relu_conv = layer["crelu"] and not layer["bn"]

    conv = functools.partial(_packed_conv_kernel, fuse_relu=fuse_relu_conv,
                             emit_stats=emit_stats, m_total=m, tm=tm)

    out_shapes = [jax.ShapeDtypeStruct((m, n2), jnp.float32)]
    out_specs = [pl.BlockSpec((tm, n2), lambda i: (i, 0))]
    if emit_stats:
        out_shapes += [jax.ShapeDtypeStruct((nblk, 1, n2), jnp.float32)] * 2
        out_specs += [pl.BlockSpec((1, 1, n2), lambda i: (i, 0, 0))] * 2

    outs = pl.pallas_call(
        conv,
        grid=grid,
        in_specs=[
            pl.BlockSpec((tm, k2), lambda i: (i, 0)),          # patch tile
            pl.BlockSpec((k2, n2), lambda i: (0, 0)),          # pinned weights
            pl.BlockSpec((1, n2), lambda i: (0, 0)),           # pinned bias
        ],
        out_specs=tuple(out_specs) if emit_stats else out_specs[0],
        out_shape=tuple(out_shapes) if emit_stats else out_shapes[0],
        compiler_params=pltpu.CompilerParams(
            dimension_semantics=("parallel",),
            vmem_limit_bytes=_VMEM_LIMIT),
    )(p, layer["w_blk"], layer["b_pack"])

    if emit_stats:
        y, psum, pssq = outs
        # TODO(synk): reference complex-BN variant (whitening vs naive) is not
        # shown in the source; using per-channel batch-statistic normalization
        # applied independently to real/imag parts with gamma=1, beta=0.
        total = jnp.sum(psum, axis=(0, 1))                     # (2Cpad,)
        total_sq = jnp.sum(pssq, axis=(0, 1))
        mean = total / m
        var = jnp.maximum(total_sq / m - mean * mean, 0.0)
        scale = jax.lax.rsqrt(var + _EPS)
        shift = -mean * scale
        scale = scale.reshape(1, n2)
        shift = shift.reshape(1, n2)

        act = functools.partial(_affine_act_kernel, fuse_relu=layer["crelu"])
        y = pl.pallas_call(
            act,
            grid=grid,
            in_specs=[
                pl.BlockSpec((tm, n2), lambda i: (i, 0)),
                pl.BlockSpec((1, n2), lambda i: (0, 0)),
                pl.BlockSpec((1, n2), lambda i: (0, 0)),
            ],
            out_specs=pl.BlockSpec((tm, n2), lambda i: (i, 0)),
            out_shape=jax.ShapeDtypeStruct((m, n2), jnp.float32),
            compiler_params=pltpu.CompilerParams(
                dimension_semantics=("parallel",),
                vmem_limit_bytes=_VMEM_LIMIT),
        )(y, scale, shift)
    else:
        y = outs

    yr = y[:, :cout].reshape(n, h, w, cout)
    yi = y[:, cpad:cpad + cout].reshape(n, h, w, cout)
    return yr, yi


# ----------------------------------------------------------------------------
# Parameter construction mirroring CNN_Generator.__init__
# ----------------------------------------------------------------------------
def _make_conv_layer(key, in_ch, out_ch, ksize, padding, bn, crelu, upsample):
    assert 2 * padding == ksize - 1, "im2col path assumes stride-1 'same' conv"
    k1, k2, k3, k4 = jax.random.split(key, 4)
    scale = 1.0 / float(ksize * ksize * in_ch) ** 0.5
    wr = scale * jax.random.normal(k1, (ksize, ksize, in_ch, out_ch), jnp.float32)
    wi = scale * jax.random.normal(k2, (ksize, ksize, in_ch, out_ch), jnp.float32)
    br = scale * jax.random.normal(k3, (out_ch,), jnp.float32)
    bi = scale * jax.random.normal(k4, (out_ch,), jnp.float32)

    k = ksize * ksize * in_ch
    cpad = _round_up(out_ch, _LANE)      # lane-dense per-half output width
    wr2 = jnp.zeros((k, cpad), jnp.float32).at[:, :out_ch].set(wr.reshape(k, out_ch))
    wi2 = jnp.zeros((k, cpad), jnp.float32).at[:, :out_ch].set(wi.reshape(k, out_ch))
    # Block-matrix packing: [pr | pi] @ [[wr, wi], [-wi, wr]] = [real | imag].
    # One lane-dense bf16 MXU matmul covers the whole complex product
    # (chosen over the 3-matmul Karatsuba form to keep stores lane-dense).
    w_blk = jnp.concatenate(
        [jnp.concatenate([wr2, wi2], axis=1),
         jnp.concatenate([-wi2, wr2], axis=1)], axis=0).astype(jnp.bfloat16)
    b_pack = jnp.zeros((1, 2 * cpad), jnp.float32)
    b_pack = b_pack.at[0, :out_ch].set(br).at[0, cpad:cpad + out_ch].set(bi)

    return {
        "type": "upsample_conv" if upsample else "conv",
        "w_blk": w_blk, "b_pack": b_pack,
        "kh": ksize, "kw": ksize, "cin": in_ch, "cout": out_ch, "cpad": cpad,
        "padding": padding, "bn": bn, "crelu": crelu,
    }


def init_cnn_generator(key, *, output_channels, latent_dim, num_conv_layers,
                       channels_multiplicator=0.25, step_upsample=2,
                       num_filter=128, size_first=8, kernel_size_conv=3,
                       stride_conv=1, padding_conv=1, batch_norm=True,
                       activation="crelu"):
    assert stride_conv == 1, "module default; im2col path assumes stride 1"
    del latent_dim, size_first  # (input_layer is built but never used in forward)

    crelu = (activation == "crelu")
    layers = []
    out_channels = num_filter
    lkey = key
    for l in range(num_conv_layers):
        if l % step_upsample == 0 and l != 0:
            in_channels = max(out_channels, 1)
            out_channels = max(int(in_channels * channels_multiplicator), 1)
            upsample = True
        else:
            in_channels = out_channels
            upsample = False
        lkey, sub = jax.random.split(lkey)
        layers.append(_make_conv_layer(sub, in_channels, out_channels,
                                       kernel_size_conv, padding_conv,
                                       bn=batch_norm, crelu=crelu, upsample=False))
        if upsample:
            lkey, sub = jax.random.split(lkey)
            # C_UpsampleConv2d: nearest 2x upsample + complex conv; the module
            # appends get_activation_function(activation) right after it, fused
            # here via the crelu flag (no BN on this block).
            layers.append(_make_conv_layer(sub, out_channels, out_channels,
                                           kernel_size_conv, padding_conv,
                                           bn=False, crelu=crelu, upsample=True))
    lkey, sub = jax.random.split(lkey)
    out_layer = _make_conv_layer(sub, out_channels, output_channels,
                                 2 * kernel_size_conv - 1, 2 * padding_conv,
                                 bn=False, crelu=False, upsample=False)
    return {"layers": layers, "out_layer": out_layer, "num_filter": num_filter}


# ----------------------------------------------------------------------------
# Forward pass mirroring CNN_Generator.forward
# ----------------------------------------------------------------------------
def cnn_generator_forward(z, params):
    # Mirrors forward() for a 4-D NCHW complex input whose channel dim already
    # equals num_filter (so neither permute branch in the PyTorch code fires).
    z = z.astype(jnp.complex64)
    assert z.ndim == 4 and z.shape[1] == params["num_filter"]

    xr = jnp.real(z).transpose(0, 2, 3, 1).astype(jnp.float32)  # NCHW -> NHWC
    xi = jnp.imag(z).transpose(0, 2, 3, 1).astype(jnp.float32)

    for layer in params["layers"]:
        if layer["type"] == "upsample_conv":
            # nearest-neighbor 2x upsample (pure data movement, kept as glue)
            xr = jnp.repeat(jnp.repeat(xr, 2, axis=1), 2, axis=2)
            xi = jnp.repeat(jnp.repeat(xi, 2, axis=1), 2, axis=2)
        xr, xi = complex_conv_block(xr, xi, layer)

    xr, xi = complex_conv_block(xr, xi, params["out_layer"])

    y = jax.lax.complex(xr, xi).transpose(0, 3, 1, 2)  # NHWC -> NCHW complex64
    if y.shape[0] == 1:  # torch .squeeze(0) only squeezes when the dim is 1
        y = jnp.squeeze(y, axis=0)
    return y


# ----------------------------------------------------------------------------
if __name__ == "__main__":
    key = jax.random.PRNGKey(0)
    pkey, zr_key, zi_key = jax.random.split(key, 3)

    # Small-shape instantiation: num_filter=8 channels, 8x8 latent map,
    # 3 conv layers with one 2x upsample stage -> output (2, 2, 16, 16).
    num_filter = 8
    params = init_cnn_generator(
        pkey,
        output_channels=2,
        latent_dim=16,
        num_conv_layers=3,
        channels_multiplicator=0.5,
        step_upsample=2,
        num_filter=num_filter,
        size_first=8,
        kernel_size_conv=3,
        stride_conv=1,
        padding_conv=1,
        batch_norm=True,
        activation="crelu",
    )

    n, h, w = 2, 8, 8
    zr = jax.random.normal(zr_key, (n, num_filter, h, w), jnp.float32)
    zi = jax.random.normal(zi_key, (n, num_filter, h, w), jnp.float32)
    z = jax.lax.complex(zr, zi)  # (2, 8, 8, 8) complex64, NCHW

    out = jax.jit(lambda zz: cnn_generator_forward(zz, params))(z)
    out = jax.block_until_ready(out)

    assert out.shape == (2, 2, 16, 16), out.shape
    assert out.dtype == jnp.complex64, out.dtype
    assert bool(jnp.all(jnp.isfinite(jnp.real(out)))), "non-finite output"
    assert bool(jnp.all(jnp.isfinite(jnp.imag(out)))), "non-finite output"
    print("KERNEL_OK")
</pallas_src>

<mosaic_0001>
module attributes {stable_mosaic.version = 11 : i64} {
  func.func @_packed_conv_kernel(%arg0: i32, %arg1: memref<128x144xbf16, #tpu.memory_space<vmem>>, %arg2: memref<144x256xbf16, #tpu.memory_space<vmem>>, %arg3: memref<1x256xf32, #tpu.memory_space<vmem>>, %arg4: memref<128x256xf32, #tpu.memory_space<vmem>>, %arg5: memref<1x1x256xf32, #tpu.memory_space<vmem>>, %arg6: memref<1x1x256xf32, #tpu.memory_space<vmem>>) attributes {dimension_semantics = [#tpu.dimension_semantics<parallel>], iteration_bounds = array<i64: 1>, scalar_prefetch = 0 : i64, scratch_operands = 0 : i64, tpu.core_type = #tpu.core_type<tc>, window_params = [{transform_indices = @transform_0, window_bounds = array<i64: 128, 144>}, {pipeline_mode = #tpu.pipeline_mode<synchronous>, transform_indices = @transform_1, window_bounds = array<i64: 144, 256>}, {pipeline_mode = #tpu.pipeline_mode<synchronous>, transform_indices = @transform_2, window_bounds = array<i64: 1, 256>}, {transform_indices = @transform_3, window_bounds = array<i64: 128, 256>}, {transform_indices = @transform_4, window_bounds = array<i64: 1, 1, 256>}, {transform_indices = @transform_5, window_bounds = array<i64: 1, 1, 256>}]} {
    %c0 = arith.constant 0 : index
    %c0_0 = arith.constant 0 : index
    %0 = vector.load %arg1[%c0, %c0_0] : memref<128x144xbf16, #tpu.memory_space<vmem>>, vector<128x144xbf16>
    %c0_1 = arith.constant 0 : index
    %c0_2 = arith.constant 0 : index
    %1 = vector.load %arg2[%c0_1, %c0_2] : memref<144x256xbf16, #tpu.memory_space<vmem>>, vector<144x256xbf16>
    %cst = arith.constant dense<0.000000e+00> : vector<128x256xf32>
    %2 = tpu.matmul %0, %1, %cst {dimension_numbers = #tpu.dot_dimension_numbers<[1], [0], [0], [1], [0, 0, 1, 1], [], []>} : vector<128x144xbf16>, vector<144x256xbf16>, vector<128x256xf32> -> vector<128x256xf32>
    %c0_3 = arith.constant 0 : index
    %c0_4 = arith.constant 0 : index
    %3 = vector.load %arg3[%c0_3, %c0_4] : memref<1x256xf32, #tpu.memory_space<vmem>>, vector<1x256xf32>
    %4 = vector.broadcast %3 : vector<1x256xf32> to vector<128x256xf32>
    %5 = arith.addf %2, %4 : vector<128x256xf32>
    %c0_5 = arith.constant 0 : index
    %c0_6 = arith.constant 0 : index
    %6 = vector.load %arg4[%c0_5, %c0_6] : memref<128x256xf32, #tpu.memory_space<vmem>>, vector<128x256xf32>
    tpu.vector_store %arg4[%c0_5, %c0_6], %5 {strides = array<i32>} : memref<128x256xf32, #tpu.memory_space<vmem>>, vector<128x256xf32>,
    %cst_7 = arith.constant dense<0.000000e+00> : vector<256xf32>
    %7 = vector.multi_reduction <add>, %5, %cst_7 [0] : vector<128x256xf32> to vector<256xf32>
    %8 = vector.shape_cast %7 : vector<256xf32> to vector<1x256xf32>
    %9 = vector.shape_cast %8 : vector<1x256xf32> to vector<1x1x256xf32>
    %c0_8 = arith.constant 0 : index
    %c0_9 = arith.constant 0 : index
    %c0_10 = arith.constant 0 : index
    %10 = vector.load %arg5[%c0_8, %c0_9, %c0_10] : memref<1x1x256xf32, #tpu.memory_space<vmem>>, vector<1x1x256xf32>
    tpu.vector_store %arg5[%c0_8, %c0_9, %c0_10], %9 {strides = array<i32>} : memref<1x1x256xf32, #tpu.memory_space<vmem>>, vector<1x1x256xf32>,
    %11 = arith.mulf %5, %5 : vector<128x256xf32>
    %cst_11 = arith.constant dense<0.000000e+00> : vector<256xf32>
    %12 = vector.multi_reduction <add>, %11, %cst_11 [0] : vector<128x256xf32> to vector<256xf32>
    %13 = vector.shape_cast %12 : vector<256xf32> to vector<1x256xf32>
    %14 = vector.shape_cast %13 : vector<1x256xf32> to vector<1x1x256xf32>
    %c0_12 = arith.constant 0 : index
    %c0_13 = arith.constant 0 : index
    %c0_14 = arith.constant 0 : index
    %15 = vector.load %arg6[%c0_12, %c0_13, %c0_14] : memref<1x1x256xf32, #tpu.memory_space<vmem>>, vector<1x1x256xf32>
    tpu.vector_store %arg6[%c0_12, %c0_13, %c0_14], %14 {strides = array<i32>} : memref<1x1x256xf32, #tpu.memory_space<vmem>>, vector<1x1x256xf32>,
    return
  }
  func.func @transform_0(%arg0: i32) -> (i32, i32) {
    %c0_i32 = arith.constant 0 : i32
    %c0_i32_0 = arith.constant 0 : i32
    return %arg0, %c0_i32 : i32, i32
  }
  func.func @transform_1(%arg0: i32) -> (i32, i32) {
    %c0_i32 = arith.constant 0 : i32
    %c0_i32_0 = arith.constant 0 : i32
    %c0_i32_1 = arith.constant 0 : i32
    return %c0_i32, %c0_i32_0 : i32, i32
  }
  func.func @transform_2(%arg0: i32) -> (i32, i32) {
    %c0_i32 = arith.constant 0 : i32
    %c0_i32_0 = arith.constant 0 : i32
    %c0_i32_1 = arith.constant 0 : i32
    return %c0_i32, %c0_i32_0 : i32, i32
  }
  func.func @transform_3(%arg0: i32) -> (i32, i32) {
    %c0_i32 = arith.constant 0 : i32
    %c0_i32_0 = arith.constant 0 : i32
    return %arg0, %c0_i32 : i32, i32
  }
  func.func @transform_4(%arg0: i32) -> (i32, i32, i32) {
    %c0_i32 = arith.constant 0 : i32
    %c0_i32_0 = arith.constant 0 : i32
    %c0_i32_1 = arith.constant 0 : i32
    return %arg0, %c0_i32, %c0_i32_0 : i32, i32, i32
  }
  func.func @transform_5(%arg0: i32) -> (i32, i32, i32) {
    %c0_i32 = arith.constant 0 : i32
    %c0_i32_0 = arith.constant 0 : i32
    %c0_i32_1 = arith.constant 0 : i32
    return %arg0, %c0_i32, %c0_i32_0 : i32, i32, i32
  }
}

module attributes {stable_mosaic.version = 11 : i64} {
  func.func @_affine_act_kernel(%arg0: i32, %arg1: memref<128x256xf32, #tpu.memory_space<vmem>>, %arg2: memref<1x256xf32, #tpu.memory_space<vmem>>, %arg3: memref<1x256xf32, #tpu.memory_space<vmem>>, %arg4: memref<128x256xf32, #tpu.memory_space<vmem>>) attributes {dimension_semantics = [#tpu.dimension_semantics<parallel>], iteration_bounds = array<i64: 1>, scalar_prefetch = 0 : i64, scratch_operands = 0 : i64, tpu.core_type = #tpu.core_type<tc>, window_params = [{transform_indices = @transform_0, window_bounds = array<i64: 128, 256>}, {pipeline_mode = #tpu.pipeline_mode<synchronous>, transform_indices = @transform_1, window_bounds = array<i64: 1, 256>}, {pipeline_mode = #tpu.pipeline_mode<synchronous>, transform_indices = @transform_2, window_bounds = array<i64: 1, 256>}, {transform_indices = @transform_3, window_bounds = array<i64: 128, 256>}]} {
    %c0 = arith.constant 0 : index
    %c0_0 = arith.constant 0 : index
    %0 = vector.load %arg1[%c0, %c0_0] : memref<128x256xf32, #tpu.memory_space<vmem>>, vector<128x256xf32>
    %c0_1 = arith.constant 0 : index
    %c0_2 = arith.constant 0 : index
    %1 = vector.load %arg2[%c0_1, %c0_2] : memref<1x256xf32, #tpu.memory_space<vmem>>, vector<1x256xf32>
    %2 = vector.broadcast %1 : vector<1x256xf32> to vector<128x256xf32>
    %3 = arith.mulf %0, %2 : vector<128x256xf32>
    %c0_3 = arith.constant 0 : index
    %c0_4 = arith.constant 0 : index
    %4 = vector.load %arg3[%c0_3, %c0_4] : memref<1x256xf32, #tpu.memory_space<vmem>>, vector<1x256xf32>
    %5 = vector.broadcast %4 : vector<1x256xf32> to vector<128x256xf32>
    %6 = arith.addf %3, %5 : vector<128x256xf32>
    %cst = arith.constant 0.000000e+00 : f32
    %7 = vector.broadcast %cst : f32 to vector<128x256xf32>
    %8 = arith.maximumf %6, %7 : vector<128x256xf32>
    %c0_5 = arith.constant 0 : index
    %c0_6 = arith.constant 0 : index
    %9 = vector.load %arg4[%c0_5, %c0_6] : memref<128x256xf32, #tpu.memory_space<vmem>>, vector<128x256xf32>
    tpu.vector_store %arg4[%c0_5, %c0_6], %8 {strides = array<i32>} : memref<128x256xf32, #tpu.memory_space<vmem>>, vector<128x256xf32>,
    return
  }
  func.func @transform_0(%arg0: i32) -> (i32, i32) {
    %c0_i32 = arith.constant 0 : i32
    %c0_i32_0 = arith.constant 0 : i32
    return %arg0, %c0_i32 : i32, i32
  }
  func.func @transform_1(%arg0: i32) -> (i32, i32) {
    %c0_i32 = arith.constant 0 : i32
    %c0_i32_0 = arith.constant 0 : i32
    %c0_i32_1 = arith.constant 0 : i32
    return %c0_i32, %c0_i32_0 : i32, i32
  }
  func.func @transform_2(%arg0: i32) -> (i32, i32) {
    %c0_i32 = arith.constant 0 : i32
    %c0_i32_0 = arith.constant 0 : i32
    %c0_i32_1 = arith.constant 0 : i32
    return %c0_i32, %c0_i32_0 : i32, i32
  }
  func.func @transform_3(%arg0: i32) -> (i32, i32) {
    %c0_i32 = arith.constant 0 : i32
    %c0_i32_0 = arith.constant 0 : i32
    return %arg0, %c0_i32 : i32, i32
  }
}

module attributes {stable_mosaic.version = 11 : i64} {
  func.func @_packed_conv_kernel(%arg0: i32, %arg1: memref<512x72xbf16, #tpu.memory_space<vmem>>, %arg2: memref<72x256xbf16, #tpu.memory_space<vmem>>, %arg3: memref<1x256xf32, #tpu.memory_space<vmem>>, %arg4: memref<512x256xf32, #tpu.memory_space<vmem>>) attributes {dimension_semantics = [#tpu.dimension_semantics<parallel>], iteration_bounds = array<i64: 1>, scalar_prefetch = 0 : i64, scratch_operands = 0 : i64, tpu.core_type = #tpu.core_type<tc>, window_params = [{transform_indices = @transform_0, window_bounds = array<i64: 512, 72>}, {pipeline_mode = #tpu.pipeline_mode<synchronous>, transform_indices = @transform_1, window_bounds = array<i64: 72, 256>}, {pipeline_mode = #tpu.pipeline_mode<synchronous>, transform_indices = @transform_2, window_bounds = array<i64: 1, 256>}, {transform_indices = @transform_3, window_bounds = array<i64: 512, 256>}]} {
    %c0 = arith.constant 0 : index
    %c0_0 = arith.constant 0 : index
    %0 = vector.load %arg1[%c0, %c0_0] : memref<512x72xbf16, #tpu.memory_space<vmem>>, vector<512x72xbf16>
    %c0_1 = arith.constant 0 : index
    %c0_2 = arith.constant 0 : index
    %1 = vector.load %arg2[%c0_1, %c0_2] : memref<72x256xbf16, #tpu.memory_space<vmem>>, vector<72x256xbf16>
    %cst = arith.constant dense<0.000000e+00> : vector<512x256xf32>
    %2 = tpu.matmul %0, %1, %cst {dimension_numbers = #tpu.dot_dimension_numbers<[1], [0], [0], [1], [0, 0, 1, 1], [], []>} : vector<512x72xbf16>, vector<72x256xbf16>, vector<512x256xf32> -> vector<512x256xf32>
    %c0_3 = arith.constant 0 : index
    %c0_4 = arith.constant 0 : index
    %3 = vector.load %arg3[%c0_3, %c0_4] : memref<1x256xf32, #tpu.memory_space<vmem>>, vector<1x256xf32>
    %4 = vector.broadcast %3 : vector<1x256xf32> to vector<512x256xf32>
    %5 = arith.addf %2, %4 : vector<512x256xf32>
    %cst_5 = arith.constant 0.000000e+00 : f32
    %6 = vector.broadcast %cst_5 : f32 to vector<512x256xf32>
    %7 = arith.maximumf %5, %6 : vector<512x256xf32>
    %c0_6 = arith.constant 0 : index
    %c0_7 = arith.constant 0 : index
    %8 = vector.load %arg4[%c0_6, %c0_7] : memref<512x256xf32, #tpu.memory_space<vmem>>, vector<512x256xf32>
    tpu.vector_store %arg4[%c0_6, %c0_7], %7 {strides = array<i32>} : memref<512x256xf32, #tpu.memory_space<vmem>>, vector<512x256xf32>,
    return
  }
  func.func @transform_0(%arg0: i32) -> (i32, i32) {
    %c0_i32 = arith.constant 0 : i32
    %c0_i32_0 = arith.constant 0 : i32
    return %arg0, %c0_i32 : i32, i32
  }
  func.func @transform_1(%arg0: i32) -> (i32, i32) {
    %c0_i32 = arith.constant 0 : i32
    %c0_i32_0 = arith.constant 0 : i32
    %c0_i32_1 = arith.constant 0 : i32
    return %c0_i32, %c0_i32_0 : i32, i32
  }
  func.func @transform_2(%arg0: i32) -> (i32, i32) {
    %c0_i32 = arith.constant 0 : i32
    %c0_i32_0 = arith.constant 0 : i32
    %c0_i32_1 = arith.constant 0 : i32
    return %c0_i32, %c0_i32_0 : i32, i32
  }
  func.func @transform_3(%arg0: i32) -> (i32, i32) {
    %c0_i32 = arith.constant 0 : i32
    %c0_i32_0 = arith.constant 0 : i32
    return %arg0, %c0_i32 : i32, i32
  }
}

module attributes {stable_mosaic.version = 11 : i64} {
  func.func @_packed_conv_kernel(%arg0: i32, %arg1: memref<512x200xbf16, #tpu.memory_space<vmem>>, %arg2: memref<200x256xbf16, #tpu.memory_space<vmem>>, %arg3: memref<1x256xf32, #tpu.memory_space<vmem>>, %arg4: memref<512x256xf32, #tpu.memory_space<vmem>>) attributes {dimension_semantics = [#tpu.dimension_semantics<parallel>], iteration_bounds = array<i64: 1>, scalar_prefetch = 0 : i64, scratch_operands = 0 : i64, tpu.core_type = #tpu.core_type<tc>, window_params = [{transform_indices = @transform_0, window_bounds = array<i64: 512, 200>}, {pipeline_mode = #tpu.pipeline_mode<synchronous>, transform_indices = @transform_1, window_bounds = array<i64: 200, 256>}, {pipeline_mode = #tpu.pipeline_mode<synchronous>, transform_indices = @transform_2, window_bounds = array<i64: 1, 256>}, {transform_indices = @transform_3, window_bounds = array<i64: 512, 256>}]} {
    %c0 = arith.constant 0 : index
    %c0_0 = arith.constant 0 : index
    %0 = vector.load %arg1[%c0, %c0_0] : memref<512x200xbf16, #tpu.memory_space<vmem>>, vector<512x200xbf16>
    %c0_1 = arith.constant 0 : index
    %c0_2 = arith.constant 0 : index
    %1 = vector.load %arg2[%c0_1, %c0_2] : memref<200x256xbf16, #tpu.memory_space<vmem>>, vector<200x256xbf16>
    %cst = arith.constant dense<0.000000e+00> : vector<512x256xf32>
    %2 = tpu.matmul %0, %1, %cst {dimension_numbers = #tpu.dot_dimension_numbers<[1], [0], [0], [1], [0, 0, 1, 1], [], []>} : vector<512x200xbf16>, vector<200x256xbf16>, vector<512x256xf32> -> vector<512x256xf32>
    %c0_3 = arith.constant 0 : index
    %c0_4 = arith.constant 0 : index
    %3 = vector.load %arg3[%c0_3, %c0_4] : memref<1x256xf32, #tpu.memory_space<vmem>>, vector<1x256xf32>
    %4 = vector.broadcast %3 : vector<1x256xf32> to vector<512x256xf32>
    %5 = arith.addf %2, %4 : vector<512x256xf32>
    %c0_5 = arith.constant 0 : index
    %c0_6 = arith.constant 0 : index
    %6 = vector.load %arg4[%c0_5, %c0_6] : memref<512x256xf32, #tpu.memory_space<vmem>>, vector<512x256xf32>
    tpu.vector_store %arg4[%c0_5, %c0_6], %5 {strides = array<i32>} : memref<512x256xf32, #tpu.memory_space<vmem>>, vector<512x256xf32>,
    return
  }
  func.func @transform_0(%arg0: i32) -> (i32, i32) {
    %c0_i32 = arith.constant 0 : i32
    %c0_i32_0 = arith.constant 0 : i32
    return %arg0, %c0_i32 : i32, i32
  }
  func.func @transform_1(%arg0: i32) -> (i32, i32) {
    %c0_i32 = arith.constant 0 : i32
    %c0_i32_0 = arith.constant 0 : i32
    %c0_i32_1 = arith.constant 0 : i32
    return %c0_i32, %c0_i32_0 : i32, i32
  }
  func.func @transform_2(%arg0: i32) -> (i32, i32) {
    %c0_i32 = arith.constant 0 : i32
    %c0_i32_0 = arith.constant 0 : i32
    %c0_i32_1 = arith.constant 0 : i32
    return %c0_i32, %c0_i32_0 : i32, i32
  }
  func.func @transform_3(%arg0: i32) -> (i32, i32) {
    %c0_i32 = arith.constant 0 : i32
    %c0_i32_0 = arith.constant 0 : i32
    return %arg0, %c0_i32 : i32, i32
  }
}

</mosaic_0001>

<bundles_post_ra>
// kernel: custom-call.1
= control target key start
LH: loop header
LB: loop body
LE: loop exit
PB: predicated region body
PF: predicated region fallthrough
CT: control target
= control target key end

     0   :  { %s217_s0 = inlined_call_operand.vmem [shape: c64[2,8,8,8], index: 0, kind: input, shape index: {}]   ;;  %s218_s1 = inlined_call_operand.vmem [shape: f32[2,8,8,8], index: 1, kind: output, shape index: {}]  }
   0x1   :  { %v80_v0 = vld [vmem:[%s217_s0 + $0x80] sm:$0xff]  ;;  %v81_v1 = vld [vmem:[%s217_s0 + $0x88] sm:$0xff]  ;;  %v83_v2 = vld [vmem:[%s217_s0 + $0x90] sm:$0xff] }
   0x2   :  { %4 = vst [vmem:[%s218_s1] sm:$0xff] %v80_v0  ;;  %82 = vst [vmem:[%s218_s1 + $0x8] sm:$0xff] %v81_v1  ;;  %v85_v3 = vld [vmem:[%s217_s0 + $0x98] sm:$0xff]  ;;  %v87_v4 = vld [vmem:[%s217_s0 + $0xa0] sm:$0xff] }
   0x3   :  { %84 = vst [vmem:[%s218_s1 + $0x10] sm:$0xff] %v83_v2  ;;  %v89_v5 = vld [vmem:[%s217_s0 + $0xa8] sm:$0xff]  ;;  %86 = vst [vmem:[%s218_s1 + $0x18] sm:$0xff] %v85_v3  ;;  %v91_v6 = vld [vmem:[%s217_s0 + $0xb0] sm:$0xff] }
   0x4   :  { %88 = vst [vmem:[%s218_s1 + $0x20] sm:$0xff] %v87_v4  ;;  %90 = vst [vmem:[%s218_s1 + $0x28] sm:$0xff] %v89_v5  ;;  %v93_v7 = vld [vmem:[%s217_s0 + $0xb8] sm:$0xff]  ;;  %v95_v8 = vld [vmem:[%s217_s0 + $0xc0] sm:$0xff] }
   0x5   :  { %92 = vst [vmem:[%s218_s1 + $0x30] sm:$0xff] %v91_v6  ;;  %94 = vst [vmem:[%s218_s1 + $0x38] sm:$0xff] %v93_v7  ;;  %v97_v9 = vld [vmem:[%s217_s0 + $0xc8] sm:$0xff]  ;;  %v99_v10 = vld [vmem:[%s217_s0 + $0xd0] sm:$0xff] }
   0x6   :  { %96 = vst [vmem:[%s218_s1 + $0x40] sm:$0xff] %v95_v8  ;;  %v101_v11 = vld [vmem:[%s217_s0 + $0xd8] sm:$0xff]  ;;  %98 = vst [vmem:[%s218_s1 + $0x48] sm:$0xff] %v97_v9  ;;  %v103_v12 = vld [vmem:[%s217_s0 + $0xe0] sm:$0xff] }
   0x7   :  { %100 = vst [vmem:[%s218_s1 + $0x50] sm:$0xff] %v99_v10  ;;  %102 = vst [vmem:[%s218_s1 + $0x58] sm:$0xff] %v101_v11  ;;  %v105_v13 = vld [vmem:[%s217_s0 + $0xe8] sm:$0xff]  ;;  %v107_v14 = vld [vmem:[%s217_s0 + $0xf0] sm:$0xff] }
   0x8   :  { %104 = vst [vmem:[%s218_s1 + $0x60] sm:$0xff] %v103_v12  ;;  %106 = vst [vmem:[%s218_s1 + $0x68] sm:$0xff] %v105_v13  ;;  %v109_v15 = vld [vmem:[%s217_s0 + $0xf8] sm:$0xff] }
   0x9   :  { %108 = vst [vmem:[%s218_s1 + $0x70] sm:$0xff] %v107_v14  ;;  %110 = vst [vmem:[%s218_s1 + $0x78] sm:$0xff] %v109_v15 }

// kernel: custom-call
= control target key start
LH: loop header
LB: loop body
LE: loop exit
PB: predicated region body
PF: predicated region fallthrough
CT: control target
= control target key end

     0   :  { %s200_s0 = inlined_call_operand.vmem [shape: c64[2,8,8,8], index: 0, kind: input, shape index: {}]   ;;  %s201_s1 = inlined_call_operand.vmem [shape: f32[2,8,8,8], index: 1, kind: output, shape index: {}]  }
   0x1   :  { %v2_v0 = vld [vmem:[%s200_s0] sm:$0xff]  ;;  %v64_v1 = vld [vmem:[%s200_s0 + $0x8] sm:$0xff]  ;;  %v66_v2 = vld [vmem:[%s200_s0 + $0x10] sm:$0xff] }
   0x2   :  { %3 = vst [vmem:[%s201_s1] sm:$0xff] %v2_v0  ;;  %65 = vst [vmem:[%s201_s1 + $0x8] sm:$0xff] %v64_v1  ;;  %v68_v3 = vld [vmem:[%s200_s0 + $0x18] sm:$0xff]  ;;  %v70_v4 = vld [vmem:[%s200_s0 + $0x20] sm:$0xff] }
   0x3   :  { %67 = vst [vmem:[%s201_s1 + $0x10] sm:$0xff] %v66_v2  ;;  %v72_v5 = vld [vmem:[%s200_s0 + $0x28] sm:$0xff]  ;;  %69 = vst [vmem:[%s201_s1 + $0x18] sm:$0xff] %v68_v3  ;;  %v74_v6 = vld [vmem:[%s200_s0 + $0x30] sm:$0xff] }
   0x4   :  { %71 = vst [vmem:[%s201_s1 + $0x20] sm:$0xff] %v70_v4  ;;  %73 = vst [vmem:[%s201_s1 + $0x28] sm:$0xff] %v72_v5  ;;  %v76_v7 = vld [vmem:[%s200_s0 + $0x38] sm:$0xff]  ;;  %v78_v8 = vld [vmem:[%s200_s0 + $0x40] sm:$0xff] }
   0x5   :  { %75 = vst [vmem:[%s201_s1 + $0x30] sm:$0xff] %v74_v6  ;;  %77 = vst [vmem:[%s201_s1 + $0x38] sm:$0xff] %v76_v7  ;;  %v80_v9 = vld [vmem:[%s200_s0 + $0x48] sm:$0xff]  ;;  %v82_v10 = vld [vmem:[%s200_s0 + $0x50] sm:$0xff] }
   0x6   :  { %79 = vst [vmem:[%s201_s1 + $0x40] sm:$0xff] %v78_v8  ;;  %v84_v11 = vld [vmem:[%s200_s0 + $0x58] sm:$0xff]  ;;  %81 = vst [vmem:[%s201_s1 + $0x48] sm:$0xff] %v80_v9  ;;  %v86_v12 = vld [vmem:[%s200_s0 + $0x60] sm:$0xff] }
   0x7   :  { %83 = vst [vmem:[%s201_s1 + $0x50] sm:$0xff] %v82_v10  ;;  %85 = vst [vmem:[%s201_s1 + $0x58] sm:$0xff] %v84_v11  ;;  %v88_v13 = vld [vmem:[%s200_s0 + $0x68] sm:$0xff]  ;;  %v90_v14 = vld [vmem:[%s200_s0 + $0x70] sm:$0xff] }
   0x8   :  { %87 = vst [vmem:[%s201_s1 + $0x60] sm:$0xff] %v86_v12  ;;  %89 = vst [vmem:[%s201_s1 + $0x68] sm:$0xff] %v88_v13  ;;  %v92_v15 = vld [vmem:[%s200_s0 + $0x78] sm:$0xff] }
   0x9   :  { %91 = vst [vmem:[%s201_s1 + $0x70] sm:$0xff] %v90_v14  ;;  %93 = vst [vmem:[%s201_s1 + $0x78] sm:$0xff] %v92_v15 }

// kernel: _lambda_.9
= control target key start
LH: loop header
LB: loop body
LE: loop exit
PB: predicated region body
PF: predicated region fallthrough
CT: control target
= control target key end

     0   :  { %v48_v0 = vlaneseq  ;;  %s492_s1 = inlined_call_operand.vmem [shape: f32[1,256], index: 1, kind: input, shape index: {}]   ;;  %s493_s2 = inlined_call_operand.vmem [shape: f32[1,256], index: 2, kind: input, shape index: {}]   ;;  %s494_s0 = inlined_call_operand.vmem [shape: f32[128,256], index: 0, kind: input, shape index: {}]   ;;  %s495_s3 = inlined_call_operand.vmem [shape: f32[128,256], index: 3, kind: output, shape index: {}]  }
   0x1   :  { %v46_v2 = vld [vmem:[%s492_s1] sm:$0x3]  ;;  %v15_v6 = vld [vmem:[%s494_s0 + $0x8] sm:$0xff]  ;;  %v16_v8 = vld [vmem:[%s494_s0 + $0x10] sm:$0xff] }
   0x2   :  { %v49_v1 = vshrl.u32 %v48_v0, 7  ;;  %v90_v3 = vld [vmem:[%s493_s2] sm:$0x3]  ;;  %v17_v9 = vld [vmem:[%s494_s0 + $0x18] sm:$0xff]  ;;  %v19_v15 = vld [vmem:[%s494_s0 + $0x28] sm:$0xff] }
   0x3   :  { %v14_v4 = vld [vmem:[%s494_s0] sm:$0xff]  ;;  %v20_v16 = vld [vmem:[%s494_s0 + $0x30] sm:$0xff]  ;;  %v21_v17 = vld [vmem:[%s494_s0 + $0x38] sm:$0xff] }
   0x4   :  { %v50_v5 = vsub.s32 0, %v49_v1  ;;  %v54_v7 = vsub.s32 1, %v49_v1  ;;  %v18_v10 = vld [vmem:[%s494_s0 + $0x20] sm:$0xff]  ;;  %v23_v31 = vld [vmem:[%s494_s0 + $0x48] sm:$0xff]  ;;  %v24_v32 = vld [vmem:[%s494_s0 + $0x50] sm:$0xff] }
   0x5   :  { %v22_v30 = vld [vmem:[%s494_s0 + $0x40] sm:$0xff]  ;;  %v25_v37 = vld [vmem:[%s494_s0 + $0x58] sm:$0xff]  ;;  %v27_v39 = vld [vmem:[%s494_s0 + $0x68] sm:$0xff] }
   0x6   :  { %v243_v11 = vrot.slane %v46_v2, %v50_v5  ;;  %v245_v12 = vrot.slane %v90_v3, %v50_v5  ;;  %v247_v13 = vrot.slane %v46_v2, %v54_v7  ;;  %v249_v14 = vrot.slane %v90_v3, %v54_v7  ;;  %v26_v38 = vld [vmem:[%s494_s0 + $0x60] sm:$0xff]  ;;  %v28_v44 = vld [vmem:[%s494_s0 + $0x70] sm:$0xff]  ;;  %v29_v45 = vld [vmem:[%s494_s0 + $0x78] sm:$0xff] }
   0x7   :  { %v30_v62 = vld [vmem:[%s494_s0 + $0x80] sm:$0xff]  ;;  %v31_v63 = vld [vmem:[%s494_s0 + $0x88] sm:$0xff]  ;;  %v32_v0 = vld [vmem:[%s494_s0 + $0x90] sm:$0xff] }
   0x8   :  { %v58_v18 = vmul.f32 %v243_v11, %v14_v4  ;;  %v59_v19 = vmul.f32 %v247_v13, %v15_v6  ;;  %v60_v20 = vmul.f32 %v243_v11, %v16_v8  ;;  %v61_v21 = vmul.f32 %v247_v13, %v17_v9  ;;  %v33_v5 = vld [vmem:[%s494_s0 + $0x98] sm:$0xff]  ;;  %v34_v6 = vld [vmem:[%s494_s0 + $0xa0] sm:$0xff]  ;;  %v35_v7 = vld [vmem:[%s494_s0 + $0xa8] sm:$0xff] }
   0x9   :  { %v62_v22 = vmul.f32 %v243_v11, %v18_v10  ;;  %v63_v23 = vmul.f32 %v247_v13, %v19_v15  ;;  %v64_v24 = vmul.f32 %v243_v11, %v20_v16  ;;  %v65_v25 = vmul.f32 %v247_v13, %v21_v17  ;;  %v36_v16 = vld [vmem:[%s494_s0 + $0xb0] sm:$0xff]  ;;  %v37_v17 = vld [vmem:[%s494_s0 + $0xb8] sm:$0xff] }
   0xa   :  { %v102_v26 = vadd.f32 %v245_v12, %v58_v18  ;;  %v103_v27 = vadd.f32 %v249_v14, %v59_v19  ;;  %v104_v28 = vadd.f32 %v245_v12, %v60_v20  ;;  %v105_v29 = vadd.f32 %v249_v14, %v61_v21 }
   0xb   :  { %v106_v33 = vadd.f32 %v245_v12, %v62_v22  ;;  %v107_v34 = vadd.f32 %v249_v14, %v63_v23  ;;  %v108_v35 = vadd.f32 %v245_v12, %v64_v24  ;;  %v109_v36 = vadd.f32 %v249_v14, %v65_v25 }
   0xc   :  { %v134_v40 = vmax.f32 %v102_v26, 0.0  ;;  %v135_v41 = vmax.f32 %v103_v27, 0.0  ;;  %v136_v42 = vmax.f32 %v104_v28, 0.0  ;;  %v137_v43 = vmax.f32 %v105_v29, 0.0 }
   0xd   :  { %v138_v46 = vmax.f32 %v106_v33, 0.0  ;;  %v139_v47 = vmax.f32 %v107_v34, 0.0  ;;  %v140_v48 = vmax.f32 %v108_v35, 0.0  ;;  %v141_v49 = vmax.f32 %v109_v36, 0.0  ;;  %v38_v34 = vld [vmem:[%s494_s0 + $0xc0] sm:$0xff]  ;;  %v39_v35 = vld [vmem:[%s494_s0 + $0xc8] sm:$0xff] }
   0xe   :  { %166 = vst [vmem:[%s495_s3] sm:$0xff] %v134_v40  ;;  %167 = vst [vmem:[%s495_s3 + $0x8] sm:$0xff] %v135_v41  ;;  %v66_v50 = vmul.f32 %v243_v11, %v22_v30  ;;  %v67_v51 = vmul.f32 %v247_v13, %v23_v31  ;;  %v68_v52 = vmul.f32 %v243_v11, %v24_v32  ;;  %v40_v36 = vld [vmem:[%s494_s0 + $0xd0] sm:$0xff]  ;;  %v41_v41 = vld [vmem:[%s494_s0 + $0xd8] sm:$0xff] }
   0xf   :  { %168 = vst [vmem:[%s495_s3 + $0x10] sm:$0xff] %v136_v42  ;;  %169 = vst [vmem:[%s495_s3 + $0x18] sm:$0xff] %v137_v43  ;;  %v69_v53 = vmul.f32 %v247_v13, %v25_v37  ;;  %v70_v54 = vmul.f32 %v243_v11, %v26_v38  ;;  %v71_v55 = vmul.f32 %v247_v13, %v27_v39  ;;  %v42_v42 = vld [vmem:[%s494_s0 + $0xe0] sm:$0xff]  ;;  %v43_v43 = vld [vmem:[%s494_s0 + $0xe8] sm:$0xff] }
  0x10   :  { %170 = vst [vmem:[%s495_s3 + $0x20] sm:$0xff] %v138_v46  ;;  %171 = vst [vmem:[%s495_s3 + $0x28] sm:$0xff] %v139_v47  ;;  %v72_v56 = vmul.f32 %v243_v11, %v28_v44  ;;  %v73_v57 = vmul.f32 %v247_v13, %v29_v45  ;;  %v110_v58 = vadd.f32 %v245_v12, %v66_v50 }
  0x11   :  { %172 = vst [vmem:[%s495_s3 + $0x30] sm:$0xff] %v140_v48  ;;  %173 = vst [vmem:[%s495_s3 + $0x38] sm:$0xff] %v141_v49  ;;  %v111_v59 = vadd.f32 %v249_v14, %v67_v51  ;;  %v112_v60 = vadd.f32 %v245_v12, %v68_v52  ;;  %v113_v61 = vadd.f32 %v249_v14, %v69_v53  ;;  %v44_v48 = vld [vmem:[%s494_s0 + $0xf0] sm:$0xff]  ;;  %v45_v49 = vld [vmem:[%s494_s0 + $0xf8] sm:$0xff] }
  0x12   :  { %v114_v1 = vadd.f32 %v245_v12, %v70_v54  ;;  %v115_v2 = vadd.f32 %v249_v14, %v71_v55  ;;  %v116_v3 = vadd.f32 %v245_v12, %v72_v56  ;;  %v117_v4 = vadd.f32 %v249_v14, %v73_v57 }
  0x13   :  { %v142_v8 = vmax.f32 %v110_v58, 0.0  ;;  %v143_v9 = vmax.f32 %v111_v59, 0.0  ;;  %v144_v10 = vmax.f32 %v112_v60, 0.0  ;;  %v145_v15 = vmax.f32 %v113_v61, 0.0 }
  0x14   :  { %v146_v18 = vmax.f32 %v114_v1, 0.0  ;;  %v147_v19 = vmax.f32 %v115_v2, 0.0  ;;  %v148_v20 = vmax.f32 %v116_v3, 0.0  ;;  %v149_v21 = vmax.f32 %v117_v4, 0.0 }
  0x15   :  { %174 = vst [vmem:[%s495_s3 + $0x40] sm:$0xff] %v142_v8  ;;  %175 = vst [vmem:[%s495_s3 + $0x48] sm:$0xff] %v143_v9  ;;  %v74_v22 = vmul.f32 %v243_v11, %v30_v62  ;;  %v75_v23 = vmul.f32 %v247_v13, %v31_v63  ;;  %v76_v24 = vmul.f32 %v243_v11, %v32_v0 }
  0x16   :  { %176 = vst [vmem:[%s495_s3 + $0x50] sm:$0xff] %v144_v10  ;;  %177 = vst [vmem:[%s495_s3 + $0x58] sm:$0xff] %v145_v15  ;;  %v77_v25 = vmul.f32 %v247_v13, %v33_v5  ;;  %v78_v26 = vmul.f32 %v243_v11, %v34_v6  ;;  %v79_v27 = vmul.f32 %v247_v13, %v35_v7 }
  0x17   :  { %178 = vst [vmem:[%s495_s3 + $0x60] sm:$0xff] %v146_v18  ;;  %179 = vst [vmem:[%s495_s3 + $0x68] sm:$0xff] %v147_v19  ;;  %v80_v28 = vmul.f32 %v243_v11, %v36_v16  ;;  %v81_v29 = vmul.f32 %v247_v13, %v37_v17  ;;  %v118_v30 = vadd.f32 %v245_v12, %v74_v22 }
  0x18   :  { %180 = vst [vmem:[%s495_s3 + $0x70] sm:$0xff] %v148_v20  ;;  %181 = vst [vmem:[%s495_s3 + $0x78] sm:$0xff] %v149_v21  ;;  %v119_v31 = vadd.f32 %v249_v14, %v75_v23  ;;  %v120_v32 = vadd.f32 %v245_v12, %v76_v24  ;;  %v121_v33 = vadd.f32 %v249_v14, %v77_v25 }
  0x19   :  { %v122_v37 = vadd.f32 %v245_v12, %v78_v26  ;;  %v123_v38 = vadd.f32 %v249_v14, %v79_v27  ;;  %v124_v39 = vadd.f32 %v245_v12, %v80_v28  ;;  %v125_v40 = vadd.f32 %v249_v14, %v81_v29 }
  0x1a   :  { %v150_v44 = vmax.f32 %v118_v30, 0.0  ;;  %v151_v45 = vmax.f32 %v119_v31, 0.0  ;;  %v152_v46 = vmax.f32 %v120_v32, 0.0  ;;  %v153_v47 = vmax.f32 %v121_v33, 0.0 }
  0x1b   :  { %v154_v50 = vmax.f32 %v122_v37, 0.0  ;;  %v155_v51 = vmax.f32 %v123_v38, 0.0  ;;  %v156_v52 = vmax.f32 %v124_v39, 0.0  ;;  %v157_v53 = vmax.f32 %v125_v40, 0.0 }
  0x1c   :  { %182 = vst [vmem:[%s495_s3 + $0x80] sm:$0xff] %v150_v44  ;;  %183 = vst [vmem:[%s495_s3 + $0x88] sm:$0xff] %v151_v45  ;;  %v82_v54 = vmul.f32 %v243_v11, %v38_v34  ;;  %v83_v55 = vmul.f32 %v247_v13, %v39_v35  ;;  %v84_v56 = vmul.f32 %v243_v11, %v40_v36 }
  0x1d   :  { %184 = vst [vmem:[%s495_s3 + $0x90] sm:$0xff] %v152_v46  ;;  %185 = vst [vmem:[%s495_s3 + $0x98] sm:$0xff] %v153_v47  ;;  %v85_v57 = vmul.f32 %v247_v13, %v41_v41  ;;  %v86_v58 = vmul.f32 %v243_v11, %v42_v42  ;;  %v87_v59 = vmul.f32 %v247_v13, %v43_v43 }
  0x1e   :  { %186 = vst [vmem:[%s495_s3 + $0xa0] sm:$0xff] %v154_v50  ;;  %187 = vst [vmem:[%s495_s3 + $0xa8] sm:$0xff] %v155_v51  ;;  %v88_v60 = vmul.f32 %v243_v11, %v44_v48  ;;  %v89_v61 = vmul.f32 %v247_v13, %v45_v49  ;;  %v126_v62 = vadd.f32 %v245_v12, %v82_v54 }
  0x1f   :  { %188 = vst [vmem:[%s495_s3 + $0xb0] sm:$0xff] %v156_v52  ;;  %189 = vst [vmem:[%s495_s3 + $0xb8] sm:$0xff] %v157_v53  ;;  %v127_v63 = vadd.f32 %v249_v14, %v83_v55  ;;  %v128_v0 = vadd.f32 %v245_v12, %v84_v56  ;;  %v129_v1 = vadd.f32 %v249_v14, %v85_v57 }
  0x20   :  { %v130_v2 = vadd.f32 %v245_v12, %v86_v58  ;;  %v131_v3 = vadd.f32 %v249_v14, %v87_v59  ;;  %v132_v4 = vadd.f32 %v245_v12, %v88_v60  ;;  %v133_v5 = vadd.f32 %v249_v14, %v89_v61 }
  0x21   :  { %v158_v6 = vmax.f32 %v126_v62, 0.0  ;;  %v159_v11 = vmax.f32 %v127_v63, 0.0  ;;  %v160_v7 = vmax.f32 %v128_v0, 0.0  ;;  %v161_v13 = vmax.f32 %v129_v1, 0.0 }
  0x22   :  { %v162_v8 = vmax.f32 %v130_v2, 0.0  ;;  %v163_v9 = vmax.f32 %v131_v3, 0.0  ;;  %v164_v10 = vmax.f32 %v132_v4, 0.0  ;;  %v165_v15 = vmax.f32 %v133_v5, 0.0 }
  0x23   :  { %190 = vst [vmem:[%s495_s3 + $0xc0] sm:$0xff] %v158_v6  ;;  %191 = vst [vmem:[%s495_s3 + $0xc8] sm:$0xff] %v159_v11 }
  0x24   :  { %192 = vst [vmem:[%s495_s3 + $0xd0] sm:$0xff] %v160_v7  ;;  %193 = vst [vmem:[%s495_s3 + $0xd8] sm:$0xff] %v161_v13 }
  0x25   :  { %194 = vst [vmem:[%s495_s3 + $0xe0] sm:$0xff] %v162_v8  ;;  %195 = vst [vmem:[%s495_s3 + $0xe8] sm:$0xff] %v163_v9 }
  0x26   :  { %196 = vst [vmem:[%s495_s3 + $0xf0] sm:$0xff] %v164_v10  ;;  %197 = vst [vmem:[%s495_s3 + $0xf8] sm:$0xff] %v165_v15 }

// kernel: _lambda_.8
= control target key start
LH: loop header
LB: loop body
LE: loop exit
PB: predicated region body
PF: predicated region fallthrough
CT: control target
= control target key end

     0   :  { %vm226_vm0 = vcmask 130048   ;;  %v54_v34 = vlaneseq  ;;  %s1051_s1 = inlined_call_operand.vmem [shape: bf16[144,256], index: 1, kind: input, shape index: {}]   ;;  %s1052_s0 = inlined_call_operand.vmem [shape: bf16[128,144], index: 0, kind: input, shape index: {}]   ;;  %s1053_s2 = inlined_call_operand.vmem [shape: f32[1,256], index: 2, kind: input, shape index: {}]   ;;  %s1054_s3 = inlined_call_operand.vmem [shape: f32[128,256], index: 3, kind: output, shape index: {0}]   ;;  %s1055_s4 = inlined_call_operand.vmem [shape: f32[1,1,256], index: 4, kind: output, shape index: {1}]   ;;  %s1056_s5 = inlined_call_operand.vmem [shape: f32[1,1,256], index: 5, kind: output, shape index: {2}]  }
   0x1   :  { %v627_v0 = vld [vmem:[%s1051_s1 + $0x74] ss:$8 sps:$4 sm:$0xff]   ;;  %v629_v1 = vld [vmem:[%s1051_s1 + $0x70] ss:$8 sps:$4 sm:$0xff]   ;;  %v630_v2 = vld [vmem:[%s1051_s1 + $0x64] ss:$8 sps:$4 sm:$0xff]  }
   0x2   :  { %251 = vmatprep.subr.bf16.mxu0 %v627_v0  ;;  %608 = vmatprep.subr.bf16.mxu1 %v627_v0  ;;  %v632_v3 = vld [vmem:[%s1051_s1 + $0x60] ss:$8 sps:$4 sm:$0xff]   ;;  %v633_v4 = vld [vmem:[%s1051_s1 + $0x54] ss:$8 sps:$4 sm:$0xff]   ;;  %v635_v5 = vld [vmem:[%s1051_s1 + $0x50] ss:$8 sps:$4 sm:$0xff]  }
   0x3   :  { %252 = vmatpush1.bf16.msra.mxu0 %v629_v1  ;;  %617 = vmatpush1.bf16.msra.mxu1 %v629_v1  ;;  %v636_v6 = vld [vmem:[%s1051_s1 + $0x44] ss:$8 sps:$4 sm:$0xff]   ;;  %v638_v7 = vld [vmem:[%s1051_s1 + $0x40] ss:$8 sps:$4 sm:$0xff]   ;;  %v639_v8 = vld [vmem:[%s1051_s1 + $0x34] ss:$8 sps:$4 sm:$0xff]  }
   0x4   :  { %253 = vmatprep.subr.bf16.mxu0 %v630_v2  ;;  %609 = vmatprep.subr.bf16.mxu1 %v630_v2  ;;  %v656_v9 = vld [vmem:[%s1052_s0 + $0x4] ss:$8 sps:$4 sm:$0xff]   ;;  %v641_v10 = vld [vmem:[%s1051_s1 + $0x30] ss:$8 sps:$4 sm:$0xff]   ;;  %v644_v13 = vld [vmem:[%s1051_s1 + $0x20] ss:$8 sps:$4 sm:$0xff]  }
   0x5   :  { %v662_v11 = vld [vmem:[%s1052_s0 + $0x44] ss:$8 sps:$4 sm:$0xff]   ;;  %600 = vmatprep.mubr.msk.bf16.mxu0 %vm226_vm0, %v656_v9  ;;  %v645_v14 = vld [vmem:[%s1051_s1 + $0x14] ss:$8 sps:$4 sm:$0xff]   ;;  %v647_v15 = vld [vmem:[%s1051_s1 + $0x10] ss:$8 sps:$4 sm:$0xff]  }
   0x6   :  { %v642_v12 = vld [vmem:[%s1051_s1 + $0x24] ss:$8 sps:$4 sm:$0xff]   ;;  %604 = vmatprep.mubr.msk.bf16.mxu1 %vm226_vm0, %v662_v11  ;;  %v650_v17 = vld [vmem:[%s1051_s1] ss:$8 sps:$4 sm:$0xff]   ;;  %v657_v22 = vld [vmem:[%s1052_s0 + $0x14] ss:$8 sps:$4 sm:$0xff]  }
   0x7   :  { %254 = vmatpush1.bf16.msra.mxu0 %v632_v3  ;;  %618 = vmatpush1.bf16.msra.mxu1 %v632_v3  ;;  %v648_v16 = vld [vmem:[%s1051_s1 + $0x4] ss:$8 sps:$4 sm:$0xff]   ;;  %v653_v19 = vld [vmem:[%s1051_s1 + $0x80] ss:$8 sps:$4 sm:$0xff]   ;;  %v666_v23 = vld [vmem:[%s1052_s0 + $0x54] ss:$8 sps:$4 sm:$0xff]  }
   0x8   :  { %255 = vmatprep.subr.bf16.mxu0 %v633_v4  ;;  %610 = vmatprep.subr.bf16.mxu1 %v633_v4  ;;  %v651_v18 = vld [vmem:[%s1051_s1 + $0x84] ss:$8 sps:$4 sm:$0xff]   ;;  %v654_v20 = vld [vmem:[%s1052_s0] ss:$8 sps:$4 sm:$0xff]   ;;  %v659_v24 = vld [vmem:[%s1052_s0 + $0x10] ss:$8 sps:$4 sm:$0xff]  }
   0x9   :  { %v660_v21 = vld [vmem:[%s1052_s0 + $0x40] ss:$8 sps:$4 sm:$0xff]   ;;  %v668_v25 = vld [vmem:[%s1052_s0 + $0x50] ss:$8 sps:$4 sm:$0xff]   ;;  %v663_v26 = vld [vmem:[%s1052_s0 + $0x24] ss:$8 sps:$4 sm:$0xff]  }
   0xa   :  { %v672_v27 = vld [vmem:[%s1052_s0 + $0x64] ss:$8 sps:$4 sm:$0xff]   ;;  %v665_v28 = vld [vmem:[%s1052_s0 + $0x20] ss:$8 sps:$4 sm:$0xff]   ;;  %v669_v30 = vld [vmem:[%s1052_s0 + $0x34] ss:$8 sps:$4 sm:$0xff]  }
   0xb   :  { %256 = vmatpush1.bf16.msra.mxu0 %v635_v5  ;;  %619 = vmatpush1.bf16.msra.mxu1 %v635_v5  ;;  %v674_v29 = vld [vmem:[%s1052_s0 + $0x60] ss:$8 sps:$4 sm:$0xff]   ;;  %v675_v31 = vld [vmem:[%s1052_s0 + $0x74] ss:$8 sps:$4 sm:$0xff]   ;;  %v671_v32 = vld [vmem:[%s1052_s0 + $0x30] ss:$8 sps:$4 sm:$0xff]  }
   0xc   :  { %257 = vmatprep.subr.bf16.mxu0 %v636_v6  ;;  %611 = vmatprep.subr.bf16.mxu1 %v636_v6  ;;  %v677_v33 = vld [vmem:[%s1052_s0 + $0x70] ss:$8 sps:$4 sm:$0xff]   ;;  %v820_v35 = vshrl.u32 %v54_v34, 7  ;;  %v52_v37 = vld [vmem:[%s1053_s2] sm:$0x3]  ;;  %vm458_vm1 = vcmp.lt.s32.totalorder %v54_v34, 256 }
   0xe   :  { %v56_v36 = vsub.s32 0, %v820_v35  ;;  %v60_v38 = vsub.s32 1, %v820_v35 }
   0xf   :  { %258 = vmatpush1.bf16.msra.mxu0 %v638_v7  ;;  %620 = vmatpush1.bf16.msra.mxu1 %v638_v7 }
  0x10   :  { %259 = vmatprep.subr.bf16.mxu0 %v639_v8  ;;  %612 = vmatprep.subr.bf16.mxu1 %v639_v8  ;;  %v827_v39 = vrot.slane %v52_v37, %v56_v36  ;;  %v829_v40 = vrot.slane %v52_v37, %v60_v38 }
  0x13   :  { %260 = vmatpush1.bf16.msra.mxu0 %v641_v10  ;;  %621 = vmatpush1.bf16.msra.mxu1 %v641_v10 }
  0x14   :  { %261 = vmatprep.subr.bf16.mxu0 %v642_v12  ;;  %613 = vmatprep.subr.bf16.mxu1 %v642_v12 }
  0x17   :  { %262 = vmatpush1.bf16.msra.mxu0 %v644_v13  ;;  %622 = vmatpush1.bf16.msra.mxu1 %v644_v13 }
  0x18   :  { %263 = vmatprep.subr.bf16.mxu0 %v645_v14  ;;  %614 = vmatprep.subr.bf16.mxu1 %v645_v14 }
  0x1b   :  { %264 = vmatpush1.bf16.msra.mxu0 %v647_v15  ;;  %623 = vmatpush1.bf16.msra.mxu1 %v647_v15 }
  0x1c   :  { %265 = vmatprep.subr.bf16.mxu0 %v648_v16  ;;  %615 = vmatprep.subr.bf16.mxu1 %v648_v16 }
  0x1f   :  { %266 = vmatpush1.bf16.msra.mxu0 %v650_v17  ;;  %624 = vmatpush1.bf16.msra.mxu1 %v650_v17 }
  0x20   :  { %281 = vmatprep.subr.bf16.mxu0 %v651_v18  ;;  %616 = vmatprep.subr.bf16.mxu1 %v651_v18 }
  0x23   :  { %282 = vmatpush2.bf16.msra.mxu0 %v653_v19  ;;  %625 = vmatpush2.bf16.msra.mxu1 %v653_v19 }
  0x26   :  { %284 = vmatmul.mubr.bf16.vlgmr.msra.gmra.mxu0 %v654_v20  ;;  %324 = vmatmul.mubr.bf16.vlgmr.msra.gmra.mxu1 %v660_v21 }
  0x27   :  { %601 = vmatprep.mubr.msk.bf16.mxu0 %vm226_vm0, %v657_v22  ;;  %605 = vmatprep.mubr.msk.bf16.mxu1 %vm226_vm0, %v666_v23 }
  0x2e   :  { %294 = vmatmul.mubr.bf16.gmra.mxu0 %v659_v24  ;;  %334 = vmatmul.mubr.bf16.gmra.mxu1 %v668_v25 }
  0x2f   :  { %602 = vmatprep.mubr.msk.bf16.mxu0 %vm226_vm0, %v663_v26  ;;  %606 = vmatprep.mubr.msk.bf16.mxu1 %vm226_vm0, %v672_v27 }
  0x36   :  { %304 = vmatmul.mubr.bf16.gmra.mxu0 %v665_v28  ;;  %344 = vmatmul.mubr.bf16.gmra.mxu1 %v674_v29 }
  0x37   :  { %603 = vmatprep.mubr.msk.bf16.mxu0 %vm226_vm0, %v669_v30  ;;  %607 = vmatprep.mubr.msk.bf16.mxu1 %vm226_vm0, %v675_v31 }
  0x3e   :  { %314 = vmatmul.mubr.bf16.gmra.mxu0 %v671_v32  ;;  %354 = vmatmul.mubr.bf16.gmra.mxu1 %v677_v33 }
  0xe6   :  { %v285_v41 = vpop.f32.mrf.mxu0  ;;  %v325_v42 = vpop.f32.mrf.mxu1 }
  0xe7   :  { %v286_v43 = vadd.f32 %v285_v41, %v827_v39  ;;  %v833_v44 = vadd.f32 %v325_v42, %v827_v39 }
  0xe8   :  { %v287_v45 = vpop.f32.mrf.mxu0  ;;  %v327_v46 = vpop.f32.mrf.mxu1 }
  0xe9   :  { %364 = vst [vmem:[%s1054_s3] sm:$0xff] %v286_v43  ;;  %v288_v47 = vadd.f32 %v287_v45, %v829_v40  ;;  %380 = vst [vmem:[%s1054_s3 + $0x80] sm:$0xff] %v833_v44  ;;  %v844_v48 = vadd.f32 %v327_v46, %v829_v40  ;;  %v461_v14 = vmul.f32 %v286_v43, %v286_v43 }
  0xea   :  { %v289_v49 = vpop.f32.mrf.mxu0  ;;  %v329_v50 = vpop.f32.mrf.mxu1 }
  0xeb   :  { %365 = vst [vmem:[%s1054_s3 + $0x8] sm:$0xff] %v288_v47  ;;  %v290_v51 = vadd.f32 %v289_v49, %v827_v39  ;;  %381 = vst [vmem:[%s1054_s3 + $0x88] sm:$0xff] %v844_v48  ;;  %v855_v52 = vadd.f32 %v329_v50, %v827_v39  ;;  %v462_v19 = vmul.f32 %v288_v47, %v288_v47 }
  0xec   :  { %v291_v53 = vpop.f32.mrf.mxu0  ;;  %v331_v54 = vpop.f32.mrf.mxu1 }
  0xed   :  { %366 = vst [vmem:[%s1054_s3 + $0x10] sm:$0xff] %v290_v51  ;;  %v292_v55 = vadd.f32 %v291_v53, %v829_v40  ;;  %382 = vst [vmem:[%s1054_s3 + $0x90] sm:$0xff] %v855_v52  ;;  %v866_v57 = vadd.f32 %v331_v54, %v829_v40  ;;  %v463_v8 = vmul.f32 %v290_v51, %v290_v51 }
  0xee   :  { %v295_v56 = vpop.f32.mrf.mxu0  ;;  %v335_v58 = vpop.f32.mrf.mxu1  ;;  %v396_v20 = vadd.f32 %v290_v51, %v286_v43 }
  0xef   :  { %367 = vst [vmem:[%s1054_s3 + $0x18] sm:$0xff] %v292_v55  ;;  %v296_v59 = vadd.f32 %v295_v56, %v827_v39  ;;  %383 = vst [vmem:[%s1054_s3 + $0x98] sm:$0xff] %v866_v57  ;;  %v877_v61 = vadd.f32 %v335_v58, %v827_v39  ;;  %v464_v12 = vmul.f32 %v292_v55, %v292_v55 }
  0xf0   :  { %v297_v60 = vpop.f32.mrf.mxu0  ;;  %v337_v62 = vpop.f32.mrf.mxu1  ;;  %v493_v23 = vadd.f32 %v463_v8, %v461_v14  ;;  %v417_v28 = vadd.f32 %v292_v55, %v288_v47 }
  0xf1   :  { %368 = vst [vmem:[%s1054_s3 + $0x20] sm:$0xff] %v296_v59  ;;  %v298_v63 = vadd.f32 %v297_v60, %v829_v40  ;;  %384 = vst [vmem:[%s1054_s3 + $0xa0] sm:$0xff] %v877_v61  ;;  %v888_v1 = vadd.f32 %v337_v62, %v829_v40  ;;  %v465_v15 = vmul.f32 %v296_v59, %v296_v59 }
  0xf2   :  { %v299_v0 = vpop.f32.mrf.mxu0  ;;  %v339_v2 = vpop.f32.mrf.mxu1  ;;  %v514_v29 = vadd.f32 %v464_v12, %v462_v19  ;;  %v397_v30 = vadd.f32 %v396_v20, %v296_v59 }
  0xf3   :  { %369 = vst [vmem:[%s1054_s3 + $0x28] sm:$0xff] %v298_v63  ;;  %v300_v3 = vadd.f32 %v299_v0, %v827_v39  ;;  %385 = vst [vmem:[%s1054_s3 + $0xa8] sm:$0xff] %v888_v1  ;;  %v899_v5 = vadd.f32 %v339_v2, %v827_v39  ;;  %v466_v21 = vmul.f32 %v298_v63, %v298_v63 }
  0xf4   :  { %v301_v4 = vpop.f32.mrf.mxu0  ;;  %v341_v6 = vpop.f32.mrf.mxu1  ;;  %v494_v32 = vadd.f32 %v493_v23, %v465_v15  ;;  %v418_v42 = vadd.f32 %v417_v28, %v298_v63 }
  0xf5   :  { %370 = vst [vmem:[%s1054_s3 + $0x30] sm:$0xff] %v300_v3  ;;  %v302_v7 = vadd.f32 %v301_v4, %v829_v40  ;;  %386 = vst [vmem:[%s1054_s3 + $0xb0] sm:$0xff] %v899_v5  ;;  %v910_v10 = vadd.f32 %v341_v6, %v829_v40  ;;  %v467_v24 = vmul.f32 %v300_v3, %v300_v3 }
  0xf6   :  { %v305_v9 = vpop.f32.mrf.mxu0  ;;  %v345_v11 = vpop.f32.mrf.mxu1  ;;  %v515_v43 = vadd.f32 %v514_v29, %v466_v21  ;;  %v398_v45 = vadd.f32 %v397_v30, %v300_v3  ;;  %v477_v29 = vmul.f32 %v833_v44, %v833_v44 }
  0xf7   :  { %371 = vst [vmem:[%s1054_s3 + $0x38] sm:$0xff] %v302_v7  ;;  %v306_v13 = vadd.f32 %v305_v9, %v827_v39  ;;  %387 = vst [vmem:[%s1054_s3 + $0xb8] sm:$0xff] %v910_v10  ;;  %v921_v17 = vadd.f32 %v345_v11, %v827_v39  ;;  %v468_v33 = vmul.f32 %v302_v7, %v302_v7 }
  0xf8   :  { %v307_v16 = vpop.f32.mrf.mxu0  ;;  %v347_v18 = vpop.f32.mrf.mxu1  ;;  %v495_v47 = vadd.f32 %v494_v32, %v467_v24  ;;  %v419_v55 = vadd.f32 %v418_v42, %v302_v7 }
  0xf9   :  { %372 = vst [vmem:[%s1054_s3 + $0x40] sm:$0xff] %v306_v13  ;;  %v308_v22 = vadd.f32 %v307_v16, %v829_v40  ;;  %388 = vst [vmem:[%s1054_s3 + $0xc0] sm:$0xff] %v921_v17  ;;  %v932_v26 = vadd.f32 %v347_v18, %v829_v40  ;;  %v469_v36 = vmul.f32 %v306_v13, %v306_v13 }
  0xfa   :  { %v309_v25 = vpop.f32.mrf.mxu0  ;;  %v349_v27 = vpop.f32.mrf.mxu1  ;;  %v399_v56 = vadd.f32 %v398_v45, %v306_v13  ;;  %v516_v59 = vadd.f32 %v515_v43, %v468_v33  ;;  %v480_v45 = vmul.f32 %v866_v57, %v866_v57 }
  0xfb   :  { %373 = vst [vmem:[%s1054_s3 + $0x48] sm:$0xff] %v308_v22  ;;  %v310_v31 = vadd.f32 %v309_v25, %v827_v39  ;;  %389 = vst [vmem:[%s1054_s3 + $0xc8] sm:$0xff] %v932_v26  ;;  %v943_v38 = vadd.f32 %v349_v27, %v827_v39  ;;  %v470_v49 = vmul.f32 %v308_v22, %v308_v22 }
  0xfc   :  { %v311_v37 = vpop.f32.mrf.mxu0  ;;  %v351_v41 = vpop.f32.mrf.mxu1  ;;  %v496_v60 = vadd.f32 %v495_v47, %v469_v36  ;;  %v420_v3 = vadd.f32 %v419_v55, %v308_v22 }
  0xfd   :  { %374 = vst [vmem:[%s1054_s3 + $0x50] sm:$0xff] %v310_v31  ;;  %v312_v46 = vadd.f32 %v311_v37, %v829_v40  ;;  %v471_v50 = vmul.f32 %v310_v31, %v310_v31  ;;  %390 = vst [vmem:[%s1054_s3 + $0xd0] sm:$0xff] %v943_v38  ;;  %v954_v53 = vadd.f32 %v351_v41, %v829_v40 }
  0xfe   :  { %v315_v51 = vpop.f32.mrf.mxu0  ;;  %v355_v54 = vpop.f32.mrf.mxu1  ;;  %v400_v4 = vadd.f32 %v399_v56, %v310_v31  ;;  %v517_v8 = vadd.f32 %v516_v59, %v470_v49  ;;  %v478_v37 = vmul.f32 %v844_v48, %v844_v48  ;;  %v479_v41 = vmul.f32 %v855_v52, %v855_v52 }
  0xff   :  { %375 = vst [vmem:[%s1054_s3 + $0x58] sm:$0xff] %v312_v46  ;;  %v316_v58 = vadd.f32 %v315_v51, %v827_v39  ;;  %v472_v62 = vmul.f32 %v312_v46, %v312_v46  ;;  %391 = vst [vmem:[%s1054_s3 + $0xd8] sm:$0xff] %v954_v53  ;;  %v965_v0 = vadd.f32 %v355_v54, %v827_v39 }
 0x100   :  { %v317_v63 = vpop.f32.mrf.mxu0  ;;  %v357_v2 = vpop.f32.mrf.mxu1  ;;  %v497_v9 = vadd.f32 %v496_v60, %v471_v50  ;;  %v421_v14 = vadd.f32 %v420_v3, %v312_v46  ;;  %v481_v46 = vmul.f32 %v877_v61, %v877_v61  ;;  %v482_v54 = vmul.f32 %v888_v1, %v888_v1 }
 0x101   :  { %376 = vst [vmem:[%s1054_s3 + $0x60] sm:$0xff] %v316_v58  ;;  %v473_v6 = vmul.f32 %v316_v58, %v316_v58  ;;  %v318_v7 = vadd.f32 %v317_v63, %v829_v40  ;;  %392 = vst [vmem:[%s1054_s3 + $0xe0] sm:$0xff] %v965_v0  ;;  %v976_v12 = vadd.f32 %v357_v2, %v829_v40 }
 0x102   :  { %v319_v11 = vpop.f32.mrf.mxu0  ;;  %v359_v13 = vpop.f32.mrf.mxu1  ;;  %v401_v15 = vadd.f32 %v400_v4, %v316_v58  ;;  %v518_v19 = vadd.f32 %v517_v8, %v472_v62  ;;  %v484_v59 = vmul.f32 %v910_v10, %v910_v10  ;;  %v486_v2 = vmul.f32 %v932_v26, %v932_v26 }
 0x103   :  { %377 = vst [vmem:[%s1054_s3 + $0x68] sm:$0xff] %v318_v7  ;;  %v474_v16 = vmul.f32 %v318_v7, %v318_v7  ;;  %v320_v18 = vadd.f32 %v319_v11, %v827_v39  ;;  %v498_v20 = vadd.f32 %v497_v9, %v473_v6  ;;  %393 = vst [vmem:[%s1054_s3 + $0xe8] sm:$0xff] %v976_v12 }
 0x104   :  { %v321_v21 = vpop.f32.mrf.mxu0  ;;  %v360_v22 = vadd.f32 %v359_v13, %v827_v39  ;;  %v361_v23 = vpop.f32.mrf.mxu1  ;;  %v422_v24 = vadd.f32 %v421_v14, %v318_v7  ;;  %v488_v7 = vmul.f32 %v954_v53, %v954_v53  ;;  %v490_v13 = vmul.f32 %v976_v12, %v976_v12 }
 0x105   :  { %378 = vst [vmem:[%s1054_s3 + $0x70] sm:$0xff] %v320_v18  ;;  %v402_v25 = vadd.f32 %v401_v15, %v320_v18  ;;  %v475_v27 = vmul.f32 %v320_v18, %v320_v18  ;;  %v322_v28 = vadd.f32 %v321_v21, %v829_v40  ;;  %v519_v30 = vadd.f32 %v518_v19, %v474_v16 }
 0x106   :  { %394 = vst [vmem:[%s1054_s3 + $0xf0] sm:$0xff] %v360_v22  ;;  %v362_v39 = vadd.f32 %v361_v23, %v829_v40 }
 0x107   :  { %v403_v31 = vadd.f32 %v402_v25, %v833_v44  ;;  %v499_v32 = vadd.f32 %v498_v20, %v475_v27  ;;  %379 = vst [vmem:[%s1054_s3 + $0x78] sm:$0xff] %v322_v28  ;;  %v423_v33 = vadd.f32 %v422_v24, %v322_v28  ;;  %v476_v36 = vmul.f32 %v322_v28, %v322_v28 }
 0x108   :  { %395 = vst [vmem:[%s1054_s3 + $0xf8] sm:$0xff] %v362_v39  ;;  %v492_v18 = vmul.f32 %v362_v39, %v362_v39  ;;  %v678_v28 = vmov 1966171168  }
 0x109   :  { %v404_v40 = vadd.f32 %v403_v31, %v855_v52  ;;  %v500_v44 = vadd.f32 %v499_v32, %v477_v29  ;;  %v424_v42 = vadd.f32 %v423_v33, %v844_v48  ;;  %v520_v43 = vadd.f32 %v519_v30, %v476_v36 }
 0x10a   :  { %v483_v52 = vmul.f32 %v899_v5, %v899_v5 }
 0x10b   :  { %v501_v47 = vadd.f32 %v500_v44, %v479_v41  ;;  %v425_v49 = vadd.f32 %v424_v42, %v866_v57  ;;  %v521_v50 = vadd.f32 %v520_v43, %v478_v37  ;;  %v405_v51 = vadd.f32 %v404_v40, %v877_v61 }
 0x10c   :  { %v485_v57 = vmul.f32 %v921_v17, %v921_v17 }
 0x10d   :  { %v522_v48 = vadd.f32 %v521_v50, %v480_v45  ;;  %v406_v55 = vadd.f32 %v405_v51, %v899_v5  ;;  %v502_v56 = vadd.f32 %v501_v47, %v481_v46  ;;  %v426_v58 = vadd.f32 %v425_v49, %v888_v1 }
 0x10e   :  { %v487_v5 = vmul.f32 %v943_v38, %v943_v38 }
 0x10f   :  { %v407_v61 = vadd.f32 %v406_v55, %v921_v17  ;;  %v503_v60 = vadd.f32 %v502_v56, %v483_v52  ;;  %v427_v62 = vadd.f32 %v426_v58, %v910_v10  ;;  %v523_v63 = vadd.f32 %v522_v48, %v482_v54 }
 0x110   :  { %v489_v17 = vmul.f32 %v965_v0, %v965_v0 }
 0x111   :  { %v408_v1 = vadd.f32 %v407_v61, %v943_v38  ;;  %v504_v3 = vadd.f32 %v503_v60, %v485_v57  ;;  %v428_v4 = vadd.f32 %v427_v62, %v932_v26  ;;  %v524_v6 = vadd.f32 %v523_v63, %v484_v59 }
 0x112   :  { %v491_v38 = vmul.f32 %v360_v22, %v360_v22 }
 0x113   :  { %v505_v10 = vadd.f32 %v504_v3, %v487_v5  ;;  %v429_v8 = vadd.f32 %v428_v4, %v954_v53  ;;  %v525_v9 = vadd.f32 %v524_v6, %v486_v2  ;;  %v409_v11 = vadd.f32 %v408_v1, %v965_v0 }
 0x114   :  { %v442_v0 = vunpack.c.l.s4 %v678_v28 }
 0x115   :  { %v526_v14 = vadd.f32 %v525_v9, %v488_v7  ;;  %v506_v15 = vadd.f32 %v505_v10, %v489_v17  ;;  %v430_v26 = vadd.f32 %v429_v8, %v976_v12  ;;  %v410_v16 = vadd.f32 %v409_v11, %v360_v22 }
 0x116   :  { %v443_v22 = vunpack.c.0.s8 %v442_v0 }
 0x117   :  { %v527_v19 = vadd.f32 %v526_v14, %v490_v13  ;;  %v411_v20 = vrot.slane %v410_v16, 4  ;;  %v507_v21 = vadd.f32 %v506_v15, %v491_v38  ;;  %v431_v23 = vadd.f32 %v430_v26, %v362_v39 }
 0x118   :  { %v446_v49 = vsub.s32 %v443_v22, %v820_v35 }
 0x119   :  { %v412_v24 = vadd.f32 %v411_v20, %v410_v16  ;;  %v508_v25 = vrot.slane %v507_v21, 4  ;;  %v432_v53 = vrot.slane %v431_v23, 4  ;;  %v528_v27 = vadd.f32 %v527_v19, %v492_v18 }
 0x11b   :  { %v413_v29 = vrot.slane %v412_v24, 2  ;;  %v509_v30 = vadd.f32 %v508_v25, %v507_v21  ;;  %v433_v31 = vadd.f32 %v432_v53, %v431_v23  ;;  %v529_v32 = vrot.slane %v528_v27, 4 }
 0x11d   :  { %v414_v33 = vadd.f32 %v413_v29, %v412_v24  ;;  %v510_v36 = vrot.slane %v509_v30, 2  ;;  %v434_v37 = vrot.slane %v433_v31, 2  ;;  %v530_v12 = vadd.f32 %v529_v32, %v528_v27 }
 0x11f   :  { %v415_v41 = vrot.slane %v414_v33, 1  ;;  %v511_v40 = vadd.f32 %v510_v36, %v509_v30  ;;  %v435_v44 = vadd.f32 %v434_v37, %v433_v31  ;;  %v531_v42 = vrot.slane %v530_v12, 2 }
 0x121   :  { %v512_v39 = vrot.slane %v511_v40, 1  ;;  %v436_v43 = vrot.slane %v435_v44, 1  ;;  %v532_v45 = vadd.f32 %v531_v42, %v530_v12  ;;  %v416_v46 = vadd.f32 %v415_v41, %v414_v33 }
 0x123   :  { %v437_v47 = vadd.f32 %v436_v43, %v435_v44  ;;  %v533_v50 = vrot.slane %v532_v45, 1  ;;  %v513_v51 = vadd.f32 %v512_v39, %v511_v40 }
 0x125   :  { %v440_v54 = vcombine.low %v416_v46, %v437_v47  ;;  %v534_v52 = vadd.f32 %v533_v50, %v532_v45 }
 0x127   :  { %v447_v48 = vrot.slane %v440_v54, %v446_v49  ;;  %v537_v55 = vcombine.low %v513_v51, %v534_v52 }
 0x129   :  { %v454_v56 = vrot.slane %v447_v48, %v446_v49  ;;  %v544_v58 = vrot.slane %v537_v55, %v446_v49 }
 0x12b   :  { %460 = vst.msk [vmem:[%s1055_s4] sm:$0x3] %vm458_vm1, %v454_v56  ;;  %v551_v59 = vrot.slane %v544_v58, %v446_v49 }
 0x12d   :  { %553 = vst.msk [vmem:[%s1056_s5] sm:$0x3] %vm458_vm1, %v551_v59 }

// kernel: _lambda_.14
= control target key start
LH: loop header
LB: loop body
LE: loop exit
PB: predicated region body
PF: predicated region fallthrough
CT: control target
= control target key end

     0   :  { %vm402_vm0 = vcmask 1043456   ;;  %v1154_v1 = vmov 0   ;;  %vm305_vm1 = vcmask 588800   ;;  %v90_v45 = vlaneseq  ;;  %s1881_s1 = inlined_call_operand.vmem [shape: bf16[72,256], index: 1, kind: input, shape index: {}]   ;;  %s1882_s0 = inlined_call_operand.vmem [shape: bf16[512,72], index: 0, kind: input, shape index: {}]   ;;  %s1883_s2 = inlined_call_operand.vmem [shape: f32[1,256], index: 2, kind: input, shape index: {}]   ;;  %s1884_s3 = inlined_call_operand.vmem [shape: f32[512,256], index: 3, kind: output, shape index: {}]  }
   0x1   :  { %v87_v0 = vld [vmem:[%s1881_s1 + $0x40] sm:$0xff]  ;;  %441 = vmatprep.mubr.bf16.mxu0 %v1154_v1  ;;  %601 = vmatprep.mubr.bf16.mxu1 %v1154_v1  ;;  %v1110_v4 = vld [vmem:[%s1881_s1 + $0x34] ss:$8 sps:$4 sm:$0xff]   ;;  %v1112_v6 = vld [vmem:[%s1881_s1 + $0x30] ss:$8 sps:$4 sm:$0xff]  }
   0x2   :  { %v1063_v2 = vcombine.high %v87_v0, %v87_v0  ;;  %v1062_v3 = vcombine.low %v87_v0, %v87_v0  ;;  %v1113_v7 = vld [vmem:[%s1881_s1 + $0x24] ss:$8 sps:$4 sm:$0xff]   ;;  %v1115_v8 = vld [vmem:[%s1881_s1 + $0x20] ss:$8 sps:$4 sm:$0xff]   ;;  %v1116_v9 = vld [vmem:[%s1881_s1 + $0x14] ss:$8 sps:$4 sm:$0xff]  }
   0x3   :  { %v1118_v10 = vld [vmem:[%s1881_s1 + $0x10] ss:$8 sps:$4 sm:$0xff]   ;;  %v1119_v11 = vld [vmem:[%s1881_s1 + $0x4] ss:$8 sps:$4 sm:$0xff]   ;;  %v1121_v12 = vld [vmem:[%s1881_s1] ss:$8 sps:$4 sm:$0xff]  }
   0x4   :  { %1064 = vmatprep.subr.msk.bf16.mxu0 %vm402_vm0, %v1063_v2  ;;  %1097 = vmatprep.subr.msk.bf16.mxu1 %vm402_vm0, %v1063_v2  ;;  %v404_v5 = vsel %vm402_vm0, %v1062_v3, 0  ;;  %v1122_v13 = vld [vmem:[%s1882_s0] sm:$0xff]   ;;  %v1124_v15 = vld [vmem:[%s1882_s0 + $0x8] sm:$0xff]   ;;  %v1126_v17 = vld [vmem:[%s1882_s0 + $0x10] sm:$0xff]   ;;  %v91_v46 = vshrl.u32 %v90_v45, 7 }
   0x5   :  { %416 = vmatpush1.bf16.msra.mxu0 %v404_v5  ;;  %1102 = vmatpush1.bf16.msra.mxu1 %v404_v5  ;;  %v1123_v14 = vld [vmem:[%s1882_s0 + $0x80] sm:$0xff]   ;;  %v1125_v16 = vld [vmem:[%s1882_s0 + $0x88] sm:$0xff]   ;;  %v1127_v18 = vld [vmem:[%s1882_s0 + $0x90] sm:$0xff]  }
   0x6   :  { %417 = vmatprep.subr.bf16.mxu0 %v1110_v4  ;;  %1098 = vmatprep.subr.bf16.mxu1 %v1110_v4  ;;  %v1128_v19 = vld [vmem:[%s1882_s0 + $0x18] sm:$0xff]   ;;  %v1130_v21 = vld [vmem:[%s1882_s0 + $0x20] sm:$0xff]   ;;  %v1132_v23 = vld [vmem:[%s1882_s0 + $0x28] sm:$0xff]   ;;  %v92_v47 = vsub.s32 0, %v91_v46  ;;  %v96_v49 = vsub.s32 1, %v91_v46 }
   0x7   :  { %v1129_v20 = vld [vmem:[%s1882_s0 + $0x98] sm:$0xff]   ;;  %v1131_v22 = vld [vmem:[%s1882_s0 + $0xa0] sm:$0xff]   ;;  %v1133_v24 = vld [vmem:[%s1882_s0 + $0xa8] sm:$0xff]  }
   0x8   :  { %v1134_v25 = vld [vmem:[%s1882_s0 + $0x30] sm:$0xff]   ;;  %v1136_v27 = vld [vmem:[%s1882_s0 + $0x38] sm:$0xff]   ;;  %v1138_v29 = vld [vmem:[%s1882_s0 + $0x40] sm:$0xff]  }
   0x9   :  { %418 = vmatpush1.bf16.msra.mxu0 %v1112_v6  ;;  %1103 = vmatpush1.bf16.msra.mxu1 %v1112_v6  ;;  %v1135_v26 = vld [vmem:[%s1882_s0 + $0xb0] sm:$0xff]   ;;  %v1137_v28 = vld [vmem:[%s1882_s0 + $0xb8] sm:$0xff]   ;;  %v1139_v30 = vld [vmem:[%s1882_s0 + $0xc0] sm:$0xff]  }
   0xa   :  { %419 = vmatprep.subr.bf16.mxu0 %v1113_v7  ;;  %1099 = vmatprep.subr.bf16.mxu1 %v1113_v7  ;;  %v1140_v31 = vld [vmem:[%s1882_s0 + $0x48] sm:$0xff]   ;;  %v1142_v33 = vld [vmem:[%s1882_s0 + $0x50] sm:$0xff]   ;;  %v1144_v35 = vld [vmem:[%s1882_s0 + $0x58] sm:$0xff]  }
   0xb   :  { %v1141_v32 = vld [vmem:[%s1882_s0 + $0xc8] sm:$0xff]   ;;  %v1143_v34 = vld [vmem:[%s1882_s0 + $0xd0] sm:$0xff]   ;;  %v1145_v36 = vld [vmem:[%s1882_s0 + $0xd8] sm:$0xff]  }
   0xc   :  { %v1146_v37 = vld [vmem:[%s1882_s0 + $0x60] sm:$0xff]   ;;  %v1148_v39 = vld [vmem:[%s1882_s0 + $0x68] sm:$0xff]   ;;  %v1150_v41 = vld [vmem:[%s1882_s0 + $0x70] sm:$0xff]  }
   0xd   :  { %420 = vmatpush1.bf16.msra.mxu0 %v1115_v8  ;;  %1104 = vmatpush1.bf16.msra.mxu1 %v1115_v8  ;;  %v1147_v38 = vld [vmem:[%s1882_s0 + $0xe0] sm:$0xff]   ;;  %v1149_v40 = vld [vmem:[%s1882_s0 + $0xe8] sm:$0xff]   ;;  %v1151_v42 = vld [vmem:[%s1882_s0 + $0xf0] sm:$0xff]  }
   0xe   :  { %421 = vmatprep.subr.bf16.mxu0 %v1116_v9  ;;  %1100 = vmatprep.subr.bf16.mxu1 %v1116_v9  ;;  %v1152_v43 = vld [vmem:[%s1882_s0 + $0x78] sm:$0xff]   ;;  %v88_v48 = vld [vmem:[%s1883_s2] sm:$0x3] }
   0xf   :  { %v1153_v44 = vld [vmem:[%s1882_s0 + $0xf8] sm:$0xff]   ;;  %v1365_v50 = vrot.slane %v88_v48, %v92_v47  ;;  %v1367_v51 = vrot.slane %v88_v48, %v96_v49 }
  0x11   :  { %422 = vmatpush1.bf16.msra.mxu0 %v1118_v10  ;;  %1105 = vmatpush1.bf16.msra.mxu1 %v1118_v10 }
  0x12   :  { %423 = vmatprep.subr.bf16.mxu0 %v1119_v11  ;;  %1101 = vmatprep.subr.bf16.mxu1 %v1119_v11 }
  0x15   :  { %424 = vmatpush1.bf16.msra.mxu0 %v1121_v12  ;;  %1106 = vmatpush1.bf16.msra.mxu1 %v1121_v12 }
  0x18   :  { %1065 = vmatmul.mubr.msk.bf16.vlgmr.msra.gmra.mxu0 %vm305_vm1, %v1122_v13  ;;  %1081 = vmatmul.mubr.msk.bf16.vlgmr.msra.gmra.mxu1 %vm305_vm1, %v1123_v14 }
  0x19   :  { %451 = vmatprep.mubr.bf16.mxu0 %v1154_v1  ;;  %611 = vmatprep.mubr.bf16.mxu1 %v1154_v1 }
  0x20   :  { %1066 = vmatmul.mubr.msk.bf16.gmra.mxu0 %vm305_vm1, %v1124_v15  ;;  %1082 = vmatmul.mubr.msk.bf16.gmra.mxu1 %vm305_vm1, %v1125_v16 }
  0x21   :  { %461 = vmatprep.mubr.bf16.mxu0 %v1154_v1  ;;  %621 = vmatprep.mubr.bf16.mxu1 %v1154_v1 }
  0x28   :  { %1067 = vmatmul.mubr.msk.bf16.gmra.mxu0 %vm305_vm1, %v1126_v17  ;;  %1083 = vmatmul.mubr.msk.bf16.gmra.mxu1 %vm305_vm1, %v1127_v18 }
  0x29   :  { %471 = vmatprep.mubr.bf16.mxu0 %v1154_v1  ;;  %631 = vmatprep.mubr.bf16.mxu1 %v1154_v1 }
  0x30   :  { %1068 = vmatmul.mubr.msk.bf16.gmra.mxu0 %vm305_vm1, %v1128_v19  ;;  %1084 = vmatmul.mubr.msk.bf16.gmra.mxu1 %vm305_vm1, %v1129_v20 }
  0x31   :  { %481 = vmatprep.mubr.bf16.mxu0 %v1154_v1  ;;  %641 = vmatprep.mubr.bf16.mxu1 %v1154_v1 }
  0x38   :  { %1069 = vmatmul.mubr.msk.bf16.gmra.mxu0 %vm305_vm1, %v1130_v21  ;;  %1085 = vmatmul.mubr.msk.bf16.gmra.mxu1 %vm305_vm1, %v1131_v22 }
  0x39   :  { %491 = vmatprep.mubr.bf16.mxu0 %v1154_v1  ;;  %651 = vmatprep.mubr.bf16.mxu1 %v1154_v1 }
  0x40   :  { %1070 = vmatmul.mubr.msk.bf16.gmra.mxu0 %vm305_vm1, %v1132_v23  ;;  %1086 = vmatmul.mubr.msk.bf16.gmra.mxu1 %vm305_vm1, %v1133_v24 }
  0x41   :  { %501 = vmatprep.mubr.bf16.mxu0 %v1154_v1  ;;  %661 = vmatprep.mubr.bf16.mxu1 %v1154_v1 }
  0x48   :  { %1071 = vmatmul.mubr.msk.bf16.gmra.mxu0 %vm305_vm1, %v1134_v25  ;;  %1087 = vmatmul.mubr.msk.bf16.gmra.mxu1 %vm305_vm1, %v1135_v26 }
  0x49   :  { %511 = vmatprep.mubr.bf16.mxu0 %v1154_v1  ;;  %671 = vmatprep.mubr.bf16.mxu1 %v1154_v1 }
  0x50   :  { %1072 = vmatmul.mubr.msk.bf16.gmra.mxu0 %vm305_vm1, %v1136_v27  ;;  %1088 = vmatmul.mubr.msk.bf16.gmra.mxu1 %vm305_vm1, %v1137_v28 }
  0x51   :  { %521 = vmatprep.mubr.bf16.mxu0 %v1154_v1  ;;  %681 = vmatprep.mubr.bf16.mxu1 %v1154_v1 }
  0x58   :  { %1073 = vmatmul.mubr.msk.bf16.gmra.mxu0 %vm305_vm1, %v1138_v29  ;;  %1089 = vmatmul.mubr.msk.bf16.gmra.mxu1 %vm305_vm1, %v1139_v30 }
  0x59   :  { %531 = vmatprep.mubr.bf16.mxu0 %v1154_v1  ;;  %691 = vmatprep.mubr.bf16.mxu1 %v1154_v1 }
  0x60   :  { %1074 = vmatmul.mubr.msk.bf16.gmra.mxu0 %vm305_vm1, %v1140_v31  ;;  %1090 = vmatmul.mubr.msk.bf16.gmra.mxu1 %vm305_vm1, %v1141_v32 }
  0x61   :  { %541 = vmatprep.mubr.bf16.mxu0 %v1154_v1  ;;  %701 = vmatprep.mubr.bf16.mxu1 %v1154_v1 }
  0x68   :  { %1075 = vmatmul.mubr.msk.bf16.gmra.mxu0 %vm305_vm1, %v1142_v33  ;;  %1091 = vmatmul.mubr.msk.bf16.gmra.mxu1 %vm305_vm1, %v1143_v34 }
  0x69   :  { %551 = vmatprep.mubr.bf16.mxu0 %v1154_v1  ;;  %711 = vmatprep.mubr.bf16.mxu1 %v1154_v1 }
  0x70   :  { %1076 = vmatmul.mubr.msk.bf16.gmra.mxu0 %vm305_vm1, %v1144_v35  ;;  %1092 = vmatmul.mubr.msk.bf16.gmra.mxu1 %vm305_vm1, %v1145_v36 }
  0x71   :  { %561 = vmatprep.mubr.bf16.mxu0 %v1154_v1  ;;  %721 = vmatprep.mubr.bf16.mxu1 %v1154_v1 }
  0x78   :  { %1077 = vmatmul.mubr.msk.bf16.gmra.mxu0 %vm305_vm1, %v1146_v37  ;;  %1093 = vmatmul.mubr.msk.bf16.gmra.mxu1 %vm305_vm1, %v1147_v38 }
  0x79   :  { %571 = vmatprep.mubr.bf16.mxu0 %v1154_v1  ;;  %731 = vmatprep.mubr.bf16.mxu1 %v1154_v1 }
  0x80   :  { %1078 = vmatmul.mubr.msk.bf16.gmra.mxu0 %vm305_vm1, %v1148_v39  ;;  %1094 = vmatmul.mubr.msk.bf16.gmra.mxu1 %vm305_vm1, %v1149_v40 }
  0x81   :  { %581 = vmatprep.mubr.bf16.mxu0 %v1154_v1  ;;  %741 = vmatprep.mubr.bf16.mxu1 %v1154_v1 }
  0x88   :  { %1079 = vmatmul.mubr.msk.bf16.gmra.mxu0 %vm305_vm1, %v1150_v41  ;;  %1095 = vmatmul.mubr.msk.bf16.gmra.mxu1 %vm305_vm1, %v1151_v42 }
  0x89   :  { %591 = vmatprep.mubr.bf16.mxu0 %v1154_v1  ;;  %751 = vmatprep.mubr.bf16.mxu1 %v1154_v1 }
  0x90   :  { %1080 = vmatmul.mubr.msk.bf16.gmra.mxu0 %vm305_vm1, %v1152_v43  ;;  %1096 = vmatmul.mubr.msk.bf16.gmra.mxu1 %vm305_vm1, %v1153_v44 }
  0xd8   :  { %v443_v52 = vpop.f32.mrf.mxu0  ;;  %v603_v53 = vpop.f32.mrf.mxu1 }
  0xd9   :  { %v444_v54 = vadd.f32 %v443_v52, %v1365_v50  ;;  %v604_v55 = vadd.f32 %v603_v53, %v1365_v50 }
  0xda   :  { %v445_v56 = vpop.f32.mrf.mxu0  ;;  %v605_v57 = vpop.f32.mrf.mxu1 }
  0xdb   :  { %v762_v58 = vmax.f32 %v444_v54, 0.0  ;;  %v826_v59 = vmax.f32 %v604_v55, 0.0  ;;  %v446_v60 = vadd.f32 %v445_v56, %v1367_v51  ;;  %v606_v61 = vadd.f32 %v605_v57, %v1367_v51 }
  0xdc   :  { %v447_v62 = vpop.f32.mrf.mxu0  ;;  %v607_v63 = vpop.f32.mrf.mxu1 }
  0xdd   :  { %890 = vst [vmem:[%s1884_s3] sm:$0xff] %v762_v58  ;;  %954 = vst [vmem:[%s1884_s3 + $0x200] sm:$0xff] %v826_v59  ;;  %v763_v0 = vmax.f32 %v446_v60, 0.0  ;;  %v827_v1 = vmax.f32 %v606_v61, 0.0  ;;  %v448_v2 = vadd.f32 %v447_v62, %v1365_v50  ;;  %v608_v3 = vadd.f32 %v607_v63, %v1365_v50 }
  0xde   :  { %v449_v4 = vpop.f32.mrf.mxu0  ;;  %v609_v5 = vpop.f32.mrf.mxu1 }
  0xdf   :  { %891 = vst [vmem:[%s1884_s3 + $0x8] sm:$0xff] %v763_v0  ;;  %955 = vst [vmem:[%s1884_s3 + $0x208] sm:$0xff] %v827_v1  ;;  %v764_v6 = vmax.f32 %v448_v2, 0.0  ;;  %v828_v7 = vmax.f32 %v608_v3, 0.0  ;;  %v450_v8 = vadd.f32 %v449_v4, %v1367_v51  ;;  %v610_v9 = vadd.f32 %v609_v5, %v1367_v51 }
  0xe0   :  { %v453_v10 = vpop.f32.mrf.mxu0  ;;  %v613_v11 = vpop.f32.mrf.mxu1 }
  0xe1   :  { %892 = vst [vmem:[%s1884_s3 + $0x10] sm:$0xff] %v764_v6  ;;  %956 = vst [vmem:[%s1884_s3 + $0x210] sm:$0xff] %v828_v7  ;;  %v765_v12 = vmax.f32 %v450_v8, 0.0  ;;  %v829_v13 = vmax.f32 %v610_v9, 0.0  ;;  %v454_v14 = vadd.f32 %v453_v10, %v1365_v50  ;;  %v614_v15 = vadd.f32 %v613_v11, %v1365_v50 }
  0xe2   :  { %v455_v16 = vpop.f32.mrf.mxu0  ;;  %v615_v17 = vpop.f32.mrf.mxu1 }
  0xe3   :  { %893 = vst [vmem:[%s1884_s3 + $0x18] sm:$0xff] %v765_v12  ;;  %957 = vst [vmem:[%s1884_s3 + $0x218] sm:$0xff] %v829_v13  ;;  %v766_v18 = vmax.f32 %v454_v14, 0.0  ;;  %v830_v19 = vmax.f32 %v614_v15, 0.0  ;;  %v456_v20 = vadd.f32 %v455_v16, %v1367_v51  ;;  %v616_v21 = vadd.f32 %v615_v17, %v1367_v51 }
  0xe4   :  { %v457_v22 = vpop.f32.mrf.mxu0  ;;  %v617_v23 = vpop.f32.mrf.mxu1 }
  0xe5   :  { %894 = vst [vmem:[%s1884_s3 + $0x20] sm:$0xff] %v766_v18  ;;  %958 = vst [vmem:[%s1884_s3 + $0x220] sm:$0xff] %v830_v19  ;;  %v767_v24 = vmax.f32 %v456_v20, 0.0  ;;  %v831_v25 = vmax.f32 %v616_v21, 0.0  ;;  %v458_v26 = vadd.f32 %v457_v22, %v1365_v50  ;;  %v618_v27 = vadd.f32 %v617_v23, %v1365_v50 }
  0xe6   :  { %v459_v28 = vpop.f32.mrf.mxu0  ;;  %v619_v29 = vpop.f32.mrf.mxu1 }
  0xe7   :  { %895 = vst [vmem:[%s1884_s3 + $0x28] sm:$0xff] %v767_v24  ;;  %959 = vst [vmem:[%s1884_s3 + $0x228] sm:$0xff] %v831_v25  ;;  %v768_v30 = vmax.f32 %v458_v26, 0.0  ;;  %v832_v31 = vmax.f32 %v618_v27, 0.0  ;;  %v460_v32 = vadd.f32 %v459_v28, %v1367_v51  ;;  %v620_v33 = vadd.f32 %v619_v29, %v1367_v51 }
  0xe8   :  { %v463_v34 = vpop.f32.mrf.mxu0  ;;  %v623_v35 = vpop.f32.mrf.mxu1 }
  0xe9   :  { %896 = vst [vmem:[%s1884_s3 + $0x30] sm:$0xff] %v768_v30  ;;  %960 = vst [vmem:[%s1884_s3 + $0x230] sm:$0xff] %v832_v31  ;;  %v769_v36 = vmax.f32 %v460_v32, 0.0  ;;  %v833_v37 = vmax.f32 %v620_v33, 0.0  ;;  %v464_v38 = vadd.f32 %v463_v34, %v1365_v50  ;;  %v624_v39 = vadd.f32 %v623_v35, %v1365_v50 }
  0xea   :  { %v465_v40 = vpop.f32.mrf.mxu0  ;;  %v625_v41 = vpop.f32.mrf.mxu1 }
  0xeb   :  { %897 = vst [vmem:[%s1884_s3 + $0x38] sm:$0xff] %v769_v36  ;;  %961 = vst [vmem:[%s1884_s3 + $0x238] sm:$0xff] %v833_v37  ;;  %v770_v42 = vmax.f32 %v464_v38, 0.0  ;;  %v834_v43 = vmax.f32 %v624_v39, 0.0  ;;  %v466_v44 = vadd.f32 %v465_v40, %v1367_v51  ;;  %v626_v45 = vadd.f32 %v625_v41, %v1367_v51 }
  0xec   :  { %v467_v46 = vpop.f32.mrf.mxu0  ;;  %v627_v47 = vpop.f32.mrf.mxu1 }
  0xed   :  { %898 = vst [vmem:[%s1884_s3 + $0x40] sm:$0xff] %v770_v42  ;;  %962 = vst [vmem:[%s1884_s3 + $0x240] sm:$0xff] %v834_v43  ;;  %v771_v48 = vmax.f32 %v466_v44, 0.0  ;;  %v835_v49 = vmax.f32 %v626_v45, 0.0  ;;  %v468_v52 = vadd.f32 %v467_v46, %v1365_v50  ;;  %v628_v53 = vadd.f32 %v627_v47, %v1365_v50 }
  0xee   :  { %v469_v54 = vpop.f32.mrf.mxu0  ;;  %v629_v55 = vpop.f32.mrf.mxu1 }
  0xef   :  { %899 = vst [vmem:[%s1884_s3 + $0x48] sm:$0xff] %v771_v48  ;;  %963 = vst [vmem:[%s1884_s3 + $0x248] sm:$0xff] %v835_v49  ;;  %v772_v56 = vmax.f32 %v468_v52, 0.0  ;;  %v836_v57 = vmax.f32 %v628_v53, 0.0  ;;  %v470_v58 = vadd.f32 %v469_v54, %v1367_v51  ;;  %v630_v59 = vadd.f32 %v629_v55, %v1367_v51 }
  0xf0   :  { %v473_v60 = vpop.f32.mrf.mxu0  ;;  %v633_v61 = vpop.f32.mrf.mxu1 }
  0xf1   :  { %900 = vst [vmem:[%s1884_s3 + $0x50] sm:$0xff] %v772_v56  ;;  %964 = vst [vmem:[%s1884_s3 + $0x250] sm:$0xff] %v836_v57  ;;  %v773_v62 = vmax.f32 %v470_v58, 0.0  ;;  %v837_v63 = vmax.f32 %v630_v59, 0.0  ;;  %v474_v0 = vadd.f32 %v473_v60, %v1365_v50  ;;  %v634_v1 = vadd.f32 %v633_v61, %v1365_v50 }
  0xf2   :  { %v475_v2 = vpop.f32.mrf.mxu0  ;;  %v635_v3 = vpop.f32.mrf.mxu1 }
  0xf3   :  { %901 = vst [vmem:[%s1884_s3 + $0x58] sm:$0xff] %v773_v62  ;;  %965 = vst [vmem:[%s1884_s3 + $0x258] sm:$0xff] %v837_v63  ;;  %v774_v4 = vmax.f32 %v474_v0, 0.0  ;;  %v838_v5 = vmax.f32 %v634_v1, 0.0  ;;  %v476_v6 = vadd.f32 %v475_v2, %v1367_v51  ;;  %v636_v7 = vadd.f32 %v635_v3, %v1367_v51 }
  0xf4   :  { %v477_v8 = vpop.f32.mrf.mxu0  ;;  %v637_v9 = vpop.f32.mrf.mxu1 }
  0xf5   :  { %902 = vst [vmem:[%s1884_s3 + $0x60] sm:$0xff] %v774_v4  ;;  %966 = vst [vmem:[%s1884_s3 + $0x260] sm:$0xff] %v838_v5  ;;  %v775_v10 = vmax.f32 %v476_v6, 0.0  ;;  %v839_v11 = vmax.f32 %v636_v7, 0.0  ;;  %v478_v12 = vadd.f32 %v477_v8, %v1365_v50  ;;  %v638_v13 = vadd.f32 %v637_v9, %v1365_v50 }
  0xf6   :  { %v479_v14 = vpop.f32.mrf.mxu0  ;;  %v639_v15 = vpop.f32.mrf.mxu1 }
  0xf7   :  { %903 = vst [vmem:[%s1884_s3 + $0x68] sm:$0xff] %v775_v10  ;;  %967 = vst [vmem:[%s1884_s3 + $0x268] sm:$0xff] %v839_v11  ;;  %v776_v16 = vmax.f32 %v478_v12, 0.0  ;;  %v840_v17 = vmax.f32 %v638_v13, 0.0  ;;  %v480_v18 = vadd.f32 %v479_v14, %v1367_v51  ;;  %v640_v19 = vadd.f32 %v639_v15, %v1367_v51 }
  0xf8   :  { %v483_v20 = vpop.f32.mrf.mxu0  ;;  %v643_v21 = vpop.f32.mrf.mxu1 }
  0xf9   :  { %904 = vst [vmem:[%s1884_s3 + $0x70] sm:$0xff] %v776_v16  ;;  %968 = vst [vmem:[%s1884_s3 + $0x270] sm:$0xff] %v840_v17  ;;  %v777_v22 = vmax.f32 %v480_v18, 0.0  ;;  %v841_v23 = vmax.f32 %v640_v19, 0.0  ;;  %v484_v24 = vadd.f32 %v483_v20, %v1365_v50  ;;  %v644_v25 = vadd.f32 %v643_v21, %v1365_v50 }
  0xfa   :  { %v485_v26 = vpop.f32.mrf.mxu0  ;;  %v645_v27 = vpop.f32.mrf.mxu1 }
  0xfb   :  { %905 = vst [vmem:[%s1884_s3 + $0x78] sm:$0xff] %v777_v22  ;;  %969 = vst [vmem:[%s1884_s3 + $0x278] sm:$0xff] %v841_v23  ;;  %v778_v28 = vmax.f32 %v484_v24, 0.0  ;;  %v842_v29 = vmax.f32 %v644_v25, 0.0  ;;  %v486_v30 = vadd.f32 %v485_v26, %v1367_v51  ;;  %v646_v31 = vadd.f32 %v645_v27, %v1367_v51 }
  0xfc   :  { %v487_v32 = vpop.f32.mrf.mxu0  ;;  %v647_v33 = vpop.f32.mrf.mxu1 }
  0xfd   :  { %906 = vst [vmem:[%s1884_s3 + $0x80] sm:$0xff] %v778_v28  ;;  %970 = vst [vmem:[%s1884_s3 + $0x280] sm:$0xff] %v842_v29  ;;  %v779_v34 = vmax.f32 %v486_v30, 0.0  ;;  %v843_v35 = vmax.f32 %v646_v31, 0.0  ;;  %v488_v36 = vadd.f32 %v487_v32, %v1365_v50  ;;  %v648_v37 = vadd.f32 %v647_v33, %v1365_v50 }
  0xfe   :  { %v489_v38 = vpop.f32.mrf.mxu0  ;;  %v649_v39 = vpop.f32.mrf.mxu1 }
  0xff   :  { %907 = vst [vmem:[%s1884_s3 + $0x88] sm:$0xff] %v779_v34  ;;  %971 = vst [vmem:[%s1884_s3 + $0x288] sm:$0xff] %v843_v35  ;;  %v780_v40 = vmax.f32 %v488_v36, 0.0  ;;  %v844_v41 = vmax.f32 %v648_v37, 0.0  ;;  %v490_v42 = vadd.f32 %v489_v38, %v1367_v51  ;;  %v650_v43 = vadd.f32 %v649_v39, %v1367_v51 }
 0x100   :  { %v493_v44 = vpop.f32.mrf.mxu0  ;;  %v653_v45 = vpop.f32.mrf.mxu1 }
 0x101   :  { %908 = vst [vmem:[%s1884_s3 + $0x90] sm:$0xff] %v780_v40  ;;  %972 = vst [vmem:[%s1884_s3 + $0x290] sm:$0xff] %v844_v41  ;;  %v781_v46 = vmax.f32 %v490_v42, 0.0  ;;  %v845_v47 = vmax.f32 %v650_v43, 0.0  ;;  %v494_v48 = vadd.f32 %v493_v44, %v1365_v50  ;;  %v654_v49 = vadd.f32 %v653_v45, %v1365_v50 }
 0x102   :  { %v495_v52 = vpop.f32.mrf.mxu0  ;;  %v655_v53 = vpop.f32.mrf.mxu1 }
 0x103   :  { %909 = vst [vmem:[%s1884_s3 + $0x98] sm:$0xff] %v781_v46  ;;  %973 = vst [vmem:[%s1884_s3 + $0x298] sm:$0xff] %v845_v47  ;;  %v782_v54 = vmax.f32 %v494_v48, 0.0  ;;  %v846_v55 = vmax.f32 %v654_v49, 0.0  ;;  %v496_v56 = vadd.f32 %v495_v52, %v1367_v51  ;;  %v656_v57 = vadd.f32 %v655_v53, %v1367_v51 }
 0x104   :  { %v497_v58 = vpop.f32.mrf.mxu0  ;;  %v657_v59 = vpop.f32.mrf.mxu1 }
 0x105   :  { %910 = vst [vmem:[%s1884_s3 + $0xa0] sm:$0xff] %v782_v54  ;;  %974 = vst [vmem:[%s1884_s3 + $0x2a0] sm:$0xff] %v846_v55  ;;  %v783_v60 = vmax.f32 %v496_v56, 0.0  ;;  %v847_v61 = vmax.f32 %v656_v57, 0.0  ;;  %v498_v62 = vadd.f32 %v497_v58, %v1365_v50  ;;  %v658_v63 = vadd.f32 %v657_v59, %v1365_v50 }
 0x106   :  { %v499_v0 = vpop.f32.mrf.mxu0  ;;  %v659_v1 = vpop.f32.mrf.mxu1 }
 0x107   :  { %911 = vst [vmem:[%s1884_s3 + $0xa8] sm:$0xff] %v783_v60  ;;  %975 = vst [vmem:[%s1884_s3 + $0x2a8] sm:$0xff] %v847_v61  ;;  %v784_v2 = vmax.f32 %v498_v62, 0.0  ;;  %v848_v3 = vmax.f32 %v658_v63, 0.0  ;;  %v500_v4 = vadd.f32 %v499_v0, %v1367_v51  ;;  %v660_v5 = vadd.f32 %v659_v1, %v1367_v51 }
 0x108   :  { %v503_v6 = vpop.f32.mrf.mxu0  ;;  %v663_v7 = vpop.f32.mrf.mxu1 }
 0x109   :  { %912 = vst [vmem:[%s1884_s3 + $0xb0] sm:$0xff] %v784_v2  ;;  %976 = vst [vmem:[%s1884_s3 + $0x2b0] sm:$0xff] %v848_v3  ;;  %v785_v8 = vmax.f32 %v500_v4, 0.0  ;;  %v849_v9 = vmax.f32 %v660_v5, 0.0  ;;  %v504_v10 = vadd.f32 %v503_v6, %v1365_v50  ;;  %v664_v11 = vadd.f32 %v663_v7, %v1365_v50 }
 0x10a   :  { %v505_v12 = vpop.f32.mrf.mxu0  ;;  %v665_v13 = vpop.f32.mrf.mxu1 }
 0x10b   :  { %913 = vst [vmem:[%s1884_s3 + $0xb8] sm:$0xff] %v785_v8  ;;  %977 = vst [vmem:[%s1884_s3 + $0x2b8] sm:$0xff] %v849_v9  ;;  %v786_v14 = vmax.f32 %v504_v10, 0.0  ;;  %v850_v15 = vmax.f32 %v664_v11, 0.0  ;;  %v506_v16 = vadd.f32 %v505_v12, %v1367_v51  ;;  %v666_v17 = vadd.f32 %v665_v13, %v1367_v51 }
 0x10c   :  { %v507_v18 = vpop.f32.mrf.mxu0  ;;  %v667_v19 = vpop.f32.mrf.mxu1 }
 0x10d   :  { %914 = vst [vmem:[%s1884_s3 + $0xc0] sm:$0xff] %v786_v14  ;;  %978 = vst [vmem:[%s1884_s3 + $0x2c0] sm:$0xff] %v850_v15  ;;  %v787_v20 = vmax.f32 %v506_v16, 0.0  ;;  %v851_v21 = vmax.f32 %v666_v17, 0.0  ;;  %v508_v22 = vadd.f32 %v507_v18, %v1365_v50  ;;  %v668_v23 = vadd.f32 %v667_v19, %v1365_v50 }
 0x10e   :  { %v509_v24 = vpop.f32.mrf.mxu0  ;;  %v669_v25 = vpop.f32.mrf.mxu1 }
 0x10f   :  { %915 = vst [vmem:[%s1884_s3 + $0xc8] sm:$0xff] %v787_v20  ;;  %979 = vst [vmem:[%s1884_s3 + $0x2c8] sm:$0xff] %v851_v21  ;;  %v788_v26 = vmax.f32 %v508_v22, 0.0  ;;  %v852_v27 = vmax.f32 %v668_v23, 0.0  ;;  %v510_v28 = vadd.f32 %v509_v24, %v1367_v51  ;;  %v670_v29 = vadd.f32 %v669_v25, %v1367_v51 }
 0x110   :  { %v513_v30 = vpop.f32.mrf.mxu0  ;;  %v673_v31 = vpop.f32.mrf.mxu1 }
 0x111   :  { %916 = vst [vmem:[%s1884_s3 + $0xd0] sm:$0xff] %v788_v26  ;;  %980 = vst [vmem:[%s1884_s3 + $0x2d0] sm:$0xff] %v852_v27  ;;  %v789_v32 = vmax.f32 %v510_v28, 0.0  ;;  %v853_v33 = vmax.f32 %v670_v29, 0.0  ;;  %v514_v34 = vadd.f32 %v513_v30, %v1365_v50  ;;  %v674_v35 = vadd.f32 %v673_v31, %v1365_v50 }
 0x112   :  { %v515_v36 = vpop.f32.mrf.mxu0  ;;  %v675_v37 = vpop.f32.mrf.mxu1 }
 0x113   :  { %917 = vst [vmem:[%s1884_s3 + $0xd8] sm:$0xff] %v789_v32  ;;  %981 = vst [vmem:[%s1884_s3 + $0x2d8] sm:$0xff] %v853_v33  ;;  %v790_v38 = vmax.f32 %v514_v34, 0.0  ;;  %v854_v39 = vmax.f32 %v674_v35, 0.0  ;;  %v516_v40 = vadd.f32 %v515_v36, %v1367_v51  ;;  %v676_v41 = vadd.f32 %v675_v37, %v1367_v51 }
 0x114   :  { %v517_v42 = vpop.f32.mrf.mxu0  ;;  %v677_v43 = vpop.f32.mrf.mxu1 }
 0x115   :  { %918 = vst [vmem:[%s1884_s3 + $0xe0] sm:$0xff] %v790_v38  ;;  %982 = vst [vmem:[%s1884_s3 + $0x2e0] sm:$0xff] %v854_v39  ;;  %v791_v44 = vmax.f32 %v516_v40, 0.0  ;;  %v855_v45 = vmax.f32 %v676_v41, 0.0  ;;  %v518_v46 = vadd.f32 %v517_v42, %v1365_v50  ;;  %v678_v47 = vadd.f32 %v677_v43, %v1365_v50 }
 0x116   :  { %v519_v48 = vpop.f32.mrf.mxu0  ;;  %v679_v49 = vpop.f32.mrf.mxu1 }
 0x117   :  { %919 = vst [vmem:[%s1884_s3 + $0xe8] sm:$0xff] %v791_v44  ;;  %983 = vst [vmem:[%s1884_s3 + $0x2e8] sm:$0xff] %v855_v45  ;;  %v792_v52 = vmax.f32 %v518_v46, 0.0  ;;  %v856_v53 = vmax.f32 %v678_v47, 0.0  ;;  %v520_v54 = vadd.f32 %v519_v48, %v1367_v51  ;;  %v680_v55 = vadd.f32 %v679_v49, %v1367_v51 }
 0x118   :  { %v523_v56 = vpop.f32.mrf.mxu0  ;;  %v683_v57 = vpop.f32.mrf.mxu1 }
 0x119   :  { %920 = vst [vmem:[%s1884_s3 + $0xf0] sm:$0xff] %v792_v52  ;;  %984 = vst [vmem:[%s1884_s3 + $0x2f0] sm:$0xff] %v856_v53  ;;  %v793_v58 = vmax.f32 %v520_v54, 0.0  ;;  %v857_v59 = vmax.f32 %v680_v55, 0.0  ;;  %v524_v60 = vadd.f32 %v523_v56, %v1365_v50  ;;  %v684_v61 = vadd.f32 %v683_v57, %v1365_v50 }
 0x11a   :  { %v525_v62 = vpop.f32.mrf.mxu0  ;;  %v685_v63 = vpop.f32.mrf.mxu1 }
 0x11b   :  { %921 = vst [vmem:[%s1884_s3 + $0xf8] sm:$0xff] %v793_v58  ;;  %985 = vst [vmem:[%s1884_s3 + $0x2f8] sm:$0xff] %v857_v59  ;;  %v794_v0 = vmax.f32 %v524_v60, 0.0  ;;  %v858_v1 = vmax.f32 %v684_v61, 0.0  ;;  %v526_v2 = vadd.f32 %v525_v62, %v1367_v51  ;;  %v686_v3 = vadd.f32 %v685_v63, %v1367_v51 }
 0x11c   :  { %v527_v4 = vpop.f32.mrf.mxu0  ;;  %v687_v5 = vpop.f32.mrf.mxu1 }
 0x11d   :  { %922 = vst [vmem:[%s1884_s3 + $0x100] sm:$0xff] %v794_v0  ;;  %986 = vst [vmem:[%s1884_s3 + $0x300] sm:$0xff] %v858_v1  ;;  %v795_v6 = vmax.f32 %v526_v2, 0.0  ;;  %v859_v7 = vmax.f32 %v686_v3, 0.0  ;;  %v528_v8 = vadd.f32 %v527_v4, %v1365_v50  ;;  %v688_v9 = vadd.f32 %v687_v5, %v1365_v50 }
 0x11e   :  { %v529_v10 = vpop.f32.mrf.mxu0  ;;  %v689_v11 = vpop.f32.mrf.mxu1 }
 0x11f   :  { %923 = vst [vmem:[%s1884_s3 + $0x108] sm:$0xff] %v795_v6  ;;  %987 = vst [vmem:[%s1884_s3 + $0x308] sm:$0xff] %v859_v7  ;;  %v796_v12 = vmax.f32 %v528_v8, 0.0  ;;  %v860_v13 = vmax.f32 %v688_v9, 0.0  ;;  %v530_v14 = vadd.f32 %v529_v10, %v1367_v51  ;;  %v690_v15 = vadd.f32 %v689_v11, %v1367_v51 }
 0x120   :  { %v533_v16 = vpop.f32.mrf.mxu0  ;;  %v693_v17 = vpop.f32.mrf.mxu1 }
 0x121   :  { %924 = vst [vmem:[%s1884_s3 + $0x110] sm:$0xff] %v796_v12  ;;  %988 = vst [vmem:[%s1884_s3 + $0x310] sm:$0xff] %v860_v13  ;;  %v797_v18 = vmax.f32 %v530_v14, 0.0  ;;  %v861_v19 = vmax.f32 %v690_v15, 0.0  ;;  %v534_v20 = vadd.f32 %v533_v16, %v1365_v50  ;;  %v694_v21 = vadd.f32 %v693_v17, %v1365_v50 }
 0x122   :  { %v535_v22 = vpop.f32.mrf.mxu0  ;;  %v695_v23 = vpop.f32.mrf.mxu1 }
 0x123   :  { %925 = vst [vmem:[%s1884_s3 + $0x118] sm:$0xff] %v797_v18  ;;  %989 = vst [vmem:[%s1884_s3 + $0x318] sm:$0xff] %v861_v19  ;;  %v798_v24 = vmax.f32 %v534_v20, 0.0  ;;  %v862_v25 = vmax.f32 %v694_v21, 0.0  ;;  %v536_v26 = vadd.f32 %v535_v22, %v1367_v51  ;;  %v696_v27 = vadd.f32 %v695_v23, %v1367_v51 }
 0x124   :  { %v537_v28 = vpop.f32.mrf.mxu0  ;;  %v697_v29 = vpop.f32.mrf.mxu1 }
 0x125   :  { %926 = vst [vmem:[%s1884_s3 + $0x120] sm:$0xff] %v798_v24  ;;  %990 = vst [vmem:[%s1884_s3 + $0x320] sm:$0xff] %v862_v25  ;;  %v799_v30 = vmax.f32 %v536_v26, 0.0  ;;  %v863_v31 = vmax.f32 %v696_v27, 0.0  ;;  %v538_v32 = vadd.f32 %v537_v28, %v1365_v50  ;;  %v698_v33 = vadd.f32 %v697_v29, %v1365_v50 }
 0x126   :  { %v539_v34 = vpop.f32.mrf.mxu0  ;;  %v699_v35 = vpop.f32.mrf.mxu1 }
 0x127   :  { %927 = vst [vmem:[%s1884_s3 + $0x128] sm:$0xff] %v799_v30  ;;  %991 = vst [vmem:[%s1884_s3 + $0x328] sm:$0xff] %v863_v31  ;;  %v800_v36 = vmax.f32 %v538_v32, 0.0  ;;  %v864_v37 = vmax.f32 %v698_v33, 0.0  ;;  %v540_v38 = vadd.f32 %v539_v34, %v1367_v51  ;;  %v700_v39 = vadd.f32 %v699_v35, %v1367_v51 }
 0x128   :  { %v543_v40 = vpop.f32.mrf.mxu0  ;;  %v703_v41 = vpop.f32.mrf.mxu1 }
 0x129   :  { %928 = vst [vmem:[%s1884_s3 + $0x130] sm:$0xff] %v800_v36  ;;  %992 = vst [vmem:[%s1884_s3 + $0x330] sm:$0xff] %v864_v37  ;;  %v801_v42 = vmax.f32 %v540_v38, 0.0  ;;  %v865_v43 = vmax.f32 %v700_v39, 0.0  ;;  %v544_v44 = vadd.f32 %v543_v40, %v1365_v50  ;;  %v704_v45 = vadd.f32 %v703_v41, %v1365_v50 }
 0x12a   :  { %v545_v46 = vpop.f32.mrf.mxu0  ;;  %v705_v47 = vpop.f32.mrf.mxu1 }
 0x12b   :  { %929 = vst [vmem:[%s1884_s3 + $0x138] sm:$0xff] %v801_v42  ;;  %993 = vst [vmem:[%s1884_s3 + $0x338] sm:$0xff] %v865_v43  ;;  %v802_v48 = vmax.f32 %v544_v44, 0.0  ;;  %v866_v49 = vmax.f32 %v704_v45, 0.0  ;;  %v546_v52 = vadd.f32 %v545_v46, %v1367_v51  ;;  %v706_v53 = vadd.f32 %v705_v47, %v1367_v51 }
 0x12c   :  { %v547_v54 = vpop.f32.mrf.mxu0  ;;  %v707_v55 = vpop.f32.mrf.mxu1 }
 0x12d   :  { %930 = vst [vmem:[%s1884_s3 + $0x140] sm:$0xff] %v802_v48  ;;  %994 = vst [vmem:[%s1884_s3 + $0x340] sm:$0xff] %v866_v49  ;;  %v803_v56 = vmax.f32 %v546_v52, 0.0  ;;  %v867_v57 = vmax.f32 %v706_v53, 0.0  ;;  %v548_v58 = vadd.f32 %v547_v54, %v1365_v50  ;;  %v708_v59 = vadd.f32 %v707_v55, %v1365_v50 }
 0x12e   :  { %v549_v60 = vpop.f32.mrf.mxu0  ;;  %v709_v61 = vpop.f32.mrf.mxu1 }
 0x12f   :  { %931 = vst [vmem:[%s1884_s3 + $0x148] sm:$0xff] %v803_v56  ;;  %995 = vst [vmem:[%s1884_s3 + $0x348] sm:$0xff] %v867_v57  ;;  %v804_v62 = vmax.f32 %v548_v58, 0.0  ;;  %v868_v63 = vmax.f32 %v708_v59, 0.0  ;;  %v550_v0 = vadd.f32 %v549_v60, %v1367_v51  ;;  %v710_v1 = vadd.f32 %v709_v61, %v1367_v51 }
 0x130   :  { %v553_v2 = vpop.f32.mrf.mxu0  ;;  %v713_v3 = vpop.f32.mrf.mxu1 }
 0x131   :  { %932 = vst [vmem:[%s1884_s3 + $0x150] sm:$0xff] %v804_v62  ;;  %996 = vst [vmem:[%s1884_s3 + $0x350] sm:$0xff] %v868_v63  ;;  %v805_v4 = vmax.f32 %v550_v0, 0.0  ;;  %v869_v5 = vmax.f32 %v710_v1, 0.0  ;;  %v554_v6 = vadd.f32 %v553_v2, %v1365_v50  ;;  %v714_v7 = vadd.f32 %v713_v3, %v1365_v50 }
 0x132   :  { %v555_v8 = vpop.f32.mrf.mxu0  ;;  %v715_v9 = vpop.f32.mrf.mxu1 }
 0x133   :  { %933 = vst [vmem:[%s1884_s3 + $0x158] sm:$0xff] %v805_v4  ;;  %997 = vst [vmem:[%s1884_s3 + $0x358] sm:$0xff] %v869_v5  ;;  %v806_v10 = vmax.f32 %v554_v6, 0.0  ;;  %v870_v11 = vmax.f32 %v714_v7, 0.0  ;;  %v556_v12 = vadd.f32 %v555_v8, %v1367_v51  ;;  %v716_v13 = vadd.f32 %v715_v9, %v1367_v51 }
 0x134   :  { %v557_v14 = vpop.f32.mrf.mxu0  ;;  %v717_v15 = vpop.f32.mrf.mxu1 }
 0x135   :  { %934 = vst [vmem:[%s1884_s3 + $0x160] sm:$0xff] %v806_v10  ;;  %998 = vst [vmem:[%s1884_s3 + $0x360] sm:$0xff] %v870_v11  ;;  %v807_v16 = vmax.f32 %v556_v12, 0.0  ;;  %v871_v17 = vmax.f32 %v716_v13, 0.0  ;;  %v558_v18 = vadd.f32 %v557_v14, %v1365_v50  ;;  %v718_v19 = vadd.f32 %v717_v15, %v1365_v50 }
 0x136   :  { %v559_v20 = vpop.f32.mrf.mxu0  ;;  %v719_v21 = vpop.f32.mrf.mxu1 }
 0x137   :  { %935 = vst [vmem:[%s1884_s3 + $0x168] sm:$0xff] %v807_v16  ;;  %999 = vst [vmem:[%s1884_s3 + $0x368] sm:$0xff] %v871_v17  ;;  %v808_v22 = vmax.f32 %v558_v18, 0.0  ;;  %v872_v23 = vmax.f32 %v718_v19, 0.0  ;;  %v560_v24 = vadd.f32 %v559_v20, %v1367_v51  ;;  %v720_v25 = vadd.f32 %v719_v21, %v1367_v51 }
 0x138   :  { %v563_v26 = vpop.f32.mrf.mxu0  ;;  %v723_v27 = vpop.f32.mrf.mxu1 }
 0x139   :  { %936 = vst [vmem:[%s1884_s3 + $0x170] sm:$0xff] %v808_v22  ;;  %1000 = vst [vmem:[%s1884_s3 + $0x370] sm:$0xff] %v872_v23  ;;  %v809_v28 = vmax.f32 %v560_v24, 0.0  ;;  %v873_v29 = vmax.f32 %v720_v25, 0.0  ;;  %v564_v30 = vadd.f32 %v563_v26, %v1365_v50  ;;  %v724_v31 = vadd.f32 %v723_v27, %v1365_v50 }
 0x13a   :  { %v565_v32 = vpop.f32.mrf.mxu0  ;;  %v725_v33 = vpop.f32.mrf.mxu1 }
 0x13b   :  { %937 = vst [vmem:[%s1884_s3 + $0x178] sm:$0xff] %v809_v28  ;;  %1001 = vst [vmem:[%s1884_s3 + $0x378] sm:$0xff] %v873_v29  ;;  %v810_v34 = vmax.f32 %v564_v30, 0.0  ;;  %v874_v35 = vmax.f32 %v724_v31, 0.0  ;;  %v566_v36 = vadd.f32 %v565_v32, %v1367_v51  ;;  %v726_v37 = vadd.f32 %v725_v33, %v1367_v51 }
 0x13c   :  { %v567_v38 = vpop.f32.mrf.mxu0  ;;  %v727_v39 = vpop.f32.mrf.mxu1 }
 0x13d   :  { %938 = vst [vmem:[%s1884_s3 + $0x180] sm:$0xff] %v810_v34  ;;  %1002 = vst [vmem:[%s1884_s3 + $0x380] sm:$0xff] %v874_v35  ;;  %v811_v40 = vmax.f32 %v566_v36, 0.0  ;;  %v875_v41 = vmax.f32 %v726_v37, 0.0  ;;  %v568_v42 = vadd.f32 %v567_v38, %v1365_v50  ;;  %v728_v43 = vadd.f32 %v727_v39, %v1365_v50 }
 0x13e   :  { %v569_v44 = vpop.f32.mrf.mxu0  ;;  %v729_v45 = vpop.f32.mrf.mxu1 }
 0x13f   :  { %939 = vst [vmem:[%s1884_s3 + $0x188] sm:$0xff] %v811_v40  ;;  %1003 = vst [vmem:[%s1884_s3 + $0x388] sm:$0xff] %v875_v41  ;;  %v812_v46 = vmax.f32 %v568_v42, 0.0  ;;  %v876_v47 = vmax.f32 %v728_v43, 0.0  ;;  %v570_v48 = vadd.f32 %v569_v44, %v1367_v51  ;;  %v730_v49 = vadd.f32 %v729_v45, %v1367_v51 }
 0x140   :  { %v573_v52 = vpop.f32.mrf.mxu0  ;;  %v733_v53 = vpop.f32.mrf.mxu1 }
 0x141   :  { %940 = vst [vmem:[%s1884_s3 + $0x190] sm:$0xff] %v812_v46  ;;  %1004 = vst [vmem:[%s1884_s3 + $0x390] sm:$0xff] %v876_v47  ;;  %v813_v54 = vmax.f32 %v570_v48, 0.0  ;;  %v877_v55 = vmax.f32 %v730_v49, 0.0  ;;  %v574_v56 = vadd.f32 %v573_v52, %v1365_v50  ;;  %v734_v57 = vadd.f32 %v733_v53, %v1365_v50 }
 0x142   :  { %v575_v58 = vpop.f32.mrf.mxu0  ;;  %v735_v59 = vpop.f32.mrf.mxu1 }
 0x143   :  { %941 = vst [vmem:[%s1884_s3 + $0x198] sm:$0xff] %v813_v54  ;;  %1005 = vst [vmem:[%s1884_s3 + $0x398] sm:$0xff] %v877_v55  ;;  %v814_v60 = vmax.f32 %v574_v56, 0.0  ;;  %v878_v61 = vmax.f32 %v734_v57, 0.0  ;;  %v576_v62 = vadd.f32 %v575_v58, %v1367_v51  ;;  %v736_v63 = vadd.f32 %v735_v59, %v1367_v51 }
 0x144   :  { %v577_v0 = vpop.f32.mrf.mxu0  ;;  %v737_v1 = vpop.f32.mrf.mxu1 }
 0x145   :  { %942 = vst [vmem:[%s1884_s3 + $0x1a0] sm:$0xff] %v814_v60  ;;  %1006 = vst [vmem:[%s1884_s3 + $0x3a0] sm:$0xff] %v878_v61  ;;  %v815_v2 = vmax.f32 %v576_v62, 0.0  ;;  %v879_v3 = vmax.f32 %v736_v63, 0.0  ;;  %v578_v4 = vadd.f32 %v577_v0, %v1365_v50  ;;  %v738_v5 = vadd.f32 %v737_v1, %v1365_v50 }
 0x146   :  { %v579_v6 = vpop.f32.mrf.mxu0  ;;  %v739_v7 = vpop.f32.mrf.mxu1 }
 0x147   :  { %943 = vst [vmem:[%s1884_s3 + $0x1a8] sm:$0xff] %v815_v2  ;;  %1007 = vst [vmem:[%s1884_s3 + $0x3a8] sm:$0xff] %v879_v3  ;;  %v816_v8 = vmax.f32 %v578_v4, 0.0  ;;  %v880_v9 = vmax.f32 %v738_v5, 0.0  ;;  %v580_v10 = vadd.f32 %v579_v6, %v1367_v51  ;;  %v740_v11 = vadd.f32 %v739_v7, %v1367_v51 }
 0x148   :  { %v583_v12 = vpop.f32.mrf.mxu0  ;;  %v743_v13 = vpop.f32.mrf.mxu1 }
 0x149   :  { %944 = vst [vmem:[%s1884_s3 + $0x1b0] sm:$0xff] %v816_v8  ;;  %1008 = vst [vmem:[%s1884_s3 + $0x3b0] sm:$0xff] %v880_v9  ;;  %v817_v14 = vmax.f32 %v580_v10, 0.0  ;;  %v881_v15 = vmax.f32 %v740_v11, 0.0  ;;  %v584_v16 = vadd.f32 %v583_v12, %v1365_v50  ;;  %v744_v17 = vadd.f32 %v743_v13, %v1365_v50 }
 0x14a   :  { %v585_v18 = vpop.f32.mrf.mxu0  ;;  %v745_v19 = vpop.f32.mrf.mxu1 }
 0x14b   :  { %945 = vst [vmem:[%s1884_s3 + $0x1b8] sm:$0xff] %v817_v14  ;;  %1009 = vst [vmem:[%s1884_s3 + $0x3b8] sm:$0xff] %v881_v15  ;;  %v818_v20 = vmax.f32 %v584_v16, 0.0  ;;  %v882_v21 = vmax.f32 %v744_v17, 0.0  ;;  %v586_v22 = vadd.f32 %v585_v18, %v1367_v51  ;;  %v746_v23 = vadd.f32 %v745_v19, %v1367_v51 }
 0x14c   :  { %v587_v24 = vpop.f32.mrf.mxu0  ;;  %v747_v25 = vpop.f32.mrf.mxu1 }
 0x14d   :  { %946 = vst [vmem:[%s1884_s3 + $0x1c0] sm:$0xff] %v818_v20  ;;  %1010 = vst [vmem:[%s1884_s3 + $0x3c0] sm:$0xff] %v882_v21  ;;  %v819_v26 = vmax.f32 %v586_v22, 0.0  ;;  %v883_v27 = vmax.f32 %v746_v23, 0.0  ;;  %v588_v28 = vadd.f32 %v587_v24, %v1365_v50  ;;  %v748_v29 = vadd.f32 %v747_v25, %v1365_v50 }
 0x14e   :  { %v589_v30 = vpop.f32.mrf.mxu0  ;;  %v749_v31 = vpop.f32.mrf.mxu1 }
 0x14f   :  { %947 = vst [vmem:[%s1884_s3 + $0x1c8] sm:$0xff] %v819_v26  ;;  %1011 = vst [vmem:[%s1884_s3 + $0x3c8] sm:$0xff] %v883_v27  ;;  %v820_v32 = vmax.f32 %v588_v28, 0.0  ;;  %v884_v33 = vmax.f32 %v748_v29, 0.0  ;;  %v590_v34 = vadd.f32 %v589_v30, %v1367_v51  ;;  %v750_v35 = vadd.f32 %v749_v31, %v1367_v51 }
 0x150   :  { %v593_v36 = vpop.f32.mrf.mxu0  ;;  %v753_v37 = vpop.f32.mrf.mxu1 }
 0x151   :  { %948 = vst [vmem:[%s1884_s3 + $0x1d0] sm:$0xff] %v820_v32  ;;  %1012 = vst [vmem:[%s1884_s3 + $0x3d0] sm:$0xff] %v884_v33  ;;  %v821_v38 = vmax.f32 %v590_v34, 0.0  ;;  %v885_v39 = vmax.f32 %v750_v35, 0.0  ;;  %v594_v40 = vadd.f32 %v593_v36, %v1365_v50  ;;  %v754_v41 = vadd.f32 %v753_v37, %v1365_v50 }
 0x152   :  { %v595_v42 = vpop.f32.mrf.mxu0  ;;  %v755_v43 = vpop.f32.mrf.mxu1 }
 0x153   :  { %949 = vst [vmem:[%s1884_s3 + $0x1d8] sm:$0xff] %v821_v38  ;;  %1013 = vst [vmem:[%s1884_s3 + $0x3d8] sm:$0xff] %v885_v39  ;;  %v822_v44 = vmax.f32 %v594_v40, 0.0  ;;  %v886_v45 = vmax.f32 %v754_v41, 0.0  ;;  %v596_v46 = vadd.f32 %v595_v42, %v1367_v51  ;;  %v756_v47 = vadd.f32 %v755_v43, %v1367_v51 }
 0x154   :  { %v597_v48 = vpop.f32.mrf.mxu0  ;;  %v757_v49 = vpop.f32.mrf.mxu1 }
 0x155   :  { %950 = vst [vmem:[%s1884_s3 + $0x1e0] sm:$0xff] %v822_v44  ;;  %1014 = vst [vmem:[%s1884_s3 + $0x3e0] sm:$0xff] %v886_v45  ;;  %v823_v52 = vmax.f32 %v596_v46, 0.0  ;;  %v887_v53 = vmax.f32 %v756_v47, 0.0  ;;  %v598_v54 = vadd.f32 %v597_v48, %v1365_v50  ;;  %v758_v55 = vadd.f32 %v757_v49, %v1365_v50 }
 0x156   :  { %v599_v56 = vpop.f32.mrf.mxu0  ;;  %v759_v57 = vpop.f32.mrf.mxu1 }
 0x157   :  { %951 = vst [vmem:[%s1884_s3 + $0x1e8] sm:$0xff] %v823_v52  ;;  %1015 = vst [vmem:[%s1884_s3 + $0x3e8] sm:$0xff] %v887_v53  ;;  %v824_v58 = vmax.f32 %v598_v54, 0.0  ;;  %v888_v59 = vmax.f32 %v758_v55, 0.0  ;;  %v600_v60 = vadd.f32 %v599_v56, %v1367_v51  ;;  %v760_v61 = vadd.f32 %v759_v57, %v1367_v51 }
 0x159   :  { %952 = vst [vmem:[%s1884_s3 + $0x1f0] sm:$0xff] %v824_v58  ;;  %1016 = vst [vmem:[%s1884_s3 + $0x3f0] sm:$0xff] %v888_v59  ;;  %v825_v50 = vmax.f32 %v600_v60, 0.0  ;;  %v889_v62 = vmax.f32 %v760_v61, 0.0 }
 0x15b   :  { %953 = vst [vmem:[%s1884_s3 + $0x1f8] sm:$0xff] %v825_v50  ;;  %1017 = vst [vmem:[%s1884_s3 + $0x3f8] sm:$0xff] %v889_v62 }

// kernel: custom-call.2
= control target key start
LH: loop header
LB: loop body
LE: loop exit
PB: predicated region body
PF: predicated region fallthrough
CT: control target
= control target key end

     0   :  { %s92_s0 = inlined_call_operand.vmem [shape: f32[2,2,16,16], index: 0, kind: input, shape index: {}]   ;;  %s93_s1 = inlined_call_operand.vmem [shape: f32[2,2,16,16], index: 1, kind: input, shape index: {}]   ;;  %s94_s2 = inlined_call_operand.hbm [shape: c64[2,2,16,16], index: 2, kind: output, shape index: {}]  }
   0x1   :  { %s3_s11 = scalar_lea.hbm %s94_s2, 1024 }
   0x2   :  { %4 = vsyncpa [#allocation0], 0  ;;  %s5_s14 = sshll.u32 %s92_s0, 4  ;;  %s6_s14 = int_to_ptr.vmem [resolvable:$true] %s5_s14 }
   0x3   :  { %s18_s15 = scalar_lea.vmem %s6_s14, 1024  ;;  %p23_p1 = scmp.lt.s32.totalorder %s6_s14, %s6_s14 }
   0x4   :  { %p19_p0 = scmp.ne.s32.totalorder %s6_s14, %s18_s15  ;;  %p24_p2 = scmp.lt.s32.totalorder %s18_s15, %s18_s15 }
   0x6   :  { %p25_p3 = por %p24_p2, %p23_p1 }
   0x8   :  { %p26_p4 = pnand %p25_p3, %p19_p0 }
   0xa   :  { %29 = shalt.err (!%p26_p4)  }
   0xb   :  { %8 = dma.vmem_to_hbm [thread:$0]  %s6_s14, 1024, %s94_s2, [#allocation0] }
   0xc   :  { %61 = dma.done.wait [#allocation0], 1024  }
   0xd   :  { %62 = vsyncadd [#allocation0], 4294966272 }
   0xe   :  { %10 = vsyncpa [#allocation0], 1 }
   0xf   :  { %11 = vsyncpa [#allocation1], 0  ;;  %s12_s0 = sshll.u32 %s93_s1, 4  ;;  %s13_s0 = int_to_ptr.vmem [resolvable:$true] %s12_s0 }
  0x10   :  { %s38_s20 = scalar_lea.vmem %s13_s0, 1024  ;;  %p43_p6 = scmp.lt.s32.totalorder %s13_s0, %s13_s0 }
  0x11   :  { %p39_p5 = scmp.ne.s32.totalorder %s13_s0, %s38_s20  ;;  %p44_p7 = scmp.lt.s32.totalorder %s38_s20, %s38_s20 }
  0x13   :  { %p45_p8 = por %p44_p7, %p43_p6 }
  0x15   :  { %p46_p9 = pnand %p45_p8, %p39_p5 }
  0x17   :  { %49 = shalt.err (!%p46_p9)  }
  0x18   :  { %15 = dma.vmem_to_hbm [thread:$0]  %s13_s0, 1024, %s3_s11, [#allocation1] }
  0x19   :  { %63 = dma.done.wait [#allocation1], 1024  }
  0x1a   :  { %64 = vsyncadd [#allocation1], 4294966272 }
  0x1b   :  { %17 = vsyncpa [#allocation1], 1 }

// kernel: _lambda_.15
= control target key start
LH: loop header
LB: loop body
LE: loop exit
PB: predicated region body
PF: predicated region fallthrough
CT: control target
= control target key end

     0   :  { %vm529_vm0 = vcmask 588800   ;;  %vm626_vm1 = vcmask 1043456   ;;  %s2239_s1 = inlined_call_operand.vmem [shape: bf16[200,256], index: 1, kind: input, shape index: {}]   ;;  %s2240_s0 = inlined_call_operand.vmem [shape: bf16[512,200], index: 0, kind: input, shape index: {}]   ;;  %s2241_s2 = inlined_call_operand.vmem [shape: f32[1,256], index: 2, kind: input, shape index: {}]   ;;  %s2242_s3 = inlined_call_operand.vmem [shape: f32[512,256], index: 3, kind: output, shape index: {}]  }
   0x1   :  { %v1267_v0 = vld [vmem:[%s2239_s1 + $0x74] ss:$8 sps:$4 sm:$0xff]   ;;  %v1269_v1 = vld [vmem:[%s2239_s1 + $0x70] ss:$8 sps:$4 sm:$0xff]   ;;  %v1270_v2 = vld [vmem:[%s2239_s1 + $0x64] ss:$8 sps:$4 sm:$0xff]  }
   0x2   :  { %633 = vmatprep.subr.bf16.mxu0 %v1267_v0  ;;  %1241 = vmatprep.subr.bf16.mxu1 %v1267_v0  ;;  %v1272_v3 = vld [vmem:[%s2239_s1 + $0x60] ss:$8 sps:$4 sm:$0xff]   ;;  %v1273_v4 = vld [vmem:[%s2239_s1 + $0x54] ss:$8 sps:$4 sm:$0xff]   ;;  %v1275_v5 = vld [vmem:[%s2239_s1 + $0x50] ss:$8 sps:$4 sm:$0xff]  }
   0x3   :  { %634 = vmatpush1.bf16.msra.mxu0 %v1269_v1  ;;  %1254 = vmatpush1.bf16.msra.mxu1 %v1269_v1  ;;  %v1276_v6 = vld [vmem:[%s2239_s1 + $0x44] ss:$8 sps:$4 sm:$0xff]   ;;  %v1278_v7 = vld [vmem:[%s2239_s1 + $0x40] ss:$8 sps:$4 sm:$0xff]   ;;  %v1279_v8 = vld [vmem:[%s2239_s1 + $0x34] ss:$8 sps:$4 sm:$0xff]  }
   0x4   :  { %635 = vmatprep.subr.bf16.mxu0 %v1270_v2  ;;  %1242 = vmatprep.subr.bf16.mxu1 %v1270_v2  ;;  %v1281_v9 = vld [vmem:[%s2239_s1 + $0x30] ss:$8 sps:$4 sm:$0xff]   ;;  %v1282_v10 = vld [vmem:[%s2239_s1 + $0x24] ss:$8 sps:$4 sm:$0xff]   ;;  %v1284_v13 = vld [vmem:[%s2239_s1 + $0x20] ss:$8 sps:$4 sm:$0xff]  }
   0x5   :  { %v1307_v11 = vld [vmem:[%s2240_s0 + $0x4] ss:$8 sps:$4 sm:$0xff]   ;;  %v1285_v14 = vld [vmem:[%s2239_s1 + $0x14] ss:$8 sps:$4 sm:$0xff]   ;;  %v1287_v15 = vld [vmem:[%s2239_s1 + $0x10] ss:$8 sps:$4 sm:$0xff]  }
   0x6   :  { %v1310_v12 = vld [vmem:[%s2240_s0 + $0x104] ss:$8 sps:$4 sm:$0xff]   ;;  %1209 = vmatprep.mubr.msk.bf16.mxu0 %vm529_vm0, %v1307_v11  ;;  %v1290_v18 = vld [vmem:[%s2239_s1] ss:$8 sps:$4 sm:$0xff]   ;;  %v1293_v22 = vld [vmem:[%s2239_s1 + $0xb4] ss:$8 sps:$4 sm:$0xff]  }
   0x7   :  { %636 = vmatpush1.bf16.msra.mxu0 %v1272_v3  ;;  %1255 = vmatpush1.bf16.msra.mxu1 %v1272_v3  ;;  %v1288_v16 = vld [vmem:[%s2239_s1 + $0x4] ss:$8 sps:$4 sm:$0xff]   ;;  %v1295_v23 = vld [vmem:[%s2239_s1 + $0xb0] ss:$8 sps:$4 sm:$0xff]   ;;  %v1298_v25 = vld [vmem:[%s2239_s1 + $0xa0] ss:$8 sps:$4 sm:$0xff]  }
   0x8   :  { %637 = vmatprep.subr.bf16.mxu0 %v1273_v4  ;;  %1243 = vmatprep.subr.bf16.mxu1 %v1273_v4  ;;  %v103_v17 = vld [vmem:[%s2239_s1 + $0xc0] sm:$0xff]  ;;  %v1299_v26 = vld [vmem:[%s2239_s1 + $0x94] ss:$8 sps:$4 sm:$0xff]   ;;  %v1301_v27 = vld [vmem:[%s2239_s1 + $0x90] ss:$8 sps:$4 sm:$0xff]  }
   0x9   :  { %1225 = vmatprep.mubr.msk.bf16.mxu1 %vm529_vm0, %v1310_v12  ;;  %v1207_v19 = vcombine.high %v103_v17, %v103_v17  ;;  %v1206_v20 = vcombine.low %v103_v17, %v103_v17  ;;  %v1296_v24 = vld [vmem:[%s2239_s1 + $0xa4] ss:$8 sps:$4 sm:$0xff]   ;;  %v1304_v29 = vld [vmem:[%s2239_s1 + $0x80] ss:$8 sps:$4 sm:$0xff]   ;;  %v1311_v32 = vld [vmem:[%s2240_s0 + $0x14] ss:$8 sps:$4 sm:$0xff]  }
   0xa   :  { %v1302_v28 = vld [vmem:[%s2239_s1 + $0x84] ss:$8 sps:$4 sm:$0xff]   ;;  %v1305_v30 = vld [vmem:[%s2240_s0] ss:$8 sps:$4 sm:$0xff]   ;;  %v1313_v33 = vld [vmem:[%s2240_s0 + $0x114] ss:$8 sps:$4 sm:$0xff]  }
   0xb   :  { %638 = vmatpush1.bf16.msra.mxu0 %v1275_v5  ;;  %1256 = vmatpush1.bf16.msra.mxu1 %v1275_v5  ;;  %v628_v21 = vsel %vm626_vm1, %v1206_v20, 0  ;;  %v1308_v31 = vld [vmem:[%s2240_s0 + $0x100] ss:$8 sps:$4 sm:$0xff]   ;;  %v1315_v34 = vld [vmem:[%s2240_s0 + $0x10] ss:$8 sps:$4 sm:$0xff]  }
   0xc   :  { %639 = vmatprep.subr.bf16.mxu0 %v1276_v6  ;;  %1244 = vmatprep.subr.bf16.mxu1 %v1276_v6  ;;  %v1316_v35 = vld [vmem:[%s2240_s0 + $0x110] ss:$8 sps:$4 sm:$0xff]   ;;  %v1317_v36 = vld [vmem:[%s2240_s0 + $0x24] ss:$8 sps:$4 sm:$0xff]   ;;  %v1321_v38 = vld [vmem:[%s2240_s0 + $0x20] ss:$8 sps:$4 sm:$0xff]  }
   0xd   :  { %v1319_v37 = vld [vmem:[%s2240_s0 + $0x124] ss:$8 sps:$4 sm:$0xff]   ;;  %v1322_v39 = vld [vmem:[%s2240_s0 + $0x120] ss:$8 sps:$4 sm:$0xff]   ;;  %v1323_v40 = vld [vmem:[%s2240_s0 + $0x34] ss:$8 sps:$4 sm:$0xff]  }
   0xe   :  { %v1325_v41 = vld [vmem:[%s2240_s0 + $0x134] ss:$8 sps:$4 sm:$0xff]   ;;  %v1327_v42 = vld [vmem:[%s2240_s0 + $0x30] ss:$8 sps:$4 sm:$0xff]   ;;  %v1329_v44 = vld [vmem:[%s2240_s0 + $0x44] ss:$8 sps:$4 sm:$0xff]  }
   0xf   :  { %640 = vmatpush1.bf16.msra.mxu0 %v1278_v7  ;;  %1257 = vmatpush1.bf16.msra.mxu1 %v1278_v7  ;;  %v1328_v43 = vld [vmem:[%s2240_s0 + $0x130] ss:$8 sps:$4 sm:$0xff]   ;;  %v1331_v45 = vld [vmem:[%s2240_s0 + $0x144] ss:$8 sps:$4 sm:$0xff]   ;;  %v1333_v46 = vld [vmem:[%s2240_s0 + $0x40] ss:$8 sps:$4 sm:$0xff]  }
  0x10   :  { %641 = vmatprep.subr.bf16.mxu0 %v1279_v8  ;;  %1245 = vmatprep.subr.bf16.mxu1 %v1279_v8  ;;  %v1334_v47 = vld [vmem:[%s2240_s0 + $0x140] ss:$8 sps:$4 sm:$0xff]   ;;  %v1335_v48 = vld [vmem:[%s2240_s0 + $0x54] ss:$8 sps:$4 sm:$0xff]   ;;  %v1339_v50 = vld [vmem:[%s2240_s0 + $0x50] ss:$8 sps:$4 sm:$0xff]  }
  0x11   :  { %v1337_v49 = vld [vmem:[%s2240_s0 + $0x154] ss:$8 sps:$4 sm:$0xff]   ;;  %v1340_v51 = vld [vmem:[%s2240_s0 + $0x150] ss:$8 sps:$4 sm:$0xff]   ;;  %v1341_v52 = vld [vmem:[%s2240_s0 + $0x64] ss:$8 sps:$4 sm:$0xff]  }
  0x12   :  { %v1343_v53 = vld [vmem:[%s2240_s0 + $0x164] ss:$8 sps:$4 sm:$0xff]   ;;  %v1345_v54 = vld [vmem:[%s2240_s0 + $0x60] ss:$8 sps:$4 sm:$0xff]   ;;  %v1347_v56 = vld [vmem:[%s2240_s0 + $0x74] ss:$8 sps:$4 sm:$0xff]  }
  0x13   :  { %642 = vmatpush1.bf16.msra.mxu0 %v1281_v9  ;;  %1258 = vmatpush1.bf16.msra.mxu1 %v1281_v9  ;;  %v1346_v55 = vld [vmem:[%s2240_s0 + $0x160] ss:$8 sps:$4 sm:$0xff]   ;;  %v1349_v57 = vld [vmem:[%s2240_s0 + $0x174] ss:$8 sps:$4 sm:$0xff]   ;;  %v1351_v58 = vld [vmem:[%s2240_s0 + $0x70] ss:$8 sps:$4 sm:$0xff]  }
  0x14   :  { %643 = vmatprep.subr.bf16.mxu0 %v1282_v10  ;;  %1246 = vmatprep.subr.bf16.mxu1 %v1282_v10  ;;  %v1352_v59 = vld [vmem:[%s2240_s0 + $0x170] ss:$8 sps:$4 sm:$0xff]   ;;  %v1353_v60 = vld [vmem:[%s2240_s0 + $0x84] ss:$8 sps:$4 sm:$0xff]   ;;  %v1357_v62 = vld [vmem:[%s2240_s0 + $0x80] ss:$8 sps:$4 sm:$0xff]  }
  0x15   :  { %v1355_v61 = vld [vmem:[%s2240_s0 + $0x184] ss:$8 sps:$4 sm:$0xff]   ;;  %v1358_v63 = vld [vmem:[%s2240_s0 + $0x180] ss:$8 sps:$4 sm:$0xff]   ;;  %v1359_v0 = vld [vmem:[%s2240_s0 + $0x94] ss:$8 sps:$4 sm:$0xff]  }
  0x16   :  { %v1361_v1 = vld [vmem:[%s2240_s0 + $0x194] ss:$8 sps:$4 sm:$0xff]   ;;  %v1363_v2 = vld [vmem:[%s2240_s0 + $0x90] ss:$8 sps:$4 sm:$0xff]   ;;  %v1365_v4 = vld [vmem:[%s2240_s0 + $0xa4] ss:$8 sps:$4 sm:$0xff]  }
  0x17   :  { %644 = vmatpush1.bf16.msra.mxu0 %v1284_v13  ;;  %1259 = vmatpush1.bf16.msra.mxu1 %v1284_v13  ;;  %v1364_v3 = vld [vmem:[%s2240_s0 + $0x190] ss:$8 sps:$4 sm:$0xff]   ;;  %v1367_v5 = vld [vmem:[%s2240_s0 + $0x1a4] ss:$8 sps:$4 sm:$0xff]   ;;  %v1369_v6 = vld [vmem:[%s2240_s0 + $0xa0] ss:$8 sps:$4 sm:$0xff]  }
  0x18   :  { %645 = vmatprep.subr.bf16.mxu0 %v1285_v14  ;;  %1247 = vmatprep.subr.bf16.mxu1 %v1285_v14  ;;  %v1370_v7 = vld [vmem:[%s2240_s0 + $0x1a0] ss:$8 sps:$4 sm:$0xff]   ;;  %v1371_v8 = vld [vmem:[%s2240_s0 + $0xb4] ss:$8 sps:$4 sm:$0xff]   ;;  %v1375_v10 = vld [vmem:[%s2240_s0 + $0xb0] ss:$8 sps:$4 sm:$0xff]  }
  0x19   :  { %v1373_v9 = vld [vmem:[%s2240_s0 + $0x1b4] ss:$8 sps:$4 sm:$0xff]   ;;  %v1376_v11 = vld [vmem:[%s2240_s0 + $0x1b0] ss:$8 sps:$4 sm:$0xff]   ;;  %v1377_v12 = vld [vmem:[%s2240_s0 + $0xc4] ss:$8 sps:$4 sm:$0xff]  }
  0x1a   :  { %v1379_v13 = vld [vmem:[%s2240_s0 + $0x1c4] ss:$8 sps:$4 sm:$0xff]   ;;  %v1381_v14 = vld [vmem:[%s2240_s0 + $0xc0] ss:$8 sps:$4 sm:$0xff]   ;;  %v1385_v17 = vld [vmem:[%s2240_s0 + $0x1d4] ss:$8 sps:$4 sm:$0xff]  }
  0x1b   :  { %646 = vmatpush1.bf16.msra.mxu0 %v1287_v15  ;;  %1260 = vmatpush1.bf16.msra.mxu1 %v1287_v15  ;;  %v1382_v15 = vld [vmem:[%s2240_s0 + $0x1c0] ss:$8 sps:$4 sm:$0xff]   ;;  %v1389_v20 = vld [vmem:[%s2240_s0 + $0xe4] ss:$8 sps:$4 sm:$0xff]  }
  0x1c   :  { %647 = vmatprep.subr.bf16.mxu0 %v1288_v16  ;;  %1248 = vmatprep.subr.bf16.mxu1 %v1288_v16  ;;  %v1383_v16 = vld [vmem:[%s2240_s0 + $0xd4] ss:$8 sps:$4 sm:$0xff]  }
  0x1f   :  { %648 = vmatpush1.bf16.msra.mxu0 %v1290_v18  ;;  %1261 = vmatpush1.bf16.msra.mxu1 %v1290_v18  ;;  %v1387_v18 = vld [vmem:[%s2240_s0 + $0xd0] ss:$8 sps:$4 sm:$0xff]  }
  0x20   :  { %1208 = vmatprep.subr.msk.bf16.mxu0 %vm626_vm1, %v1207_v19  ;;  %1249 = vmatprep.subr.msk.bf16.mxu1 %vm626_vm1, %v1207_v19  ;;  %v1388_v19 = vld [vmem:[%s2240_s0 + $0x1d0] ss:$8 sps:$4 sm:$0xff]  }
  0x23   :  { %656 = vmatpush2.bf16.msra.mxu0 %v628_v21  ;;  %1262 = vmatpush2.bf16.msra.mxu1 %v628_v21  ;;  %v1391_v21 = vld [vmem:[%s2240_s0 + $0x1e4] ss:$8 sps:$4 sm:$0xff]  }
  0x24   :  { %657 = vmatprep.subr.bf16.mxu0 %v1293_v22  ;;  %1250 = vmatprep.subr.bf16.mxu1 %v1293_v22  ;;  %v1393_v22 = vld [vmem:[%s2240_s0 + $0xe0] ss:$8 sps:$4 sm:$0xff]  }
  0x27   :  { %658 = vmatpush2.bf16.msra.mxu0 %v1295_v23  ;;  %1263 = vmatpush2.bf16.msra.mxu1 %v1295_v23  ;;  %v1394_v23 = vld [vmem:[%s2240_s0 + $0x1e0] ss:$8 sps:$4 sm:$0xff]  }
  0x28   :  { %659 = vmatprep.subr.bf16.mxu0 %v1296_v24  ;;  %1251 = vmatprep.subr.bf16.mxu1 %v1296_v24  ;;  %v1395_v24 = vld [vmem:[%s2240_s0 + $0xf4] ss:$8 sps:$4 sm:$0xff]  }
  0x2b   :  { %660 = vmatpush2.bf16.msra.mxu0 %v1298_v25  ;;  %1264 = vmatpush2.bf16.msra.mxu1 %v1298_v25  ;;  %v1397_v25 = vld [vmem:[%s2240_s0 + $0x1f4] ss:$8 sps:$4 sm:$0xff]  }
  0x2c   :  { %661 = vmatprep.subr.bf16.mxu0 %v1299_v26  ;;  %1252 = vmatprep.subr.bf16.mxu1 %v1299_v26  ;;  %v1399_v26 = vld [vmem:[%s2240_s0 + $0xf0] ss:$8 sps:$4 sm:$0xff]  }
  0x2f   :  { %662 = vmatpush2.bf16.msra.mxu0 %v1301_v27  ;;  %1265 = vmatpush2.bf16.msra.mxu1 %v1301_v27  ;;  %v1400_v27 = vld [vmem:[%s2240_s0 + $0x1f0] ss:$8 sps:$4 sm:$0xff]  }
  0x30   :  { %663 = vmatprep.subr.bf16.mxu0 %v1302_v28  ;;  %1253 = vmatprep.subr.bf16.mxu1 %v1302_v28  ;;  %v106_v28 = vlaneseq }
  0x33   :  { %664 = vmatpush2.bf16.msra.mxu0 %v1304_v29  ;;  %1266 = vmatpush2.bf16.msra.mxu1 %v1304_v29  ;;  %v107_v29 = vshrl.u32 %v106_v28, 7 }
  0x36   :  { %666 = vmatmul.mubr.bf16.vlgmr.msra.gmra.mxu0 %v1305_v30  ;;  %826 = vmatmul.mubr.bf16.vlgmr.msra.gmra.mxu1 %v1308_v31  ;;  %v108_v30 = vsub.s32 0, %v107_v29  ;;  %v104_v31 = vld [vmem:[%s2241_s2] sm:$0x3] }
  0x37   :  { %1210 = vmatprep.mubr.msk.bf16.mxu0 %vm529_vm0, %v1311_v32  ;;  %1226 = vmatprep.mubr.msk.bf16.mxu1 %vm529_vm0, %v1313_v33  ;;  %v112_v32 = vsub.s32 1, %v107_v29 }
  0x38   :  { %v1723_v33 = vrot.slane %v104_v31, %v108_v30 }
  0x3e   :  { %676 = vmatmul.mubr.bf16.gmra.mxu0 %v1315_v34  ;;  %836 = vmatmul.mubr.bf16.gmra.mxu1 %v1316_v35  ;;  %v1725_v34 = vrot.slane %v104_v31, %v112_v32 }
  0x3f   :  { %1211 = vmatprep.mubr.msk.bf16.mxu0 %vm529_vm0, %v1317_v36  ;;  %1227 = vmatprep.mubr.msk.bf16.mxu1 %vm529_vm0, %v1319_v37 }
  0x46   :  { %686 = vmatmul.mubr.bf16.gmra.mxu0 %v1321_v38  ;;  %846 = vmatmul.mubr.bf16.gmra.mxu1 %v1322_v39 }
  0x47   :  { %1212 = vmatprep.mubr.msk.bf16.mxu0 %vm529_vm0, %v1323_v40  ;;  %1228 = vmatprep.mubr.msk.bf16.mxu1 %vm529_vm0, %v1325_v41 }
  0x4e   :  { %696 = vmatmul.mubr.bf16.gmra.mxu0 %v1327_v42  ;;  %856 = vmatmul.mubr.bf16.gmra.mxu1 %v1328_v43 }
  0x4f   :  { %1213 = vmatprep.mubr.msk.bf16.mxu0 %vm529_vm0, %v1329_v44  ;;  %1229 = vmatprep.mubr.msk.bf16.mxu1 %vm529_vm0, %v1331_v45 }
  0x56   :  { %706 = vmatmul.mubr.bf16.gmra.mxu0 %v1333_v46  ;;  %866 = vmatmul.mubr.bf16.gmra.mxu1 %v1334_v47 }
  0x57   :  { %1214 = vmatprep.mubr.msk.bf16.mxu0 %vm529_vm0, %v1335_v48  ;;  %1230 = vmatprep.mubr.msk.bf16.mxu1 %vm529_vm0, %v1337_v49 }
  0x5e   :  { %716 = vmatmul.mubr.bf16.gmra.mxu0 %v1339_v50  ;;  %876 = vmatmul.mubr.bf16.gmra.mxu1 %v1340_v51 }
  0x5f   :  { %1215 = vmatprep.mubr.msk.bf16.mxu0 %vm529_vm0, %v1341_v52  ;;  %1231 = vmatprep.mubr.msk.bf16.mxu1 %vm529_vm0, %v1343_v53 }
  0x66   :  { %726 = vmatmul.mubr.bf16.gmra.mxu0 %v1345_v54  ;;  %886 = vmatmul.mubr.bf16.gmra.mxu1 %v1346_v55 }
  0x67   :  { %1216 = vmatprep.mubr.msk.bf16.mxu0 %vm529_vm0, %v1347_v56  ;;  %1232 = vmatprep.mubr.msk.bf16.mxu1 %vm529_vm0, %v1349_v57 }
  0x6e   :  { %736 = vmatmul.mubr.bf16.gmra.mxu0 %v1351_v58  ;;  %896 = vmatmul.mubr.bf16.gmra.mxu1 %v1352_v59 }
  0x6f   :  { %1217 = vmatprep.mubr.msk.bf16.mxu0 %vm529_vm0, %v1353_v60  ;;  %1233 = vmatprep.mubr.msk.bf16.mxu1 %vm529_vm0, %v1355_v61 }
  0x76   :  { %746 = vmatmul.mubr.bf16.gmra.mxu0 %v1357_v62  ;;  %906 = vmatmul.mubr.bf16.gmra.mxu1 %v1358_v63 }
  0x77   :  { %1218 = vmatprep.mubr.msk.bf16.mxu0 %vm529_vm0, %v1359_v0  ;;  %1234 = vmatprep.mubr.msk.bf16.mxu1 %vm529_vm0, %v1361_v1 }
  0x7e   :  { %756 = vmatmul.mubr.bf16.gmra.mxu0 %v1363_v2  ;;  %916 = vmatmul.mubr.bf16.gmra.mxu1 %v1364_v3 }
  0x7f   :  { %1219 = vmatprep.mubr.msk.bf16.mxu0 %vm529_vm0, %v1365_v4  ;;  %1235 = vmatprep.mubr.msk.bf16.mxu1 %vm529_vm0, %v1367_v5 }
  0x86   :  { %766 = vmatmul.mubr.bf16.gmra.mxu0 %v1369_v6  ;;  %926 = vmatmul.mubr.bf16.gmra.mxu1 %v1370_v7 }
  0x87   :  { %1220 = vmatprep.mubr.msk.bf16.mxu0 %vm529_vm0, %v1371_v8  ;;  %1236 = vmatprep.mubr.msk.bf16.mxu1 %vm529_vm0, %v1373_v9 }
  0x8e   :  { %776 = vmatmul.mubr.bf16.gmra.mxu0 %v1375_v10  ;;  %936 = vmatmul.mubr.bf16.gmra.mxu1 %v1376_v11 }
  0x8f   :  { %1221 = vmatprep.mubr.msk.bf16.mxu0 %vm529_vm0, %v1377_v12  ;;  %1237 = vmatprep.mubr.msk.bf16.mxu1 %vm529_vm0, %v1379_v13 }
  0x96   :  { %786 = vmatmul.mubr.bf16.gmra.mxu0 %v1381_v14  ;;  %946 = vmatmul.mubr.bf16.gmra.mxu1 %v1382_v15 }
  0x97   :  { %1222 = vmatprep.mubr.msk.bf16.mxu0 %vm529_vm0, %v1383_v16  ;;  %1238 = vmatprep.mubr.msk.bf16.mxu1 %vm529_vm0, %v1385_v17 }
  0x9e   :  { %796 = vmatmul.mubr.bf16.gmra.mxu0 %v1387_v18  ;;  %956 = vmatmul.mubr.bf16.gmra.mxu1 %v1388_v19 }
  0x9f   :  { %1223 = vmatprep.mubr.msk.bf16.mxu0 %vm529_vm0, %v1389_v20  ;;  %1239 = vmatprep.mubr.msk.bf16.mxu1 %vm529_vm0, %v1391_v21 }
  0xa6   :  { %806 = vmatmul.mubr.bf16.gmra.mxu0 %v1393_v22  ;;  %966 = vmatmul.mubr.bf16.gmra.mxu1 %v1394_v23 }
  0xa7   :  { %1224 = vmatprep.mubr.msk.bf16.mxu0 %vm529_vm0, %v1395_v24  ;;  %1240 = vmatprep.mubr.msk.bf16.mxu1 %vm529_vm0, %v1397_v25 }
  0xae   :  { %816 = vmatmul.mubr.bf16.gmra.mxu0 %v1399_v26  ;;  %976 = vmatmul.mubr.bf16.gmra.mxu1 %v1400_v27 }
  0xf6   :  { %v667_v35 = vpop.f32.mrf.mxu0  ;;  %v827_v36 = vpop.f32.mrf.mxu1 }
  0xf7   :  { %v668_v37 = vadd.f32 %v667_v35, %v1723_v33  ;;  %v828_v38 = vadd.f32 %v827_v36, %v1723_v33 }
  0xf8   :  { %v669_v39 = vpop.f32.mrf.mxu0  ;;  %v829_v40 = vpop.f32.mrf.mxu1 }
  0xf9   :  { %986 = vst [vmem:[%s2242_s3] sm:$0xff] %v668_v37  ;;  %1050 = vst [vmem:[%s2242_s3 + $0x200] sm:$0xff] %v828_v38  ;;  %v670_v41 = vadd.f32 %v669_v39, %v1725_v34  ;;  %v830_v42 = vadd.f32 %v829_v40, %v1725_v34 }
  0xfa   :  { %v671_v43 = vpop.f32.mrf.mxu0  ;;  %v831_v44 = vpop.f32.mrf.mxu1 }
  0xfb   :  { %987 = vst [vmem:[%s2242_s3 + $0x8] sm:$0xff] %v670_v41  ;;  %1051 = vst [vmem:[%s2242_s3 + $0x208] sm:$0xff] %v830_v42  ;;  %v672_v45 = vadd.f32 %v671_v43, %v1723_v33  ;;  %v832_v46 = vadd.f32 %v831_v44, %v1723_v33 }
  0xfc   :  { %v673_v47 = vpop.f32.mrf.mxu0  ;;  %v833_v48 = vpop.f32.mrf.mxu1 }
  0xfd   :  { %988 = vst [vmem:[%s2242_s3 + $0x10] sm:$0xff] %v672_v45  ;;  %1052 = vst [vmem:[%s2242_s3 + $0x210] sm:$0xff] %v832_v46  ;;  %v674_v49 = vadd.f32 %v673_v47, %v1725_v34  ;;  %v834_v50 = vadd.f32 %v833_v48, %v1725_v34 }
  0xfe   :  { %v677_v51 = vpop.f32.mrf.mxu0  ;;  %v837_v52 = vpop.f32.mrf.mxu1 }
  0xff   :  { %989 = vst [vmem:[%s2242_s3 + $0x18] sm:$0xff] %v674_v49  ;;  %1053 = vst [vmem:[%s2242_s3 + $0x218] sm:$0xff] %v834_v50  ;;  %v678_v53 = vadd.f32 %v677_v51, %v1723_v33  ;;  %v838_v54 = vadd.f32 %v837_v52, %v1723_v33 }
 0x100   :  { %v679_v55 = vpop.f32.mrf.mxu0  ;;  %v839_v56 = vpop.f32.mrf.mxu1 }
 0x101   :  { %990 = vst [vmem:[%s2242_s3 + $0x20] sm:$0xff] %v678_v53  ;;  %1054 = vst [vmem:[%s2242_s3 + $0x220] sm:$0xff] %v838_v54  ;;  %v680_v57 = vadd.f32 %v679_v55, %v1725_v34  ;;  %v840_v58 = vadd.f32 %v839_v56, %v1725_v34 }
 0x102   :  { %v681_v59 = vpop.f32.mrf.mxu0  ;;  %v841_v60 = vpop.f32.mrf.mxu1 }
 0x103   :  { %991 = vst [vmem:[%s2242_s3 + $0x28] sm:$0xff] %v680_v57  ;;  %1055 = vst [vmem:[%s2242_s3 + $0x228] sm:$0xff] %v840_v58  ;;  %v682_v61 = vadd.f32 %v681_v59, %v1723_v33  ;;  %v842_v62 = vadd.f32 %v841_v60, %v1723_v33 }
 0x104   :  { %v683_v63 = vpop.f32.mrf.mxu0  ;;  %v843_v0 = vpop.f32.mrf.mxu1 }
 0x105   :  { %992 = vst [vmem:[%s2242_s3 + $0x30] sm:$0xff] %v682_v61  ;;  %1056 = vst [vmem:[%s2242_s3 + $0x230] sm:$0xff] %v842_v62  ;;  %v684_v1 = vadd.f32 %v683_v63, %v1725_v34  ;;  %v844_v2 = vadd.f32 %v843_v0, %v1725_v34 }
 0x106   :  { %v687_v3 = vpop.f32.mrf.mxu0  ;;  %v847_v4 = vpop.f32.mrf.mxu1 }
 0x107   :  { %993 = vst [vmem:[%s2242_s3 + $0x38] sm:$0xff] %v684_v1  ;;  %1057 = vst [vmem:[%s2242_s3 + $0x238] sm:$0xff] %v844_v2  ;;  %v688_v5 = vadd.f32 %v687_v3, %v1723_v33  ;;  %v848_v6 = vadd.f32 %v847_v4, %v1723_v33 }
 0x108   :  { %v689_v7 = vpop.f32.mrf.mxu0  ;;  %v849_v8 = vpop.f32.mrf.mxu1 }
 0x109   :  { %994 = vst [vmem:[%s2242_s3 + $0x40] sm:$0xff] %v688_v5  ;;  %1058 = vst [vmem:[%s2242_s3 + $0x240] sm:$0xff] %v848_v6  ;;  %v690_v9 = vadd.f32 %v689_v7, %v1725_v34  ;;  %v850_v10 = vadd.f32 %v849_v8, %v1725_v34 }
 0x10a   :  { %v691_v11 = vpop.f32.mrf.mxu0  ;;  %v851_v12 = vpop.f32.mrf.mxu1 }
 0x10b   :  { %995 = vst [vmem:[%s2242_s3 + $0x48] sm:$0xff] %v690_v9  ;;  %1059 = vst [vmem:[%s2242_s3 + $0x248] sm:$0xff] %v850_v10  ;;  %v692_v13 = vadd.f32 %v691_v11, %v1723_v33  ;;  %v852_v14 = vadd.f32 %v851_v12, %v1723_v33 }
 0x10c   :  { %v693_v15 = vpop.f32.mrf.mxu0  ;;  %v853_v16 = vpop.f32.mrf.mxu1 }
 0x10d   :  { %996 = vst [vmem:[%s2242_s3 + $0x50] sm:$0xff] %v692_v13  ;;  %1060 = vst [vmem:[%s2242_s3 + $0x250] sm:$0xff] %v852_v14  ;;  %v694_v17 = vadd.f32 %v693_v15, %v1725_v34  ;;  %v854_v18 = vadd.f32 %v853_v16, %v1725_v34 }
 0x10e   :  { %v697_v19 = vpop.f32.mrf.mxu0  ;;  %v857_v20 = vpop.f32.mrf.mxu1 }
 0x10f   :  { %997 = vst [vmem:[%s2242_s3 + $0x58] sm:$0xff] %v694_v17  ;;  %1061 = vst [vmem:[%s2242_s3 + $0x258] sm:$0xff] %v854_v18  ;;  %v698_v21 = vadd.f32 %v697_v19, %v1723_v33  ;;  %v858_v22 = vadd.f32 %v857_v20, %v1723_v33 }
 0x110   :  { %v699_v23 = vpop.f32.mrf.mxu0  ;;  %v859_v24 = vpop.f32.mrf.mxu1 }
 0x111   :  { %998 = vst [vmem:[%s2242_s3 + $0x60] sm:$0xff] %v698_v21  ;;  %1062 = vst [vmem:[%s2242_s3 + $0x260] sm:$0xff] %v858_v22  ;;  %v700_v25 = vadd.f32 %v699_v23, %v1725_v34  ;;  %v860_v26 = vadd.f32 %v859_v24, %v1725_v34 }
 0x112   :  { %v701_v27 = vpop.f32.mrf.mxu0  ;;  %v861_v28 = vpop.f32.mrf.mxu1 }
 0x113   :  { %999 = vst [vmem:[%s2242_s3 + $0x68] sm:$0xff] %v700_v25  ;;  %1063 = vst [vmem:[%s2242_s3 + $0x268] sm:$0xff] %v860_v26  ;;  %v702_v29 = vadd.f32 %v701_v27, %v1723_v33  ;;  %v862_v30 = vadd.f32 %v861_v28, %v1723_v33 }
 0x114   :  { %v703_v31 = vpop.f32.mrf.mxu0  ;;  %v863_v32 = vpop.f32.mrf.mxu1 }
 0x115   :  { %1000 = vst [vmem:[%s2242_s3 + $0x70] sm:$0xff] %v702_v29  ;;  %1064 = vst [vmem:[%s2242_s3 + $0x270] sm:$0xff] %v862_v30  ;;  %v704_v35 = vadd.f32 %v703_v31, %v1725_v34  ;;  %v864_v36 = vadd.f32 %v863_v32, %v1725_v34 }
 0x116   :  { %v707_v37 = vpop.f32.mrf.mxu0  ;;  %v867_v38 = vpop.f32.mrf.mxu1 }
 0x117   :  { %1001 = vst [vmem:[%s2242_s3 + $0x78] sm:$0xff] %v704_v35  ;;  %1065 = vst [vmem:[%s2242_s3 + $0x278] sm:$0xff] %v864_v36  ;;  %v708_v39 = vadd.f32 %v707_v37, %v1723_v33  ;;  %v868_v40 = vadd.f32 %v867_v38, %v1723_v33 }
 0x118   :  { %v709_v41 = vpop.f32.mrf.mxu0  ;;  %v869_v42 = vpop.f32.mrf.mxu1 }
 0x119   :  { %1002 = vst [vmem:[%s2242_s3 + $0x80] sm:$0xff] %v708_v39  ;;  %1066 = vst [vmem:[%s2242_s3 + $0x280] sm:$0xff] %v868_v40  ;;  %v710_v43 = vadd.f32 %v709_v41, %v1725_v34  ;;  %v870_v44 = vadd.f32 %v869_v42, %v1725_v34 }
 0x11a   :  { %v711_v45 = vpop.f32.mrf.mxu0  ;;  %v871_v46 = vpop.f32.mrf.mxu1 }
 0x11b   :  { %1003 = vst [vmem:[%s2242_s3 + $0x88] sm:$0xff] %v710_v43  ;;  %1067 = vst [vmem:[%s2242_s3 + $0x288] sm:$0xff] %v870_v44  ;;  %v712_v47 = vadd.f32 %v711_v45, %v1723_v33  ;;  %v872_v48 = vadd.f32 %v871_v46, %v1723_v33 }
 0x11c   :  { %v713_v49 = vpop.f32.mrf.mxu0  ;;  %v873_v50 = vpop.f32.mrf.mxu1 }
 0x11d   :  { %1004 = vst [vmem:[%s2242_s3 + $0x90] sm:$0xff] %v712_v47  ;;  %1068 = vst [vmem:[%s2242_s3 + $0x290] sm:$0xff] %v872_v48  ;;  %v714_v51 = vadd.f32 %v713_v49, %v1725_v34  ;;  %v874_v52 = vadd.f32 %v873_v50, %v1725_v34 }
 0x11e   :  { %v717_v53 = vpop.f32.mrf.mxu0  ;;  %v877_v54 = vpop.f32.mrf.mxu1 }
 0x11f   :  { %1005 = vst [vmem:[%s2242_s3 + $0x98] sm:$0xff] %v714_v51  ;;  %1069 = vst [vmem:[%s2242_s3 + $0x298] sm:$0xff] %v874_v52  ;;  %v718_v55 = vadd.f32 %v717_v53, %v1723_v33  ;;  %v878_v56 = vadd.f32 %v877_v54, %v1723_v33 }
 0x120   :  { %v719_v57 = vpop.f32.mrf.mxu0  ;;  %v879_v58 = vpop.f32.mrf.mxu1 }
 0x121   :  { %1006 = vst [vmem:[%s2242_s3 + $0xa0] sm:$0xff] %v718_v55  ;;  %1070 = vst [vmem:[%s2242_s3 + $0x2a0] sm:$0xff] %v878_v56  ;;  %v720_v59 = vadd.f32 %v719_v57, %v1725_v34  ;;  %v880_v60 = vadd.f32 %v879_v58, %v1725_v34 }
 0x122   :  { %v721_v61 = vpop.f32.mrf.mxu0  ;;  %v881_v62 = vpop.f32.mrf.mxu1 }
 0x123   :  { %1007 = vst [vmem:[%s2242_s3 + $0xa8] sm:$0xff] %v720_v59  ;;  %1071 = vst [vmem:[%s2242_s3 + $0x2a8] sm:$0xff] %v880_v60  ;;  %v722_v63 = vadd.f32 %v721_v61, %v1723_v33  ;;  %v882_v0 = vadd.f32 %v881_v62, %v1723_v33 }
 0x124   :  { %v723_v1 = vpop.f32.mrf.mxu0  ;;  %v883_v2 = vpop.f32.mrf.mxu1 }
 0x125   :  { %1008 = vst [vmem:[%s2242_s3 + $0xb0] sm:$0xff] %v722_v63  ;;  %1072 = vst [vmem:[%s2242_s3 + $0x2b0] sm:$0xff] %v882_v0  ;;  %v724_v3 = vadd.f32 %v723_v1, %v1725_v34  ;;  %v884_v4 = vadd.f32 %v883_v2, %v1725_v34 }
 0x126   :  { %v727_v5 = vpop.f32.mrf.mxu0  ;;  %v887_v6 = vpop.f32.mrf.mxu1 }
 0x127   :  { %1009 = vst [vmem:[%s2242_s3 + $0xb8] sm:$0xff] %v724_v3  ;;  %1073 = vst [vmem:[%s2242_s3 + $0x2b8] sm:$0xff] %v884_v4  ;;  %v728_v7 = vadd.f32 %v727_v5, %v1723_v33  ;;  %v888_v8 = vadd.f32 %v887_v6, %v1723_v33 }
 0x128   :  { %v729_v9 = vpop.f32.mrf.mxu0  ;;  %v889_v10 = vpop.f32.mrf.mxu1 }
 0x129   :  { %1010 = vst [vmem:[%s2242_s3 + $0xc0] sm:$0xff] %v728_v7  ;;  %1074 = vst [vmem:[%s2242_s3 + $0x2c0] sm:$0xff] %v888_v8  ;;  %v730_v11 = vadd.f32 %v729_v9, %v1725_v34  ;;  %v890_v12 = vadd.f32 %v889_v10, %v1725_v34 }
 0x12a   :  { %v731_v13 = vpop.f32.mrf.mxu0  ;;  %v891_v14 = vpop.f32.mrf.mxu1 }
 0x12b   :  { %1011 = vst [vmem:[%s2242_s3 + $0xc8] sm:$0xff] %v730_v11  ;;  %1075 = vst [vmem:[%s2242_s3 + $0x2c8] sm:$0xff] %v890_v12  ;;  %v732_v15 = vadd.f32 %v731_v13, %v1723_v33  ;;  %v892_v16 = vadd.f32 %v891_v14, %v1723_v33 }
 0x12c   :  { %v733_v17 = vpop.f32.mrf.mxu0  ;;  %v893_v18 = vpop.f32.mrf.mxu1 }
 0x12d   :  { %1012 = vst [vmem:[%s2242_s3 + $0xd0] sm:$0xff] %v732_v15  ;;  %1076 = vst [vmem:[%s2242_s3 + $0x2d0] sm:$0xff] %v892_v16  ;;  %v734_v19 = vadd.f32 %v733_v17, %v1725_v34  ;;  %v894_v20 = vadd.f32 %v893_v18, %v1725_v34 }
 0x12e   :  { %v737_v21 = vpop.f32.mrf.mxu0  ;;  %v897_v22 = vpop.f32.mrf.mxu1 }
 0x12f   :  { %1013 = vst [vmem:[%s2242_s3 + $0xd8] sm:$0xff] %v734_v19  ;;  %1077 = vst [vmem:[%s2242_s3 + $0x2d8] sm:$0xff] %v894_v20  ;;  %v738_v23 = vadd.f32 %v737_v21, %v1723_v33  ;;  %v898_v24 = vadd.f32 %v897_v22, %v1723_v33 }
 0x130   :  { %v739_v25 = vpop.f32.mrf.mxu0  ;;  %v899_v26 = vpop.f32.mrf.mxu1 }
 0x131   :  { %1014 = vst [vmem:[%s2242_s3 + $0xe0] sm:$0xff] %v738_v23  ;;  %1078 = vst [vmem:[%s2242_s3 + $0x2e0] sm:$0xff] %v898_v24  ;;  %v740_v27 = vadd.f32 %v739_v25, %v1725_v34  ;;  %v900_v28 = vadd.f32 %v899_v26, %v1725_v34 }
 0x132   :  { %v741_v29 = vpop.f32.mrf.mxu0  ;;  %v901_v30 = vpop.f32.mrf.mxu1 }
 0x133   :  { %1015 = vst [vmem:[%s2242_s3 + $0xe8] sm:$0xff] %v740_v27  ;;  %1079 = vst [vmem:[%s2242_s3 + $0x2e8] sm:$0xff] %v900_v28  ;;  %v742_v31 = vadd.f32 %v741_v29, %v1723_v33  ;;  %v902_v32 = vadd.f32 %v901_v30, %v1723_v33 }
 0x134   :  { %v743_v35 = vpop.f32.mrf.mxu0  ;;  %v903_v36 = vpop.f32.mrf.mxu1 }
 0x135   :  { %1016 = vst [vmem:[%s2242_s3 + $0xf0] sm:$0xff] %v742_v31  ;;  %1080 = vst [vmem:[%s2242_s3 + $0x2f0] sm:$0xff] %v902_v32  ;;  %v744_v37 = vadd.f32 %v743_v35, %v1725_v34  ;;  %v904_v38 = vadd.f32 %v903_v36, %v1725_v34 }
 0x136   :  { %v747_v39 = vpop.f32.mrf.mxu0  ;;  %v907_v40 = vpop.f32.mrf.mxu1 }
 0x137   :  { %1017 = vst [vmem:[%s2242_s3 + $0xf8] sm:$0xff] %v744_v37  ;;  %1081 = vst [vmem:[%s2242_s3 + $0x2f8] sm:$0xff] %v904_v38  ;;  %v748_v41 = vadd.f32 %v747_v39, %v1723_v33  ;;  %v908_v42 = vadd.f32 %v907_v40, %v1723_v33 }
 0x138   :  { %v749_v43 = vpop.f32.mrf.mxu0  ;;  %v909_v44 = vpop.f32.mrf.mxu1 }
 0x139   :  { %1018 = vst [vmem:[%s2242_s3 + $0x100] sm:$0xff] %v748_v41  ;;  %1082 = vst [vmem:[%s2242_s3 + $0x300] sm:$0xff] %v908_v42  ;;  %v750_v45 = vadd.f32 %v749_v43, %v1725_v34  ;;  %v910_v46 = vadd.f32 %v909_v44, %v1725_v34 }
 0x13a   :  { %v751_v47 = vpop.f32.mrf.mxu0  ;;  %v911_v48 = vpop.f32.mrf.mxu1 }
 0x13b   :  { %1019 = vst [vmem:[%s2242_s3 + $0x108] sm:$0xff] %v750_v45  ;;  %1083 = vst [vmem:[%s2242_s3 + $0x308] sm:$0xff] %v910_v46  ;;  %v752_v49 = vadd.f32 %v751_v47, %v1723_v33  ;;  %v912_v50 = vadd.f32 %v911_v48, %v1723_v33 }
 0x13c   :  { %v753_v51 = vpop.f32.mrf.mxu0  ;;  %v913_v52 = vpop.f32.mrf.mxu1 }
 0x13d   :  { %1020 = vst [vmem:[%s2242_s3 + $0x110] sm:$0xff] %v752_v49  ;;  %1084 = vst [vmem:[%s2242_s3 + $0x310] sm:$0xff] %v912_v50  ;;  %v754_v53 = vadd.f32 %v753_v51, %v1725_v34  ;;  %v914_v54 = vadd.f32 %v913_v52, %v1725_v34 }
 0x13e   :  { %v757_v55 = vpop.f32.mrf.mxu0  ;;  %v917_v56 = vpop.f32.mrf.mxu1 }
 0x13f   :  { %1021 = vst [vmem:[%s2242_s3 + $0x118] sm:$0xff] %v754_v53  ;;  %1085 = vst [vmem:[%s2242_s3 + $0x318] sm:$0xff] %v914_v54  ;;  %v758_v57 = vadd.f32 %v757_v55, %v1723_v33  ;;  %v918_v58 = vadd.f32 %v917_v56, %v1723_v33 }
 0x140   :  { %v759_v59 = vpop.f32.mrf.mxu0  ;;  %v919_v60 = vpop.f32.mrf.mxu1 }
 0x141   :  { %1022 = vst [vmem:[%s2242_s3 + $0x120] sm:$0xff] %v758_v57  ;;  %1086 = vst [vmem:[%s2242_s3 + $0x320] sm:$0xff] %v918_v58  ;;  %v760_v61 = vadd.f32 %v759_v59, %v1725_v34  ;;  %v920_v62 = vadd.f32 %v919_v60, %v1725_v34 }
 0x142   :  { %v761_v63 = vpop.f32.mrf.mxu0  ;;  %v921_v0 = vpop.f32.mrf.mxu1 }
 0x143   :  { %1023 = vst [vmem:[%s2242_s3 + $0x128] sm:$0xff] %v760_v61  ;;  %1087 = vst [vmem:[%s2242_s3 + $0x328] sm:$0xff] %v920_v62  ;;  %v762_v1 = vadd.f32 %v761_v63, %v1723_v33  ;;  %v922_v2 = vadd.f32 %v921_v0, %v1723_v33 }
 0x144   :  { %v763_v3 = vpop.f32.mrf.mxu0  ;;  %v923_v4 = vpop.f32.mrf.mxu1 }
 0x145   :  { %1024 = vst [vmem:[%s2242_s3 + $0x130] sm:$0xff] %v762_v1  ;;  %1088 = vst [vmem:[%s2242_s3 + $0x330] sm:$0xff] %v922_v2  ;;  %v764_v5 = vadd.f32 %v763_v3, %v1725_v34  ;;  %v924_v6 = vadd.f32 %v923_v4, %v1725_v34 }
 0x146   :  { %v767_v7 = vpop.f32.mrf.mxu0  ;;  %v927_v8 = vpop.f32.mrf.mxu1 }
 0x147   :  { %1025 = vst [vmem:[%s2242_s3 + $0x138] sm:$0xff] %v764_v5  ;;  %1089 = vst [vmem:[%s2242_s3 + $0x338] sm:$0xff] %v924_v6  ;;  %v768_v9 = vadd.f32 %v767_v7, %v1723_v33  ;;  %v928_v10 = vadd.f32 %v927_v8, %v1723_v33 }
 0x148   :  { %v769_v11 = vpop.f32.mrf.mxu0  ;;  %v929_v12 = vpop.f32.mrf.mxu1 }
 0x149   :  { %1026 = vst [vmem:[%s2242_s3 + $0x140] sm:$0xff] %v768_v9  ;;  %1090 = vst [vmem:[%s2242_s3 + $0x340] sm:$0xff] %v928_v10  ;;  %v770_v13 = vadd.f32 %v769_v11, %v1725_v34  ;;  %v930_v14 = vadd.f32 %v929_v12, %v1725_v34 }
 0x14a   :  { %v771_v15 = vpop.f32.mrf.mxu0  ;;  %v931_v16 = vpop.f32.mrf.mxu1 }
 0x14b   :  { %1027 = vst [vmem:[%s2242_s3 + $0x148] sm:$0xff] %v770_v13  ;;  %1091 = vst [vmem:[%s2242_s3 + $0x348] sm:$0xff] %v930_v14  ;;  %v772_v17 = vadd.f32 %v771_v15, %v1723_v33  ;;  %v932_v18 = vadd.f32 %v931_v16, %v1723_v33 }
 0x14c   :  { %v773_v19 = vpop.f32.mrf.mxu0  ;;  %v933_v20 = vpop.f32.mrf.mxu1 }
 0x14d   :  { %1028 = vst [vmem:[%s2242_s3 + $0x150] sm:$0xff] %v772_v17  ;;  %1092 = vst [vmem:[%s2242_s3 + $0x350] sm:$0xff] %v932_v18  ;;  %v774_v21 = vadd.f32 %v773_v19, %v1725_v34  ;;  %v934_v22 = vadd.f32 %v933_v20, %v1725_v34 }
 0x14e   :  { %v777_v23 = vpop.f32.mrf.mxu0  ;;  %v937_v24 = vpop.f32.mrf.mxu1 }
 0x14f   :  { %1029 = vst [vmem:[%s2242_s3 + $0x158] sm:$0xff] %v774_v21  ;;  %1093 = vst [vmem:[%s2242_s3 + $0x358] sm:$0xff] %v934_v22  ;;  %v778_v25 = vadd.f32 %v777_v23, %v1723_v33  ;;  %v938_v26 = vadd.f32 %v937_v24, %v1723_v33 }
 0x150   :  { %v779_v27 = vpop.f32.mrf.mxu0  ;;  %v939_v28 = vpop.f32.mrf.mxu1 }
 0x151   :  { %1030 = vst [vmem:[%s2242_s3 + $0x160] sm:$0xff] %v778_v25  ;;  %1094 = vst [vmem:[%s2242_s3 + $0x360] sm:$0xff] %v938_v26  ;;  %v780_v29 = vadd.f32 %v779_v27, %v1725_v34  ;;  %v940_v30 = vadd.f32 %v939_v28, %v1725_v34 }
 0x152   :  { %v781_v31 = vpop.f32.mrf.mxu0  ;;  %v941_v32 = vpop.f32.mrf.mxu1 }
 0x153   :  { %1031 = vst [vmem:[%s2242_s3 + $0x168] sm:$0xff] %v780_v29  ;;  %1095 = vst [vmem:[%s2242_s3 + $0x368] sm:$0xff] %v940_v30  ;;  %v782_v35 = vadd.f32 %v781_v31, %v1723_v33  ;;  %v942_v36 = vadd.f32 %v941_v32, %v1723_v33 }
 0x154   :  { %v783_v37 = vpop.f32.mrf.mxu0  ;;  %v943_v38 = vpop.f32.mrf.mxu1 }
 0x155   :  { %1032 = vst [vmem:[%s2242_s3 + $0x170] sm:$0xff] %v782_v35  ;;  %1096 = vst [vmem:[%s2242_s3 + $0x370] sm:$0xff] %v942_v36  ;;  %v784_v39 = vadd.f32 %v783_v37, %v1725_v34  ;;  %v944_v40 = vadd.f32 %v943_v38, %v1725_v34 }
 0x156   :  { %v787_v41 = vpop.f32.mrf.mxu0  ;;  %v947_v42 = vpop.f32.mrf.mxu1 }
 0x157   :  { %1033 = vst [vmem:[%s2242_s3 + $0x178] sm:$0xff] %v784_v39  ;;  %1097 = vst [vmem:[%s2242_s3 + $0x378] sm:$0xff] %v944_v40  ;;  %v788_v43 = vadd.f32 %v787_v41, %v1723_v33  ;;  %v948_v44 = vadd.f32 %v947_v42, %v1723_v33 }
 0x158   :  { %v789_v45 = vpop.f32.mrf.mxu0  ;;  %v949_v46 = vpop.f32.mrf.mxu1 }
 0x159   :  { %1034 = vst [vmem:[%s2242_s3 + $0x180] sm:$0xff] %v788_v43  ;;  %1098 = vst [vmem:[%s2242_s3 + $0x380] sm:$0xff] %v948_v44  ;;  %v790_v47 = vadd.f32 %v789_v45, %v1725_v34  ;;  %v950_v48 = vadd.f32 %v949_v46, %v1725_v34 }
 0x15a   :  { %v791_v49 = vpop.f32.mrf.mxu0  ;;  %v951_v50 = vpop.f32.mrf.mxu1 }
 0x15b   :  { %1035 = vst [vmem:[%s2242_s3 + $0x188] sm:$0xff] %v790_v47  ;;  %1099 = vst [vmem:[%s2242_s3 + $0x388] sm:$0xff] %v950_v48  ;;  %v792_v51 = vadd.f32 %v791_v49, %v1723_v33  ;;  %v952_v52 = vadd.f32 %v951_v50, %v1723_v33 }
 0x15c   :  { %v793_v53 = vpop.f32.mrf.mxu0  ;;  %v953_v54 = vpop.f32.mrf.mxu1 }
 0x15d   :  { %1036 = vst [vmem:[%s2242_s3 + $0x190] sm:$0xff] %v792_v51  ;;  %1100 = vst [vmem:[%s2242_s3 + $0x390] sm:$0xff] %v952_v52  ;;  %v794_v55 = vadd.f32 %v793_v53, %v1725_v34  ;;  %v954_v56 = vadd.f32 %v953_v54, %v1725_v34 }
 0x15e   :  { %v797_v57 = vpop.f32.mrf.mxu0  ;;  %v957_v58 = vpop.f32.mrf.mxu1 }
 0x15f   :  { %1037 = vst [vmem:[%s2242_s3 + $0x198] sm:$0xff] %v794_v55  ;;  %1101 = vst [vmem:[%s2242_s3 + $0x398] sm:$0xff] %v954_v56  ;;  %v798_v59 = vadd.f32 %v797_v57, %v1723_v33  ;;  %v958_v60 = vadd.f32 %v957_v58, %v1723_v33 }
 0x160   :  { %v799_v61 = vpop.f32.mrf.mxu0  ;;  %v959_v62 = vpop.f32.mrf.mxu1 }
 0x161   :  { %1038 = vst [vmem:[%s2242_s3 + $0x1a0] sm:$0xff] %v798_v59  ;;  %1102 = vst [vmem:[%s2242_s3 + $0x3a0] sm:$0xff] %v958_v60  ;;  %v800_v63 = vadd.f32 %v799_v61, %v1725_v34  ;;  %v960_v0 = vadd.f32 %v959_v62, %v1725_v34 }
 0x162   :  { %v801_v1 = vpop.f32.mrf.mxu0  ;;  %v961_v2 = vpop.f32.mrf.mxu1 }
 0x163   :  { %1039 = vst [vmem:[%s2242_s3 + $0x1a8] sm:$0xff] %v800_v63  ;;  %1103 = vst [vmem:[%s2242_s3 + $0x3a8] sm:$0xff] %v960_v0  ;;  %v802_v3 = vadd.f32 %v801_v1, %v1723_v33  ;;  %v962_v4 = vadd.f32 %v961_v2, %v1723_v33 }
 0x164   :  { %v803_v5 = vpop.f32.mrf.mxu0  ;;  %v963_v6 = vpop.f32.mrf.mxu1 }
 0x165   :  { %1040 = vst [vmem:[%s2242_s3 + $0x1b0] sm:$0xff] %v802_v3  ;;  %1104 = vst [vmem:[%s2242_s3 + $0x3b0] sm:$0xff] %v962_v4  ;;  %v804_v7 = vadd.f32 %v803_v5, %v1725_v34  ;;  %v964_v8 = vadd.f32 %v963_v6, %v1725_v34 }
 0x166   :  { %v807_v9 = vpop.f32.mrf.mxu0  ;;  %v967_v10 = vpop.f32.mrf.mxu1 }
 0x167   :  { %1041 = vst [vmem:[%s2242_s3 + $0x1b8] sm:$0xff] %v804_v7  ;;  %1105 = vst [vmem:[%s2242_s3 + $0x3b8] sm:$0xff] %v964_v8  ;;  %v808_v11 = vadd.f32 %v807_v9, %v1723_v33  ;;  %v968_v12 = vadd.f32 %v967_v10, %v1723_v33 }
 0x168   :  { %v809_v13 = vpop.f32.mrf.mxu0  ;;  %v969_v14 = vpop.f32.mrf.mxu1 }
 0x169   :  { %1042 = vst [vmem:[%s2242_s3 + $0x1c0] sm:$0xff] %v808_v11  ;;  %1106 = vst [vmem:[%s2242_s3 + $0x3c0] sm:$0xff] %v968_v12  ;;  %v810_v15 = vadd.f32 %v809_v13, %v1725_v34  ;;  %v970_v16 = vadd.f32 %v969_v14, %v1725_v34 }
 0x16a   :  { %v811_v17 = vpop.f32.mrf.mxu0  ;;  %v971_v18 = vpop.f32.mrf.mxu1 }
 0x16b   :  { %1043 = vst [vmem:[%s2242_s3 + $0x1c8] sm:$0xff] %v810_v15  ;;  %1107 = vst [vmem:[%s2242_s3 + $0x3c8] sm:$0xff] %v970_v16  ;;  %v812_v19 = vadd.f32 %v811_v17, %v1723_v33  ;;  %v972_v20 = vadd.f32 %v971_v18, %v1723_v33 }
 0x16c   :  { %v813_v21 = vpop.f32.mrf.mxu0  ;;  %v973_v22 = vpop.f32.mrf.mxu1 }
 0x16d   :  { %1044 = vst [vmem:[%s2242_s3 + $0x1d0] sm:$0xff] %v812_v19  ;;  %1108 = vst [vmem:[%s2242_s3 + $0x3d0] sm:$0xff] %v972_v20  ;;  %v814_v23 = vadd.f32 %v813_v21, %v1725_v34  ;;  %v974_v24 = vadd.f32 %v973_v22, %v1725_v34 }
 0x16e   :  { %v817_v25 = vpop.f32.mrf.mxu0  ;;  %v977_v26 = vpop.f32.mrf.mxu1 }
 0x16f   :  { %1045 = vst [vmem:[%s2242_s3 + $0x1d8] sm:$0xff] %v814_v23  ;;  %1109 = vst [vmem:[%s2242_s3 + $0x3d8] sm:$0xff] %v974_v24  ;;  %v818_v27 = vadd.f32 %v817_v25, %v1723_v33  ;;  %v978_v28 = vadd.f32 %v977_v26, %v1723_v33 }
 0x170   :  { %v819_v29 = vpop.f32.mrf.mxu0  ;;  %v979_v30 = vpop.f32.mrf.mxu1 }
 0x171   :  { %1046 = vst [vmem:[%s2242_s3 + $0x1e0] sm:$0xff] %v818_v27  ;;  %1110 = vst [vmem:[%s2242_s3 + $0x3e0] sm:$0xff] %v978_v28  ;;  %v820_v31 = vadd.f32 %v819_v29, %v1725_v34  ;;  %v980_v32 = vadd.f32 %v979_v30, %v1725_v34 }
 0x172   :  { %v821_v35 = vpop.f32.mrf.mxu0  ;;  %v981_v36 = vpop.f32.mrf.mxu1 }
 0x173   :  { %1047 = vst [vmem:[%s2242_s3 + $0x1e8] sm:$0xff] %v820_v31  ;;  %1111 = vst [vmem:[%s2242_s3 + $0x3e8] sm:$0xff] %v980_v32  ;;  %v822_v37 = vadd.f32 %v821_v35, %v1723_v33  ;;  %v982_v38 = vadd.f32 %v981_v36, %v1723_v33 }
 0x174   :  { %v823_v39 = vpop.f32.mrf.mxu0  ;;  %v983_v40 = vpop.f32.mrf.mxu1 }
 0x175   :  { %1048 = vst [vmem:[%s2242_s3 + $0x1f0] sm:$0xff] %v822_v37  ;;  %1112 = vst [vmem:[%s2242_s3 + $0x3f0] sm:$0xff] %v982_v38  ;;  %v824_v41 = vadd.f32 %v823_v39, %v1725_v34  ;;  %v984_v42 = vadd.f32 %v983_v40, %v1725_v34 }
 0x177   :  { %1049 = vst [vmem:[%s2242_s3 + $0x1f8] sm:$0xff] %v824_v41  ;;  %1113 = vst [vmem:[%s2242_s3 + $0x3f8] sm:$0xff] %v984_v42 }

</bundles_post_ra>
